<compile_context>
chip_gen: v7x
topology: tpu7x:2x2x1
jax: 0.10.0
libtpu: 0.0.40
codegen_flags: <defaults>
</compile_context>

<pallas_src>
import functools

import jax
import jax.numpy as jnp
from jax.experimental import pallas as pl
from jax.experimental.pallas import tpu as pltpu

LEAKY_SLOPE = 0.01   # nn.LeakyReLU default negative_slope
BN_EPS = 1e-5        # nn.BatchNorm1d default eps

IN_FEATS = 23
DIMS = [23, 128, 256, 512, 256]   # Linear layer sizes
TM = 256                          # batch tile (>= MXU height on all chips)


def _leaky_relu(x):
    return jnp.where(x >= 0, x, LEAKY_SLOPE * x)


def tabular_extractor_kernel(
    x_ref,
    w1_ref, b1_ref, w2_ref, b2_ref, w3_ref, b3_ref, w4_ref, b4_ref,
    o_ref,
):
    # Layer 1: f32 dot (K=23 is FLOP-negligible; avoids packing an odd K in bf16).
    h = jnp.dot(x_ref[...], w1_ref[...],
                preferred_element_type=jnp.float32) + b1_ref[...]
    h = _leaky_relu(h).astype(jnp.bfloat16)
    # Layers 2-4: bf16 MXU inputs, f32 accumulation; activations kept f32 for
    # the bias-add / LeakyReLU VPU math.
    h = jnp.dot(h, w2_ref[...],
                preferred_element_type=jnp.float32) + b2_ref[...]
    h = _leaky_relu(h).astype(jnp.bfloat16)
    h = jnp.dot(h, w3_ref[...],
                preferred_element_type=jnp.float32) + b3_ref[...]
    h = _leaky_relu(h).astype(jnp.bfloat16)
    o_ref[...] = (
        jnp.dot(h, w4_ref[...],
                preferred_element_type=jnp.float32) + b4_ref[...]
    )


def init_params(key):
    """PyTorch-style init: Linear uniform(-1/sqrt(fan_in), 1/sqrt(fan_in));
    BatchNorm given non-trivial running stats / affine so folding is exercised."""
    params = {}
    keys = jax.random.split(key, 20)
    ki = 0
    for i, (fin, fout) in enumerate(zip(DIMS[:-1], DIMS[1:]), start=1):
        bound = 1.0 / jnp.sqrt(jnp.float32(fin))
        params[f"w{i}"] = jax.random.uniform(
            keys[ki], (fin, fout), jnp.float32, -bound, bound); ki += 1
        params[f"b{i}"] = jax.random.uniform(
            keys[ki], (1, fout), jnp.float32, -bound, bound); ki += 1
    for i, f in enumerate(DIMS[1:-1], start=1):  # BN after first 3 Linears
        params[f"g{i}"] = jax.random.uniform(
            keys[ki], (1, f), jnp.float32, 0.5, 1.5); ki += 1      # gamma
        params[f"be{i}"] = 0.1 * jax.random.normal(
            keys[ki], (1, f), jnp.float32); ki += 1                # beta
        params[f"m{i}"] = 0.1 * jax.random.normal(
            keys[ki], (1, f), jnp.float32); ki += 1                # running_mean
        params[f"v{i}"] = jax.random.uniform(
            keys[ki], (1, f), jnp.float32, 0.5, 1.5); ki += 1      # running_var
    return params


def fold_bn_and_cast(raw):
    """One-time (outside the jit hot path) prep: fold eval-mode BN into the
    preceding Linear and cast the big-matmul weights to bf16."""
    fp = {}
    for i in (1, 2, 3):
        scale = raw[f"g{i}"] * jax.lax.rsqrt(raw[f"v{i}"] + BN_EPS)   # (1, F)
        w = raw[f"w{i}"] * scale                                      # per-col
        b = (raw[f"b{i}"] - raw[f"m{i}"]) * scale + raw[f"be{i}"]
        fp[f"w{i}"] = w if i == 1 else w.astype(jnp.bfloat16)
        fp[f"b{i}"] = b.astype(jnp.float32)
    fp["w4"] = raw["w4"].astype(jnp.bfloat16)
    fp["b4"] = raw["b4"].astype(jnp.float32)
    return fp


@jax.jit
def tabular_extractor(x, fp):
    B = x.shape[0]
    B_pad = ((B + TM - 1) // TM) * TM
    x_p = jnp.pad(x, ((0, B_pad - B), (0, 0)))     # no-op when B % TM == 0
    grid = (B_pad // TM,)

    flops = 2 * B_pad * sum(a * b for a, b in zip(DIMS[:-1], DIMS[1:]))
    weight_bytes = (DIMS[0] * DIMS[1] * 4
                    + sum(a * b * 2 for a, b in zip(DIMS[1:-1], DIMS[2:]))
                    + sum(f * 4 for f in DIMS[1:]))
    bytes_accessed = x_p.size * 4 + B_pad * DIMS[-1] * 4 + weight_bytes

    in_specs = [
        pl.BlockSpec((TM, IN_FEATS), lambda i: (i, 0)),        # x tile
        pl.BlockSpec((DIMS[0], DIMS[1]), lambda i: (0, 0)),    # w1 (resident)
        pl.BlockSpec((1, DIMS[1]), lambda i: (0, 0)),          # b1
        pl.BlockSpec((DIMS[1], DIMS[2]), lambda i: (0, 0)),    # w2
        pl.BlockSpec((1, DIMS[2]), lambda i: (0, 0)),          # b2
        pl.BlockSpec((DIMS[2], DIMS[3]), lambda i: (0, 0)),    # w3
        pl.BlockSpec((1, DIMS[3]), lambda i: (0, 0)),          # b3
        pl.BlockSpec((DIMS[3], DIMS[4]), lambda i: (0, 0)),    # w4
        pl.BlockSpec((1, DIMS[4]), lambda i: (0, 0)),          # b4
    ]

    out = pl.pallas_call(
        tabular_extractor_kernel,
        out_shape=jax.ShapeDtypeStruct((B_pad, DIMS[-1]), jnp.float32),
        grid=grid,
        in_specs=in_specs,
        out_specs=pl.BlockSpec((TM, DIMS[-1]), lambda i: (i, 0)),
        compiler_params=pltpu.CompilerParams(
            dimension_semantics=("parallel",)),
        cost_estimate=pl.CostEstimate(
            flops=flops, transcendentals=0, bytes_accessed=bytes_accessed),
    )(x_p, fp["w1"], fp["b1"], fp["w2"], fp["b2"],
      fp["w3"], fp["b3"], fp["w4"], fp["b4"])
    return out[:B]


def reference_forward_f32(x, raw):
    """Faithful eval-mode PyTorch semantics, all-f32, BN not folded."""
    h = x
    for i in (1, 2, 3):
        h = h @ raw[f"w{i}"] + raw[f"b{i}"]
        h = (h - raw[f"m{i}"]) * (raw[f"g{i}"] / jnp.sqrt(raw[f"v{i}"] + BN_EPS)) \
            + raw[f"be{i}"]
        h = _leaky_relu(h)
    return h @ raw["w4"] + raw["b4"]


def reference_forward_folded(x, fp):
    """Same numerics the kernel uses (folded BN, bf16 dot inputs for layers 2-4,
    f32 accumulation)."""
    h = jnp.dot(x, fp["w1"], preferred_element_type=jnp.float32) + fp["b1"]
    h = _leaky_relu(h)
    for i in (2, 3):
        h = jnp.dot(h.astype(jnp.bfloat16), fp[f"w{i}"],
                    preferred_element_type=jnp.float32) + fp[f"b{i}"]
        h = _leaky_relu(h)
    return jnp.dot(h.astype(jnp.bfloat16), fp["w4"],
                   preferred_element_type=jnp.float32) + fp["b4"]


if __name__ == "__main__":
    key = jax.random.PRNGKey(0)
    k_param, k_x = jax.random.split(key)

    raw_params = init_params(k_param)
    folded_params = fold_bn_and_cast(raw_params)   # one-time prep, outside jit

    B = 8
    x = jax.random.normal(k_x, (B, IN_FEATS), jnp.float32)

    out = jax.block_until_ready(tabular_extractor(x, folded_params))
    assert out.shape == (B, DIMS[-1]), out.shape

    # Tight check vs. a reference with identical numerics (folded BN, bf16 dots).
    ref_exact = reference_forward_folded(x, folded_params)
    assert jnp.allclose(out, ref_exact, atol=1e-3, rtol=1e-3), (
        float(jnp.max(jnp.abs(out - ref_exact))))

    # Loose check vs. the faithful all-f32 eval-mode module (bf16 MXU inputs
    # introduce ~1e-2-scale deviations).
    ref_f32 = reference_forward_f32(x, raw_params)
    assert jnp.allclose(out, ref_f32, atol=2e-1, rtol=5e-2), (
        float(jnp.max(jnp.abs(out - ref_f32))))

    print("KERNEL_OK")
</pallas_src>

<mosaic_0001>
module attributes {stable_mosaic.version = 11 : i64} {
  func.func @tabular_extractor_kernel(%arg0: i32, %arg1: memref<256x23xf32, #tpu.memory_space<vmem>>, %arg2: memref<23x128xf32, #tpu.memory_space<vmem>>, %arg3: memref<1x128xf32, #tpu.memory_space<vmem>>, %arg4: memref<128x256xbf16, #tpu.memory_space<vmem>>, %arg5: memref<1x256xf32, #tpu.memory_space<vmem>>, %arg6: memref<256x512xbf16, #tpu.memory_space<vmem>>, %arg7: memref<1x512xf32, #tpu.memory_space<vmem>>, %arg8: memref<512x256xbf16, #tpu.memory_space<vmem>>, %arg9: memref<1x256xf32, #tpu.memory_space<vmem>>, %arg10: memref<256x256xf32, #tpu.memory_space<vmem>>) attributes {dimension_semantics = [#tpu.dimension_semantics<parallel>], iteration_bounds = array<i64: 1>, scalar_prefetch = 0 : i64, scratch_operands = 0 : i64, tpu.core_type = #tpu.core_type<tc>, window_params = [{transform_indices = @transform_0, window_bounds = array<i64: 256, 23>}, {pipeline_mode = #tpu.pipeline_mode<synchronous>, transform_indices = @transform_1, window_bounds = array<i64: 23, 128>}, {pipeline_mode = #tpu.pipeline_mode<synchronous>, transform_indices = @transform_2, window_bounds = array<i64: 1, 128>}, {pipeline_mode = #tpu.pipeline_mode<synchronous>, transform_indices = @transform_3, window_bounds = array<i64: 128, 256>}, {pipeline_mode = #tpu.pipeline_mode<synchronous>, transform_indices = @transform_4, window_bounds = array<i64: 1, 256>}, {pipeline_mode = #tpu.pipeline_mode<synchronous>, transform_indices = @transform_5, window_bounds = array<i64: 256, 512>}, {pipeline_mode = #tpu.pipeline_mode<synchronous>, transform_indices = @transform_6, window_bounds = array<i64: 1, 512>}, {pipeline_mode = #tpu.pipeline_mode<synchronous>, transform_indices = @transform_7, window_bounds = array<i64: 512, 256>}, {pipeline_mode = #tpu.pipeline_mode<synchronous>, transform_indices = @transform_8, window_bounds = array<i64: 1, 256>}, {transform_indices = @transform_9, window_bounds = array<i64: 256, 256>}]} {
    %c0 = arith.constant 0 : index
    %c0_0 = arith.constant 0 : index
    %0 = vector.load %arg1[%c0, %c0_0] : memref<256x23xf32, #tpu.memory_space<vmem>>, vector<256x23xf32>
    %c0_1 = arith.constant 0 : index
    %c0_2 = arith.constant 0 : index
    %1 = vector.load %arg2[%c0_1, %c0_2] : memref<23x128xf32, #tpu.memory_space<vmem>>, vector<23x128xf32>
    %cst = arith.constant dense<0.000000e+00> : vector<256x128xf32>
    %2 = tpu.matmul %0, %1, %cst {dimension_numbers = #tpu.dot_dimension_numbers<[1], [0], [0], [1], [0, 0, 1, 1], [], []>} : vector<256x23xf32>, vector<23x128xf32>, vector<256x128xf32> -> vector<256x128xf32>
    %c0_3 = arith.constant 0 : index
    %c0_4 = arith.constant 0 : index
    %3 = vector.load %arg3[%c0_3, %c0_4] : memref<1x128xf32, #tpu.memory_space<vmem>>, vector<1x128xf32>
    %4 = vector.broadcast %3 : vector<1x128xf32> to vector<256x128xf32>
    %5 = arith.addf %2, %4 : vector<256x128xf32>
    %cst_5 = arith.constant 0.000000e+00 : f32
    %6 = vector.broadcast %cst_5 : f32 to vector<256x128xf32>
    %7 = arith.cmpf oge, %5, %6 : vector<256x128xf32>
    %cst_6 = arith.constant 0.00999999977 : f32
    %8 = vector.broadcast %cst_6 : f32 to vector<256x128xf32>
    %9 = arith.mulf %8, %5 : vector<256x128xf32>
    %10 = arith.select %7, %5, %9 : vector<256x128xi1>, vector<256x128xf32>
    %11 = arith.truncf %10 : vector<256x128xf32> to vector<256x128xbf16>
    %c0_7 = arith.constant 0 : index
    %c0_8 = arith.constant 0 : index
    %12 = vector.load %arg4[%c0_7, %c0_8] : memref<128x256xbf16, #tpu.memory_space<vmem>>, vector<128x256xbf16>
    %cst_9 = arith.constant dense<0.000000e+00> : vector<256x256xf32>
    %13 = tpu.matmul %11, %12, %cst_9 {dimension_numbers = #tpu.dot_dimension_numbers<[1], [0], [0], [1], [0, 0, 1, 1], [], []>} : vector<256x128xbf16>, vector<128x256xbf16>, vector<256x256xf32> -> vector<256x256xf32>
    %c0_10 = arith.constant 0 : index
    %c0_11 = arith.constant 0 : index
    %14 = vector.load %arg5[%c0_10, %c0_11] : memref<1x256xf32, #tpu.memory_space<vmem>>, vector<1x256xf32>
    %15 = vector.broadcast %14 : vector<1x256xf32> to vector<256x256xf32>
    %16 = arith.addf %13, %15 : vector<256x256xf32>
    %cst_12 = arith.constant 0.000000e+00 : f32
    %17 = vector.broadcast %cst_12 : f32 to vector<256x256xf32>
    %18 = arith.cmpf oge, %16, %17 : vector<256x256xf32>
    %cst_13 = arith.constant 0.00999999977 : f32
    %19 = vector.broadcast %cst_13 : f32 to vector<256x256xf32>
    %20 = arith.mulf %19, %16 : vector<256x256xf32>
    %21 = arith.select %18, %16, %20 : vector<256x256xi1>, vector<256x256xf32>
    %22 = arith.truncf %21 : vector<256x256xf32> to vector<256x256xbf16>
    %c0_14 = arith.constant 0 : index
    %c0_15 = arith.constant 0 : index
    %23 = vector.load %arg6[%c0_14, %c0_15] : memref<256x512xbf16, #tpu.memory_space<vmem>>, vector<256x512xbf16>
    %cst_16 = arith.constant dense<0.000000e+00> : vector<256x512xf32>
    %24 = tpu.matmul %22, %23, %cst_16 {dimension_numbers = #tpu.dot_dimension_numbers<[1], [0], [0], [1], [0, 0, 1, 1], [], []>} : vector<256x256xbf16>, vector<256x512xbf16>, vector<256x512xf32> -> vector<256x512xf32>
    %c0_17 = arith.constant 0 : index
    %c0_18 = arith.constant 0 : index
    %25 = vector.load %arg7[%c0_17, %c0_18] : memref<1x512xf32, #tpu.memory_space<vmem>>, vector<1x512xf32>
    %26 = vector.broadcast %25 : vector<1x512xf32> to vector<256x512xf32>
    %27 = arith.addf %24, %26 : vector<256x512xf32>
    %cst_19 = arith.constant 0.000000e+00 : f32
    %28 = vector.broadcast %cst_19 : f32 to vector<256x512xf32>
    %29 = arith.cmpf oge, %27, %28 : vector<256x512xf32>
    %cst_20 = arith.constant 0.00999999977 : f32
    %30 = vector.broadcast %cst_20 : f32 to vector<256x512xf32>
    %31 = arith.mulf %30, %27 : vector<256x512xf32>
    %32 = arith.select %29, %27, %31 : vector<256x512xi1>, vector<256x512xf32>
    %33 = arith.truncf %32 : vector<256x512xf32> to vector<256x512xbf16>
    %c0_21 = arith.constant 0 : index
    %c0_22 = arith.constant 0 : index
    %34 = vector.load %arg8[%c0_21, %c0_22] : memref<512x256xbf16, #tpu.memory_space<vmem>>, vector<512x256xbf16>
    %cst_23 = arith.constant dense<0.000000e+00> : vector<256x256xf32>
    %35 = tpu.matmul %33, %34, %cst_23 {dimension_numbers = #tpu.dot_dimension_numbers<[1], [0], [0], [1], [0, 0, 1, 1], [], []>} : vector<256x512xbf16>, vector<512x256xbf16>, vector<256x256xf32> -> vector<256x256xf32>
    %c0_24 = arith.constant 0 : index
    %c0_25 = arith.constant 0 : index
    %36 = vector.load %arg9[%c0_24, %c0_25] : memref<1x256xf32, #tpu.memory_space<vmem>>, vector<1x256xf32>
    %37 = vector.broadcast %36 : vector<1x256xf32> to vector<256x256xf32>
    %38 = arith.addf %35, %37 : vector<256x256xf32>
    %c0_26 = arith.constant 0 : index
    %c0_27 = arith.constant 0 : index
    %39 = vector.load %arg10[%c0_26, %c0_27] : memref<256x256xf32, #tpu.memory_space<vmem>>, vector<256x256xf32>
    tpu.vector_store %arg10[%c0_26, %c0_27], %38 {strides = array<i32>} : memref<256x256xf32, #tpu.memory_space<vmem>>, vector<256x256xf32>,
    return
  }
  func.func @transform_0(%arg0: i32) -> (i32, i32) {
    %c0_i32 = arith.constant 0 : i32
    %c0_i32_0 = arith.constant 0 : i32
    return %arg0, %c0_i32 : i32, i32
  }
  func.func @transform_1(%arg0: i32) -> (i32, i32) {
    %c0_i32 = arith.constant 0 : i32
    %c0_i32_0 = arith.constant 0 : i32
    %c0_i32_1 = arith.constant 0 : i32
    return %c0_i32, %c0_i32_0 : i32, i32
  }
  func.func @transform_2(%arg0: i32) -> (i32, i32) {
    %c0_i32 = arith.constant 0 : i32
    %c0_i32_0 = arith.constant 0 : i32
    %c0_i32_1 = arith.constant 0 : i32
    return %c0_i32, %c0_i32_0 : i32, i32
  }
  func.func @transform_3(%arg0: i32) -> (i32, i32) {
    %c0_i32 = arith.constant 0 : i32
    %c0_i32_0 = arith.constant 0 : i32
    %c0_i32_1 = arith.constant 0 : i32
    return %c0_i32, %c0_i32_0 : i32, i32
  }
  func.func @transform_4(%arg0: i32) -> (i32, i32) {
    %c0_i32 = arith.constant 0 : i32
    %c0_i32_0 = arith.constant 0 : i32
    %c0_i32_1 = arith.constant 0 : i32
    return %c0_i32, %c0_i32_0 : i32, i32
  }
  func.func @transform_5(%arg0: i32) -> (i32, i32) {
    %c0_i32 = arith.constant 0 : i32
    %c0_i32_0 = arith.constant 0 : i32
    %c0_i32_1 = arith.constant 0 : i32
    return %c0_i32, %c0_i32_0 : i32, i32
  }
  func.func @transform_6(%arg0: i32) -> (i32, i32) {
    %c0_i32 = arith.constant 0 : i32
    %c0_i32_0 = arith.constant 0 : i32
    %c0_i32_1 = arith.constant 0 : i32
    return %c0_i32, %c0_i32_0 : i32, i32
  }
  func.func @transform_7(%arg0: i32) -> (i32, i32) {
    %c0_i32 = arith.constant 0 : i32
    %c0_i32_0 = arith.constant 0 : i32
    %c0_i32_1 = arith.constant 0 : i32
    return %c0_i32, %c0_i32_0 : i32, i32
  }
  func.func @transform_8(%arg0: i32) -> (i32, i32) {
    %c0_i32 = arith.constant 0 : i32
    %c0_i32_0 = arith.constant 0 : i32
    %c0_i32_1 = arith.constant 0 : i32
    return %c0_i32, %c0_i32_0 : i32, i32
  }
  func.func @transform_9(%arg0: i32) -> (i32, i32) {
    %c0_i32 = arith.constant 0 : i32
    %c0_i32_0 = arith.constant 0 : i32
    return %arg0, %c0_i32 : i32, i32
  }
}

</mosaic_0001>

<bundles_post_ra>
// kernel: tabular_extractor.1
= control target key start
LH: loop header
LB: loop body
LE: loop exit
PB: predicated region body
PF: predicated region fallthrough
CT: control target
= control target key end

     0   :  { %14 = vsyncpa [#allocation3], 0  ;;  %s5484_s0 = inlined_call_operand.vmem [shape: f32[256,23], index: 0, kind: input, shape index: {}]   ;;  %s5485_s1 = inlined_call_operand.vmem [shape: f32[23,128], index: 1, kind: input, shape index: {}]   ;;  %s5486_s2 = inlined_call_operand.vmem [shape: f32[1,128], index: 2, kind: input, shape index: {}]   ;;  %s5487_s3 = inlined_call_operand.vmem [shape: bf16[128,256], index: 3, kind: input, shape index: {}]   ;;  %s5488_s4 = inlined_call_operand.vmem [shape: f32[1,256], index: 4, kind: input, shape index: {}]   ;;  %s5489_s5 = inlined_call_operand.hbm [shape: bf16[256,512], index: 5, kind: input, shape index: {}]   ;;  %s5490_s6 = inlined_call_operand.vmem [shape: f32[1,512], index: 6, kind: input, shape index: {}]   ;;  %s5491_s7 = inlined_call_operand.hbm [shape: bf16[512,256], index: 7, kind: input, shape index: {}]   ;;  %s5492_s8 = inlined_call_operand.vmem [shape: f32[1,256], index: 8, kind: input, shape index: {}]   ;;  %s5493_s9 = inlined_call_operand.vmem [shape: f32[256,256], index: 9, kind: output, shape index: {}]  }
   0x1   :  { %15 = vsyncpa [#allocation5], 0  ;;  %s3865_s30 = smov [#allocation2]   ;;  %s3817_s13 = scalar_lea.hbm %s5489_s5, 8192 }
   0x2   :  { %s31_s10 = sshll.u32 %s3865_s30, 4  ;;  %p3818_p0 = scmp.ne.s32.totalorder %s5489_s5, %s3817_s13  ;;  %s32_s10 = int_to_ptr.vmem [resolvable:$true] %s31_s10 }
   0x3   :  { %p3821_p1 = scmp.lt.u32.totalorder %s3817_s13, %s5489_s5 }
   0x5   :  { %p3823_p2 = pnand %p3821_p1, %p3818_p0 }
   0x7   :  { %3826 = shalt.err (!%p3823_p2)
}
   0x8   :  { %s3827_s18 = scalar_lea.vmem %s32_s10, 8192  ;;  %p3832_p4 = scmp.lt.s32.totalorder %s32_s10, %s32_s10 }
   0x9   :  { %p3828_p3 = scmp.ne.s32.totalorder %s32_s10, %s3827_s18  ;;  %p3833_p5 = scmp.lt.s32.totalorder %s3827_s18, %s3827_s18 }
   0xb   :  { %p3834_p6 = por %p3833_p5, %p3832_p4 }
   0xd   :  { %p3835_p7 = pnand %p3834_p6, %p3828_p3 }
   0xf   :  { %3838 = shalt.err (!%p3835_p7)
}
  0x10   :  { %s3866_s19 = smov 256   ;;  %s3867_s20 = smov 16  }
  0x11   :  { %37 = dma.hbm_to_vmem [thread:$0]  %s5489_s5, 8192, %s32_s10, [#allocation3], %s3866_s19, %s3866_s19, %s3867_s20  }
  0x12   :  { %s3868_s23 = smov [#allocation4]   ;;  %s3839_s27 = scalar_lea.hbm %s5491_s7, 8192 }
  0x13   :  { %s45_s24 = sshll.u32 %s3868_s23, 4  ;;  %p3840_p8 = scmp.ne.s32.totalorder %s5491_s7, %s3839_s27  ;;  %s46_s24 = int_to_ptr.vmem [resolvable:$true] %s45_s24 }
  0x14   :  { %p3843_p9 = scmp.lt.u32.totalorder %s3839_s27, %s5491_s7 }
  0x16   :  { %p3845_p10 = pnand %p3843_p9, %p3840_p8 }
  0x18   :  { %3848 = shalt.err (!%p3845_p10)
}
  0x19   :  { %s3849_s12 = scalar_lea.vmem %s46_s24, 8192  ;;  %p3854_p12 = scmp.lt.s32.totalorder %s46_s24, %s46_s24 }
  0x1a   :  { %p3850_p11 = scmp.ne.s32.totalorder %s46_s24, %s3849_s12  ;;  %p3855_p13 = scmp.lt.s32.totalorder %s3849_s12, %s3849_s12 }
  0x1c   :  { %p3856_p0 = por %p3855_p13, %p3854_p12 }
  0x1e   :  { %p3857_p1 = pnand %p3856_p0, %p3850_p11 }
  0x20   :  { %3860 = shalt.err (!%p3857_p1)
}
  0x21   :  { %s3869_s5 = smov 128   ;;  %s3870_s10 = smov 8  }
  0x22   :  { %51 = dma.hbm_to_vmem [thread:$0]  %s5491_s7, 8192, %s46_s24, [#allocation5], %s3869_s5, %s3869_s5, %s3870_s10  }
  0x23   :  { %3861 = dma.done.wait [#allocation3], 8192  }
  0x24   :  { %3862 = vsyncadd [#allocation3], 4294959104 }
  0x25   :  { %3863 = dma.done.wait [#allocation5], 8192  }
  0x26   :  { %3864 = vsyncadd [#allocation5], 4294959104  ;;  %vm103_vm0 = vcmask 187392   ;;  %v93_v0 = vld [vmem:[%s5485_s1] sm:$0xff]  ;;  %v94_v1 = vld [vmem:[%s5485_s1 + $0x8] sm:$0xff]  ;;  %vm200_vm1 = vcmask 1046528  }
  0x27   :  { %v3425_v2 = vpack.c.bf16 %v94_v1, %v93_v0  ;;  %v61_v3 = vld [vmem:[%s5484_s0] sm:$0xff]  ;;  %v95_v4 = vld [vmem:[%s5485_s1 + $0x10] sm:$0x7f]  ;;  %v62_v5 = vld [vmem:[%s5484_s0 + $0x8] sm:$0xff]  ;;  %v3871_v52 = vmov 0  }
  0x28   :  { %3377 = vmatprep.mubr.msk.f32.mxu0 %vm103_vm0, %v61_v3  ;;  %v63_v6 = vld [vmem:[%s5484_s0 + $0x10] sm:$0xff]  ;;  %v64_v7 = vld [vmem:[%s5484_s0 + $0x18] sm:$0xff]  ;;  %v65_v8 = vld [vmem:[%s5484_s0 + $0x20] sm:$0xff]  ;;  %681 = vmatprep.mubr.bf16.mxu1 %v3871_v52 }
  0x29   :  { %3426 = vmatprep.subr.bf16.mxu0 %v3425_v2  ;;  %v3596_v9 = vld [vmem:[%s5487_s3 + $0x4] ss:$8 sps:$4 sm:$0xff]   ;;  %v3598_v10 = vld [vmem:[%s5487_s3] ss:$8 sps:$4 sm:$0xff]   ;;  %v3599_v11 = vld [vmem:[%s5487_s3 + $0x14] ss:$8 sps:$4 sm:$0xff]  }
  0x2a   :  { %3428 = vmatpush3.bf16.msra.mxu0 %v3425_v2  ;;  %v66_v12 = vld [vmem:[%s5484_s0 + $0x28] sm:$0xff]  ;;  %649 = vmatprep.subr.bf16.mxu1 %v3596_v9  ;;  %v67_v13 = vld [vmem:[%s5484_s0 + $0x30] sm:$0xff]  ;;  %v68_v16 = vld [vmem:[%s5484_s0 + $0x38] sm:$0xff] }
  0x2b   :  { %3375 = vmatprep.subr.msk.mxu0 %vm200_vm1, %v95_v4  ;;  %650 = vmatpush1.bf16.msra.mxu1 %v3598_v10  ;;  %v3601_v14 = vld [vmem:[%s5487_s3 + $0x10] ss:$8 sps:$4 sm:$0xff]   ;;  %v3602_v15 = vld [vmem:[%s5487_s3 + $0x24] ss:$8 sps:$4 sm:$0xff]   ;;  %v3604_v18 = vld [vmem:[%s5487_s3 + $0x20] ss:$8 sps:$4 sm:$0xff]  }
  0x2c   :  { %651 = vmatprep.subr.bf16.mxu1 %v3599_v11  ;;  %v69_v17 = vld [vmem:[%s5484_s0 + $0x40] sm:$0xff]  ;;  %v3605_v19 = vld [vmem:[%s5487_s3 + $0x34] ss:$8 sps:$4 sm:$0xff]   ;;  %v70_v20 = vld [vmem:[%s5484_s0 + $0x48] sm:$0xff] }
  0x2d   :  { %v71_v21 = vld [vmem:[%s5484_s0 + $0x50] sm:$0xff]  ;;  %v3608_v23 = vld [vmem:[%s5487_s3 + $0x44] ss:$8 sps:$4 sm:$0xff]   ;;  %v72_v24 = vld [vmem:[%s5484_s0 + $0x58] sm:$0xff] }
  0x2e   :  { %3376 = vmatpush3.msk.msra.mxu0 %vm200_vm1, %v95_v4  ;;  %v3607_v22 = vld [vmem:[%s5487_s3 + $0x30] ss:$8 sps:$4 sm:$0xff]   ;;  %v73_v25 = vld [vmem:[%s5484_s0 + $0x60] sm:$0xff]  ;;  %v3611_v27 = vld [vmem:[%s5487_s3 + $0x54] ss:$8 sps:$4 sm:$0xff]  }
  0x2f   :  { %3378 = vmatmul.mubr.msk.f32.vlgmr.msra.gmra.mrb[0].mxu0 %vm103_vm0, %v62_v5  ;;  %652 = vmatpush1.bf16.msra.mxu1 %v3601_v14  ;;  %v3610_v26 = vld [vmem:[%s5487_s3 + $0x40] ss:$8 sps:$4 sm:$0xff]   ;;  %v75_v29 = vld [vmem:[%s5484_s0 + $0x70] sm:$0xff]  ;;  %v76_v31 = vld [vmem:[%s5484_s0 + $0x78] sm:$0xff] }
  0x30   :  { %3380 = vmatprep.mubr.msk.f32.mxu0 %vm103_vm0, %v63_v6  ;;  %653 = vmatprep.subr.bf16.mxu1 %v3602_v15  ;;  %v74_v28 = vld [vmem:[%s5484_s0 + $0x68] sm:$0xff]  ;;  %v3613_v30 = vld [vmem:[%s5487_s3 + $0x50] ss:$8 sps:$4 sm:$0xff]   ;;  %v77_v32 = vld [vmem:[%s5484_s0 + $0x80] sm:$0xff] }
  0x31   :  { %v78_v33 = vld [vmem:[%s5484_s0 + $0x88] sm:$0xff]  ;;  %v79_v34 = vld [vmem:[%s5484_s0 + $0x90] sm:$0xff]  ;;  %v80_v35 = vld [vmem:[%s5484_s0 + $0x98] sm:$0xff] }
  0x32   :  { %v81_v36 = vld [vmem:[%s5484_s0 + $0xa0] sm:$0xff]  ;;  %v82_v37 = vld [vmem:[%s5484_s0 + $0xa8] sm:$0xff]  ;;  %v83_v38 = vld [vmem:[%s5484_s0 + $0xb0] sm:$0xff] }
  0x33   :  { %3381 = vmatmul.mubr.msk.f32.gmra.mrb[2].mxu0 %vm103_vm0, %v64_v7  ;;  %654 = vmatpush1.bf16.msra.mxu1 %v3604_v18  ;;  %v84_v39 = vld [vmem:[%s5484_s0 + $0xb8] sm:$0xff]  ;;  %v85_v40 = vld [vmem:[%s5484_s0 + $0xc0] sm:$0xff]  ;;  %v86_v41 = vld [vmem:[%s5484_s0 + $0xc8] sm:$0xff] }
  0x34   :  { %3383 = vmatprep.mubr.msk.f32.mxu0 %vm103_vm0, %v65_v8  ;;  %655 = vmatprep.subr.bf16.mxu1 %v3605_v19  ;;  %v87_v42 = vld [vmem:[%s5484_s0 + $0xd0] sm:$0xff]  ;;  %v88_v43 = vld [vmem:[%s5484_s0 + $0xd8] sm:$0xff]  ;;  %v89_v44 = vld [vmem:[%s5484_s0 + $0xe0] sm:$0xff] }
  0x35   :  { %v90_v45 = vld [vmem:[%s5484_s0 + $0xe8] sm:$0xff]  ;;  %v91_v46 = vld [vmem:[%s5484_s0 + $0xf0] sm:$0xff]  ;;  %v92_v47 = vld [vmem:[%s5484_s0 + $0xf8] sm:$0xff] }
  0x36   :  { %v3614_v48 = vld [vmem:[%s5487_s3 + $0x64] ss:$8 sps:$4 sm:$0xff]   ;;  %v3616_v49 = vld [vmem:[%s5487_s3 + $0x60] ss:$8 sps:$4 sm:$0xff]   ;;  %v3617_v50 = vld [vmem:[%s5487_s3 + $0x74] ss:$8 sps:$4 sm:$0xff]  }
  0x37   :  { %3384 = vmatmul.mubr.msk.f32.gmra.mrb[4].mxu0 %vm103_vm0, %v66_v12  ;;  %656 = vmatpush1.bf16.msra.mxu1 %v3607_v22  ;;  %v3619_v51 = vld [vmem:[%s5487_s3 + $0x70] ss:$8 sps:$4 sm:$0xff]   ;;  %v4135_v53 = vld [vmem:[%s5486_s2] ss:$0 sm:$0xff]  ;;  %v3622_v57 = vld [vmem:[#allocation2 + $0xc] ss:$16 sps:$4 sm:$0xff]  }
  0x38   :  { %3386 = vmatprep.mubr.msk.f32.mxu0 %vm103_vm0, %v67_v13  ;;  %657 = vmatprep.subr.bf16.mxu1 %v3608_v23  ;;  %v3626_v59 = vld [vmem:[#allocation2] ss:$16 sps:$4 sm:$0xff]   ;;  %v3628_v61 = vld [vmem:[#allocation2 + $0x4] ss:$16 sps:$4 sm:$0xff]   ;;  %v3620_v5 = vld [vmem:[#allocation2 + $0x8] ss:$16 sps:$4 sm:$0xff]  }
  0x39   :  { %1472 = vmatprep.subr.bf16.mxu0 %v3628_v61  ;;  %v3625_v6 = vld [vmem:[#allocation2 + $0x2c] ss:$16 sps:$4 sm:$0xff]   ;;  %v3634_v7 = vld [vmem:[#allocation2 + $0x24] ss:$16 sps:$4 sm:$0xff]   ;;  %v3632_v10 = vld [vmem:[#allocation2 + $0x20] ss:$16 sps:$4 sm:$0xff]  }
  0x3a   :  { %1473 = vmatpush1.bf16.msra.mxu0 %v3626_v59  ;;  %v3637_v13 = vld [vmem:[#allocation2 + $0x44] ss:$16 sps:$4 sm:$0xff]   ;;  %v3623_v19 = vld [vmem:[#allocation2 + $0x28] ss:$16 sps:$4 sm:$0xff]   ;;  %v3635_v23 = vld [vmem:[#allocation2 + $0x40] ss:$16 sps:$4 sm:$0xff]  }
  0x3b   :  { %3387 = vmatmul.mubr.msk.f32.gmra.mrb[6].mxu0 %vm103_vm0, %v68_v16  ;;  %658 = vmatpush1.bf16.msra.mxu1 %v3610_v26  ;;  %v3643_v26 = vld [vmem:[#allocation2 + $0x64] ss:$16 sps:$4 sm:$0xff]   ;;  %v3650_v61 = vld [vmem:[#allocation2 + $0xa0] ss:$16 sps:$4 sm:$0xff]  }
  0x3c   :  { %3389 = vmatprep.mubr.msk.f32.mxu0 %vm103_vm0, %v69_v17  ;;  %659 = vmatprep.subr.bf16.mxu1 %v3611_v27 }
  0x3d   :  { %1474 = vmatprep.subr.bf16.mxu0 %v3634_v7 }
  0x3e   :  { %1475 = vmatpush1.bf16.msra.mxu0 %v3632_v10  ;;  %v3656_v10 = vld [vmem:[#allocation2 + $0xc0] ss:$16 sps:$4 sm:$0xff]  }
  0x3f   :  { %3390 = vmatmul.mubr.msk.f32.gmra.mrb[8].mxu0 %vm103_vm0, %v70_v20  ;;  %660 = vmatpush1.bf16.msra.mxu1 %v3613_v30  ;;  %v3631_v20 = vld [vmem:[#allocation2 + $0x4c] ss:$16 sps:$4 sm:$0xff]  }
  0x40   :  { %3392 = vmatprep.mubr.msk.f32.mxu0 %vm103_vm0, %v71_v21  ;;  %661 = vmatprep.subr.bf16.mxu1 %v3614_v48 }
  0x41   :  { %1476 = vmatprep.subr.bf16.mxu0 %v3637_v13  ;;  %v3661_v13 = vld [vmem:[#allocation2 + $0xcc] ss:$16 sps:$4 sm:$0xff]  }
  0x42   :  { %1477 = vmatpush1.bf16.msra.mxu0 %v3635_v23  ;;  %v3662_v23 = vld [vmem:[#allocation2 + $0xe0] ss:$16 sps:$4 sm:$0xff]  }
  0x43   :  { %3393 = vmatmul.mubr.msk.f32.gmra.mrb[10].mxu0 %vm103_vm0, %v72_v24  ;;  %662 = vmatpush1.bf16.msra.mxu1 %v3616_v49  ;;  %v3649_v49 = vld [vmem:[#allocation2 + $0x8c] ss:$16 sps:$4 sm:$0xff]  }
  0x44   :  { %3395 = vmatprep.mubr.msk.f32.mxu0 %vm103_vm0, %v73_v25  ;;  %663 = vmatprep.subr.bf16.mxu1 %v3617_v50 }
  0x45   :  { %1478 = vmatprep.subr.bf16.mxu0 %v3643_v26  ;;  %v3667_v26 = vld [vmem:[#allocation2 + $0xec] ss:$16 sps:$4 sm:$0xff]  }
  0x47   :  { %3396 = vmatmul.mubr.msk.f32.gmra.mrb[12].mxu0 %vm103_vm0, %v74_v28  ;;  %664 = vmatpush1.bf16.msra.mxu1 %v3619_v51 }
  0x48   :  { %3398 = vmatprep.mubr.msk.f32.mxu0 %vm103_vm0, %v75_v29  ;;  %1665 = vmatprep.subr.bf16.mxu1 %v3622_v57 }
  0x4b   :  { %3399 = vmatmul.mubr.msk.f32.gmra.mrb[14].mxu0 %vm103_vm0, %v76_v31 }
  0x4c   :  { %3401 = vmatprep.mubr.msk.f32.mxu0 %vm103_vm0, %v77_v32  ;;  %v3629_v32 = vld [vmem:[#allocation2 + $0x48] ss:$16 sps:$4 sm:$0xff]  }
  0x4f   :  { %3402 = vmatmul.mubr.msk.f32.gmra.mrb[16].mxu0 %vm103_vm0, %v78_v33  ;;  %v3640_v33 = vld [vmem:[#allocation2 + $0x6c] ss:$16 sps:$4 sm:$0xff]  }
  0x50   :  { %3404 = vmatprep.mubr.msk.f32.mxu0 %vm103_vm0, %v79_v34 }
  0x53   :  { %3405 = vmatmul.mubr.msk.f32.gmra.mrb[18].mxu0 %vm103_vm0, %v80_v35 }
  0x54   :  { %3407 = vmatprep.mubr.msk.f32.mxu0 %vm103_vm0, %v81_v36  ;;  %v3641_v36 = vld [vmem:[#allocation2 + $0x60] ss:$16 sps:$4 sm:$0xff]  }
  0x55   :  { %1479 = vmatpush1.bf16.msra.mxu0 %v3641_v36  ;;  %v3668_v36 = vld [vmem:[#allocation2 + $0x100] ss:$16 sps:$4 sm:$0xff]  }
  0x57   :  { %3408 = vmatmul.mubr.msk.f32.gmra.mrb[20].mxu0 %vm103_vm0, %v82_v37 }
  0x58   :  { %3410 = vmatprep.mubr.msk.f32.mxu0 %vm103_vm0, %v83_v38 }
  0x5b   :  { %3411 = vmatmul.mubr.msk.f32.gmra.mrb[22].mxu0 %vm103_vm0, %v84_v39  ;;  %v3646_v39 = vld [vmem:[#allocation2 + $0x84] ss:$16 sps:$4 sm:$0xff]  }
  0x5c   :  { %3413 = vmatprep.mubr.msk.f32.mxu0 %vm103_vm0, %v85_v40  ;;  %1480 = vmatprep.subr.bf16.mxu0 %v3646_v39  ;;  %v3673_v39 = vld [vmem:[#allocation2 + $0x10c] ss:$16 sps:$4 sm:$0xff]  }
  0x5f   :  { %3414 = vmatmul.mubr.msk.f32.gmra.mrb[24].mxu0 %vm103_vm0, %v86_v41 }
  0x60   :  { %3416 = vmatprep.mubr.msk.f32.mxu0 %vm103_vm0, %v87_v42 }
  0x63   :  { %3417 = vmatmul.mubr.msk.f32.gmra.mrb[26].mxu0 %vm103_vm0, %v88_v43 }
  0x64   :  { %3419 = vmatprep.mubr.msk.f32.mxu0 %vm103_vm0, %v89_v44 }
  0x67   :  { %3420 = vmatmul.mubr.msk.f32.gmra.mrb[28].mxu0 %vm103_vm0, %v90_v45  ;;  %v3638_v45 = vld [vmem:[#allocation2 + $0x68] ss:$16 sps:$4 sm:$0xff]  }
  0x68   :  { %3422 = vmatprep.mubr.msk.f32.mxu0 %vm103_vm0, %v91_v46  ;;  %v3644_v46 = vld [vmem:[#allocation2 + $0x80] ss:$16 sps:$4 sm:$0xff]  }
  0x69   :  { %1481 = vmatpush1.bf16.msra.mxu0 %v3644_v46 }
  0x6b   :  { %3423 = vmatmul.mubr.msk.f32.gmra.mrb[30].mxu0 %vm103_vm0, %v92_v47 }
 0x102   :  { %v3379_v54 = vpop.f32.mrb[0].mxu0 }
 0x103   :  { %v276_v55 = vadd.f32 %v3379_v54, %v4135_v53  ;;  %v270_v56 = vpop.f32.mrb[1].mxu0  ;;  %v3652_v54 = vld [vmem:[#allocation2 + $0xa4] ss:$16 sps:$4 sm:$0xff]  }
 0x104   :  { %v271_v58 = vadd.f32 %v4135_v53, %v270_v56  ;;  %1482 = vmatprep.subr.bf16.mxu0 %v3652_v54  ;;  %v3679_v54 = vld [vmem:[#allocation2 + $0x12c] ss:$16 sps:$4 sm:$0xff]  }
 0x105   :  { %vm430_vm2 = vcmp.ge.f32.partialorder %v276_v55, 0.0  ;;  %v462_v60 = vmul.f32 0.01, %v276_v55  ;;  %1483 = vmatpush1.bf16.msra.mxu0 %v3650_v61 }
 0x106   :  { %vm429_vm3 = vcmp.ge.f32.partialorder %v271_v58, 0.0  ;;  %v461_v62 = vmul.f32 0.01, %v271_v58  ;;  %v3382_v63 = vpop.f32.mrb[2].mxu0 }
 0x107   :  { %v286_v0 = vadd.f32 %v3382_v63, %v4135_v53  ;;  %v280_v1 = vpop.f32.mrb[3].mxu0  ;;  %v494_v2 = vsel %vm430_vm2, %v276_v55, %v462_v60  ;;  %v3647_v60 = vld [vmem:[#allocation2 + $0x88] ss:$16 sps:$4 sm:$0xff]  }
 0x108   :  { %v281_v3 = vadd.f32 %v4135_v53, %v280_v1  ;;  %v493_v4 = vsel %vm429_vm3, %v271_v58, %v461_v62 }
 0x109   :  { %vm432_vm4 = vcmp.ge.f32.partialorder %v286_v0, 0.0  ;;  %v464_v8 = vmul.f32 0.01, %v286_v0  ;;  %v525_v9 = vpack.c.bf16 %v494_v2, %v493_v4 }
 0x10a   :  { %vm431_vm5 = vcmp.ge.f32.partialorder %v281_v3, 0.0  ;;  %v463_v11 = vmul.f32 0.01, %v281_v3  ;;  %v3385_v12 = vpop.f32.mrb[4].mxu0 }
 0x10b   :  { %682 = vmatmul.mubr.bf16.vlgmr.msra.gmra.mrb[0].mxu1 %v525_v9  ;;  %v296_v14 = vadd.f32 %v3385_v12, %v4135_v53  ;;  %v290_v15 = vpop.f32.mrb[5].mxu0  ;;  %v496_v16 = vsel %vm432_vm4, %v286_v0, %v464_v8  ;;  %v3655_v0 = vld [vmem:[#allocation2 + $0xac] ss:$16 sps:$4 sm:$0xff]   ;;  %v3653_v9 = vld [vmem:[#allocation2 + $0xa8] ss:$16 sps:$4 sm:$0xff]  }
 0x10c   :  { %v291_v17 = vadd.f32 %v4135_v53, %v290_v15  ;;  %691 = vmatprep.mubr.bf16.mxu1 %v3871_v52  ;;  %v495_v18 = vsel %vm431_vm5, %v281_v3, %v463_v11  ;;  %1666 = vmatpush1.bf16.msra.mxu1 %v3620_v5  ;;  %v3658_v3 = vld [vmem:[#allocation2 + $0xc4] ss:$16 sps:$4 sm:$0xff]  }
 0x10d   :  { %vm434_vm6 = vcmp.ge.f32.partialorder %v296_v14, 0.0  ;;  %v466_v21 = vmul.f32 0.01, %v296_v14  ;;  %v526_v22 = vpack.c.bf16 %v496_v16, %v495_v18  ;;  %1667 = vmatprep.subr.bf16.mxu1 %v3625_v6  ;;  %1484 = vmatprep.subr.bf16.mxu0 %v3658_v3  ;;  %v3664_v16 = vld [vmem:[#allocation2 + $0xe4] ss:$16 sps:$4 sm:$0xff]  }
 0x10e   :  { %vm433_vm7 = vcmp.ge.f32.partialorder %v291_v17, 0.0  ;;  %v465_v24 = vmul.f32 0.01, %v291_v17  ;;  %v3388_v25 = vpop.f32.mrb[6].mxu0  ;;  %1485 = vmatpush1.bf16.msra.mxu0 %v3656_v10  ;;  %v3680_v3 = vld [vmem:[#allocation2 + $0x140] ss:$16 sps:$4 sm:$0xff]  }
 0x10f   :  { %v306_v27 = vadd.f32 %v3388_v25, %v4135_v53  ;;  %v300_v28 = vpop.f32.mrb[7].mxu0  ;;  %v498_v29 = vsel %vm434_vm6, %v296_v14, %v466_v21  ;;  %1486 = vmatprep.subr.bf16.mxu0 %v3664_v16  ;;  %v3686_v16 = vld [vmem:[#allocation2 + $0x160] ss:$16 sps:$4 sm:$0xff]  }
 0x110   :  { %v301_v30 = vadd.f32 %v4135_v53, %v300_v28  ;;  %v497_v31 = vsel %vm433_vm7, %v291_v17, %v465_v24  ;;  %1668 = vmatpush1.bf16.msra.mxu1 %v3623_v19 }
 0x111   :  { %vm436_vm8 = vcmp.ge.f32.partialorder %v306_v27, 0.0  ;;  %v468_v34 = vmul.f32 0.01, %v306_v27  ;;  %v527_v35 = vpack.c.bf16 %v498_v29, %v497_v31  ;;  %1669 = vmatprep.subr.bf16.mxu1 %v3631_v20  ;;  %v3670_v29 = vld [vmem:[#allocation2 + $0x104] ss:$16 sps:$4 sm:$0xff]  }
 0x112   :  { %vm435_vm9 = vcmp.ge.f32.partialorder %v301_v30, 0.0  ;;  %v467_v37 = vmul.f32 0.01, %v301_v30  ;;  %v3391_v38 = vpop.f32.mrb[8].mxu0  ;;  %1487 = vmatpush1.bf16.msra.mxu0 %v3662_v23 }
 0x113   :  { %692 = vmatmul.mubr.bf16.gmra.mrb[4].mxu1 %v526_v22  ;;  %v316_v40 = vadd.f32 %v3391_v38, %v4135_v53  ;;  %v310_v41 = vpop.f32.mrb[9].mxu0  ;;  %v4147_v42 = vsel %vm436_vm8, %v306_v27, %v468_v34  ;;  %v3659_v22 = vld [vmem:[#allocation2 + $0xc8] ss:$16 sps:$4 sm:$0xff]   ;;  %1488 = vmatprep.subr.bf16.mxu0 %v3670_v29 }
 0x114   :  { %701 = vmatprep.mubr.bf16.mxu1 %v3871_v52  ;;  %v311_v43 = vadd.f32 %v4135_v53, %v310_v41  ;;  %v4151_v44 = vsel %vm435_vm9, %v301_v30, %v467_v37  ;;  %1670 = vmatpush1.bf16.msra.mxu1 %v3629_v32 }
 0x115   :  { %vm438_vm10 = vcmp.ge.f32.partialorder %v316_v40, 0.0  ;;  %v470_v47 = vmul.f32 0.01, %v316_v40  ;;  %v528_v48 = vpack.c.bf16 %v4147_v42, %v4151_v44  ;;  %1671 = vmatprep.subr.bf16.mxu1 %v3640_v33  ;;  %v3676_v42 = vld [vmem:[#allocation2 + $0x124] ss:$16 sps:$4 sm:$0xff]  }
 0x116   :  { %vm437_vm11 = vcmp.ge.f32.partialorder %v311_v43, 0.0  ;;  %v469_v50 = vmul.f32 0.01, %v311_v43  ;;  %v3394_v51 = vpop.f32.mrb[10].mxu0  ;;  %1489 = vmatpush1.bf16.msra.mxu0 %v3668_v36 }
 0x117   :  { %v326_v55 = vadd.f32 %v3394_v51, %v4135_v53  ;;  %v320_v56 = vpop.f32.mrb[11].mxu0  ;;  %v4156_v57 = vsel %vm438_vm10, %v316_v40, %v470_v47  ;;  %1490 = vmatprep.subr.bf16.mxu0 %v3676_v42 }
 0x118   :  { %v321_v58 = vadd.f32 %v4135_v53, %v320_v56  ;;  %v4159_v59 = vsel %vm437_vm11, %v311_v43, %v469_v50  ;;  %1672 = vmatpush1.bf16.msra.mxu1 %v3638_v45 }
 0x119   :  { %vm440_vm12 = vcmp.ge.f32.partialorder %v326_v55, 0.0  ;;  %v472_v62 = vmul.f32 0.01, %v326_v55  ;;  %v529_v63 = vpack.c.bf16 %v4156_v57, %v4159_v59  ;;  %1673 = vmatprep.subr.bf16.mxu1 %v3649_v49  ;;  %v3674_v49 = vld [vmem:[#allocation2 + $0x120] ss:$16 sps:$4 sm:$0xff]  }
 0x11a   :  { %vm439_vm13 = vcmp.ge.f32.partialorder %v321_v58, 0.0  ;;  %v471_v1 = vmul.f32 0.01, %v321_v58  ;;  %v3397_v2 = vpop.f32.mrb[12].mxu0  ;;  %1491 = vmatpush1.bf16.msra.mxu0 %v3674_v49  ;;  %v3685_v59 = vld [vmem:[#allocation2 + $0x14c] ss:$16 sps:$4 sm:$0xff]  }
 0x11b   :  { %702 = vmatmul.mubr.bf16.gmra.mrb[8].mxu1 %v527_v35  ;;  %v336_v4 = vadd.f32 %v3397_v2, %v4135_v53  ;;  %v330_v5 = vpop.f32.mrb[13].mxu0  ;;  %v4164_v6 = vsel %vm440_vm12, %v326_v55, %v472_v62  ;;  %v3665_v35 = vld [vmem:[#allocation2 + $0xe8] ss:$16 sps:$4 sm:$0xff]   ;;  %v3698_v49 = vld [vmem:[#allocation2 + $0x1a0] ss:$16 sps:$4 sm:$0xff]  }
 0x11c   :  { %711 = vmatprep.mubr.bf16.mxu1 %v3871_v52  ;;  %v331_v7 = vadd.f32 %v4135_v53, %v330_v5  ;;  %v4168_v8 = vsel %vm439_vm13, %v321_v58, %v471_v1  ;;  %1674 = vmatpush1.bf16.msra.mxu1 %v3647_v60  ;;  %v3682_v58 = vld [vmem:[#allocation2 + $0x144] ss:$16 sps:$4 sm:$0xff]   ;;  %v3677_v2 = vld [vmem:[#allocation2 + $0x128] ss:$16 sps:$4 sm:$0xff]  }
 0x11d   :  { %vm442_vm14 = vcmp.ge.f32.partialorder %v336_v4, 0.0  ;;  %v474_v11 = vmul.f32 0.01, %v336_v4  ;;  %v530_v12 = vpack.c.bf16 %v4164_v6, %v4168_v8  ;;  %1675 = vmatprep.subr.bf16.mxu1 %v3655_v0  ;;  %1492 = vmatprep.subr.bf16.mxu0 %v3682_v58  ;;  %v3697_v8 = vld [vmem:[#allocation2 + $0x18c] ss:$16 sps:$4 sm:$0xff]  }
 0x11e   :  { %vm441_vm15 = vcmp.ge.f32.partialorder %v331_v7, 0.0  ;;  %v473_v14 = vmul.f32 0.01, %v331_v7  ;;  %v3400_v15 = vpop.f32.mrb[14].mxu0  ;;  %1493 = vmatpush1.bf16.msra.mxu0 %v3680_v3 }
 0x11f   :  { %v346_v17 = vadd.f32 %v3400_v15, %v4135_v53  ;;  %v340_v18 = vpop.f32.mrb[15].mxu0  ;;  %v4173_v19 = vsel %vm442_vm14, %v336_v4, %v474_v11  ;;  %v3683_v15 = vld [vmem:[#allocation2 + $0x148] ss:$16 sps:$4 sm:$0xff]  }
 0x120   :  { %v341_v20 = vadd.f32 %v4135_v53, %v340_v18  ;;  %v4176_v21 = vsel %vm441_vm15, %v331_v7, %v473_v14  ;;  %1676 = vmatpush1.bf16.msra.mxu1 %v3653_v9  ;;  %v3688_v7 = vld [vmem:[#allocation2 + $0x164] ss:$16 sps:$4 sm:$0xff]  }
 0x121   :  { %vm444_vm0 = vcmp.ge.f32.partialorder %v346_v17, 0.0  ;;  %v476_v24 = vmul.f32 0.01, %v346_v17  ;;  %v531_v25 = vpack.c.bf16 %v4173_v19, %v4176_v21  ;;  %1677 = vmatprep.subr.bf16.mxu1 %v3661_v13  ;;  %1494 = vmatprep.subr.bf16.mxu0 %v3688_v7 }
 0x122   :  { %vm443_vm1 = vcmp.ge.f32.partialorder %v341_v20, 0.0  ;;  %v475_v27 = vmul.f32 0.01, %v341_v20  ;;  %v3403_v28 = vpop.f32.mrb[16].mxu0  ;;  %1495 = vmatpush1.bf16.msra.mxu0 %v3686_v16 }
 0x123   :  { %712 = vmatmul.mubr.bf16.gmra.mrb[12].mxu1 %v528_v48  ;;  %v356_v30 = vadd.f32 %v3403_v28, %v4135_v53  ;;  %v350_v31 = vpop.f32.mrb[17].mxu0  ;;  %v4184_v32 = vsel %vm444_vm0, %v346_v17, %v476_v24  ;;  %v3671_v48 = vld [vmem:[#allocation2 + $0x108] ss:$16 sps:$4 sm:$0xff]   ;;  %v3694_v24 = vld [vmem:[#allocation2 + $0x184] ss:$16 sps:$4 sm:$0xff]  }
 0x124   :  { %721 = vmatprep.mubr.bf16.mxu1 %v3871_v52  ;;  %v351_v33 = vadd.f32 %v4135_v53, %v350_v31  ;;  %v4188_v34 = vsel %vm443_vm1, %v341_v20, %v475_v27  ;;  %1678 = vmatpush1.bf16.msra.mxu1 %v3659_v22  ;;  %v3691_v20 = vld [vmem:[#allocation2 + $0x16c] ss:$16 sps:$4 sm:$0xff]   ;;  %v3689_v31 = vld [vmem:[#allocation2 + $0x168] ss:$16 sps:$4 sm:$0xff]  }
 0x125   :  { %vm446_vm2 = vcmp.ge.f32.partialorder %v356_v30, 0.0  ;;  %v478_v37 = vmul.f32 0.01, %v356_v30  ;;  %v532_v38 = vpack.c.bf16 %v4184_v32, %v4188_v34  ;;  %1679 = vmatprep.subr.bf16.mxu1 %v3667_v26  ;;  %1496 = vmatprep.subr.bf16.mxu0 %v3694_v24  ;;  %v3701_v32 = vld [vmem:[#allocation2 + $0x1a8] ss:$16 sps:$4 sm:$0xff]  }
 0x126   :  { %vm445_vm3 = vcmp.ge.f32.partialorder %v351_v33, 0.0  ;;  %v477_v40 = vmul.f32 0.01, %v351_v33  ;;  %v3406_v41 = vpop.f32.mrb[18].mxu0  ;;  %v3706_v34 = vld [vmem:[#allocation2 + $0x1c4] ss:$16 sps:$4 sm:$0xff]  }
 0x127   :  { %v366_v43 = vadd.f32 %v3406_v41, %v4135_v53  ;;  %v360_v44 = vpop.f32.mrb[19].mxu0  ;;  %v4193_v45 = vsel %vm446_vm2, %v356_v30, %v478_v37  ;;  %v3700_v37 = vld [vmem:[#allocation2 + $0x1a4] ss:$16 sps:$4 sm:$0xff]  }
 0x128   :  { %v361_v46 = vadd.f32 %v4135_v53, %v360_v44  ;;  %v4196_v47 = vsel %vm445_vm3, %v351_v33, %v477_v40  ;;  %1680 = vmatpush1.bf16.msra.mxu1 %v3665_v35  ;;  %v3692_v33 = vld [vmem:[#allocation2 + $0x180] ss:$16 sps:$4 sm:$0xff]   ;;  %v3695_v44 = vld [vmem:[#allocation2 + $0x188] ss:$16 sps:$4 sm:$0xff]  }
 0x129   :  { %vm448_vm4 = vcmp.ge.f32.partialorder %v366_v43, 0.0  ;;  %v480_v50 = vmul.f32 0.01, %v366_v43  ;;  %v533_v51 = vpack.c.bf16 %v4193_v45, %v4196_v47  ;;  %1681 = vmatprep.subr.bf16.mxu1 %v3673_v39  ;;  %1497 = vmatpush1.bf16.msra.mxu0 %v3692_v33  ;;  %v3704_v45 = vld [vmem:[#allocation2 + $0x1c0] ss:$16 sps:$4 sm:$0xff]  }
 0x12a   :  { %vm447_vm5 = vcmp.ge.f32.partialorder %v361_v46, 0.0  ;;  %v479_v55 = vmul.f32 0.01, %v361_v46  ;;  %v3409_v56 = vpop.f32.mrb[20].mxu0  ;;  %1498 = vmatprep.subr.bf16.mxu0 %v3700_v37  ;;  %v3707_v47 = vld [vmem:[#allocation2 + $0x1c8] ss:$16 sps:$4 sm:$0xff]  }
 0x12b   :  { %722 = vmatmul.mubr.bf16.gmra.mrb[16].mxu1 %v529_v63  ;;  %v376_v60 = vadd.f32 %v3409_v56, %v4135_v53  ;;  %v370_v61 = vpop.f32.mrb[21].mxu0  ;;  %v4204_v62 = vsel %vm448_vm4, %v366_v43, %v480_v50 }
 0x12c   :  { %731 = vmatprep.mubr.bf16.mxu1 %v3871_v52  ;;  %v371_v0 = vadd.f32 %v4135_v53, %v370_v61  ;;  %v4208_v1 = vsel %vm447_vm5, %v361_v46, %v479_v55  ;;  %1682 = vmatpush1.bf16.msra.mxu1 %v3671_v48 }
 0x12d   :  { %vm450_vm6 = vcmp.ge.f32.partialorder %v376_v60, 0.0  ;;  %v482_v4 = vmul.f32 0.01, %v376_v60  ;;  %v534_v57 = vpack.c.bf16 %v4204_v62, %v4208_v1  ;;  %1683 = vmatprep.subr.bf16.mxu1 %v3679_v54  ;;  %1499 = vmatpush1.bf16.msra.mxu0 %v3698_v49  ;;  %v3715_v62 = vld [vmem:[#allocation2 + $0x1ec] ss:$16 sps:$4 sm:$0xff]  }
 0x12e   :  { %vm449_vm7 = vcmp.ge.f32.partialorder %v371_v0, 0.0  ;;  %v481_v63 = vmul.f32 0.01, %v371_v0  ;;  %v3412_v5 = vpop.f32.mrb[22].mxu0  ;;  %1500 = vmatprep.subr.bf16.mxu0 %v3706_v34  ;;  %v3710_v1 = vld [vmem:[#allocation2 + $0x1e0] ss:$16 sps:$4 sm:$0xff]  }
 0x12f   :  { %v386_v9 = vadd.f32 %v3412_v5, %v4135_v53  ;;  %v380_v10 = vpop.f32.mrb[23].mxu0  ;;  %v4213_v11 = vsel %vm450_vm6, %v376_v60, %v482_v4  ;;  %v3727_v34 = vld [vmem:[#allocation4 + $0x34] ss:$8 sps:$4 sm:$0xff]  }
 0x130   :  { %v381_v13 = vadd.f32 %v4135_v53, %v380_v10  ;;  %v4216_v14 = vsel %vm449_vm7, %v371_v0, %v481_v63  ;;  %1684 = vmatpush1.bf16.msra.mxu1 %v3677_v2 }
 0x131   :  { %vm452_vm8 = vcmp.ge.f32.partialorder %v386_v9, 0.0  ;;  %v484_v17 = vmul.f32 0.01, %v386_v9  ;;  %v535_v18 = vpack.c.bf16 %v4213_v11, %v4216_v14  ;;  %1685 = vmatprep.subr.bf16.mxu1 %v3685_v59  ;;  %1501 = vmatpush1.bf16.msra.mxu0 %v3704_v45  ;;  %v3718_v11 = vld [vmem:[#allocation4 + $0x4] ss:$8 sps:$4 sm:$0xff]   ;;  %v559_v14 = vlaneseq }
 0x132   :  { %vm451_vm9 = vcmp.ge.f32.partialorder %v381_v13, 0.0  ;;  %v483_v22 = vmul.f32 0.01, %v381_v13  ;;  %v3415_v23 = vpop.f32.mrb[24].mxu0 }
 0x133   :  { %732 = vmatmul.mubr.bf16.gmra.mrb[20].mxu1 %v530_v12  ;;  %v396_v26 = vadd.f32 %v3415_v23, %v4135_v53  ;;  %v390_v27 = vpop.f32.mrb[25].mxu0  ;;  %v4224_v28 = vsel %vm452_vm8, %v386_v9, %v484_v17  ;;  %v4274_v16 = vshrl.u32 %v559_v14, 7 }
 0x134   :  { %741 = vmatprep.mubr.bf16.mxu1 %v3871_v52  ;;  %v391_v29 = vadd.f32 %v4135_v53, %v390_v27  ;;  %v4228_v30 = vsel %vm451_vm9, %v381_v13, %v483_v22  ;;  %1686 = vmatpush1.bf16.msra.mxu1 %v3683_v15 }
 0x135   :  { %vm454_vm10 = vcmp.ge.f32.partialorder %v396_v26, 0.0  ;;  %v486_v35 = vmul.f32 0.01, %v396_v26  ;;  %v536_v6 = vpack.c.bf16 %v4224_v28, %v4228_v30  ;;  %1687 = vmatprep.subr.bf16.mxu1 %v3691_v20  ;;  %v4277_v17 = vsub.s32 0, %v4274_v16 }
 0x136   :  { %vm453_vm11 = vcmp.ge.f32.partialorder %v391_v29, 0.0  ;;  %v485_v12 = vmul.f32 0.01, %v391_v29  ;;  %v3418_v36 = vpop.f32.mrb[26].mxu0  ;;  %v4283_v20 = vsub.s32 1, %v4274_v16 }
 0x137   :  { %v406_v39 = vadd.f32 %v3418_v36, %v4135_v53  ;;  %v400_v40 = vpop.f32.mrb[27].mxu0  ;;  %v4233_v41 = vsel %vm454_vm10, %v396_v26, %v486_v35  ;;  %5508 = vst [vmem:[#allocation8_spill] sm:$0xff] %v4277_v17 }
 0x138   :  { %v401_v42 = vadd.f32 %v4135_v53, %v400_v40  ;;  %v4236_v43 = vsel %vm453_vm11, %v391_v29, %v485_v12  ;;  %1688 = vmatpush1.bf16.msra.mxu1 %v3689_v31  ;;  %5509 = vst [vmem:[#allocation9_spill] sm:$0xff] %v4283_v20 }
 0x139   :  { %vm456_vm12 = vcmp.ge.f32.partialorder %v406_v39, 0.0  ;;  %v488_v46 = vmul.f32 0.01, %v406_v39  ;;  %v537_v48 = vpack.c.bf16 %v4233_v41, %v4236_v43  ;;  %1689 = vmatprep.subr.bf16.mxu1 %v3697_v8 }
 0x13a   :  { %vm455_vm13 = vcmp.ge.f32.partialorder %v401_v42, 0.0  ;;  %v487_v50 = vmul.f32 0.01, %v401_v42  ;;  %v3421_v54 = vpop.f32.mrb[28].mxu0 }
 0x13b   :  { %742 = vmatmul.mubr.bf16.gmra.mrb[24].mxu1 %v531_v25  ;;  %v416_v55 = vadd.f32 %v3421_v54, %v4135_v53  ;;  %v410_v56 = vpop.f32.mrb[29].mxu0  ;;  %v520_v58 = vsel %vm456_vm12, %v406_v39, %v488_v46  ;;  %v3716_v46 = vld [vmem:[#allocation4] ss:$8 sps:$4 sm:$0xff]  }
 0x13c   :  { %751 = vmatprep.mubr.bf16.mxu1 %v3871_v52  ;;  %v411_v60 = vadd.f32 %v4135_v53, %v410_v56  ;;  %v519_v61 = vsel %vm455_vm13, %v401_v42, %v487_v50  ;;  %1690 = vmatpush1.bf16.msra.mxu1 %v3695_v44  ;;  %v3721_v50 = vld [vmem:[#allocation4 + $0x14] ss:$8 sps:$4 sm:$0xff]  }
 0x13d   :  { %vm458_vm14 = vcmp.ge.f32.partialorder %v416_v55, 0.0  ;;  %v490_v0 = vmul.f32 0.01, %v416_v55  ;;  %v538_v2 = vpack.c.bf16 %v520_v58, %v519_v61 }
 0x13e   :  { %vm457_vm15 = vcmp.ge.f32.partialorder %v411_v60, 0.0  ;;  %v489_v3 = vmul.f32 0.01, %v411_v60  ;;  %v3424_v4 = vpop.f32.mrb[30].mxu0 }
 0x13f   :  { %v426_v19 = vadd.f32 %v3424_v4, %v4135_v53  ;;  %v420_v21 = vpop.f32.mrb[31].mxu0  ;;  %v522_v25 = vsel %vm458_vm14, %v416_v55, %v490_v0  ;;  %v3719_v0 = vld [vmem:[#allocation4 + $0x10] ss:$8 sps:$4 sm:$0xff]  }
 0x140   :  { %v421_v59 = vadd.f32 %v4135_v53, %v420_v21  ;;  %v521_v63 = vsel %vm457_vm15, %v411_v60, %v489_v3  ;;  %v3703_v53 = vld [vmem:[#allocation2 + $0x1ac] ss:$16 sps:$4 sm:$0xff]  }
 0x141   :  { %vm460_vm0 = vcmp.ge.f32.partialorder %v426_v19, 0.0  ;;  %v492_v5 = vmul.f32 0.01, %v426_v19  ;;  %v539_v7 = vpack.c.bf16 %v522_v25, %v521_v63  ;;  %1691 = vmatprep.subr.bf16.mxu1 %v3703_v53  ;;  %v3724_v3 = vld [vmem:[#allocation4 + $0x24] ss:$8 sps:$4 sm:$0xff]  }
 0x142   :  { %vm459_vm1 = vcmp.ge.f32.partialorder %v421_v59, 0.0  ;;  %v491_v9 = vmul.f32 0.01, %v421_v59  ;;  %1692 = vmatpush1.bf16.msra.mxu1 %v3701_v32 }
 0x143   :  { %752 = vmatmul.mubr.bf16.gmra.mrb[28].mxu1 %v532_v38  ;;  %v524_v10 = vsel %vm460_vm0, %v426_v19, %v492_v5  ;;  %v3709_v38 = vld [vmem:[#allocation2 + $0x1cc] ss:$16 sps:$4 sm:$0xff]  }
 0x144   :  { %761 = vmatprep.mubr.bf16.mxu1 %v3871_v52  ;;  %v523_v13 = vsel %vm459_vm1, %v421_v59, %v491_v9  ;;  %1693 = vmatprep.subr.bf16.mxu1 %v3709_v38  ;;  %v4299_v5 = vld [vmem:[#allocation4 + $0x104] ss:$8 sps:$4 sm:$0xff]   ;;  %v3763_v38 = vld [vmem:[#allocation4 + $0x114] ss:$8 sps:$4 sm:$0xff]  }
 0x145   :  { %v540_v15 = vpack.c.bf16 %v524_v10, %v523_v13  ;;  %v3722_v13 = vld [vmem:[#allocation4 + $0x20] ss:$8 sps:$4 sm:$0xff]  }
 0x146   :  { %1694 = vmatpush1.bf16.msra.mxu1 %v3707_v47 }
 0x147   :  { %1695 = vmatprep.subr.bf16.mxu1 %v3715_v62  ;;  %v3725_v62 = vld [vmem:[#allocation4 + $0x30] ss:$8 sps:$4 sm:$0xff]  }
 0x14b   :  { %762 = vmatmul.mubr.bf16.gmra.mrb[32].mxu1 %v533_v51  ;;  %v3712_v51 = vld [vmem:[#allocation2 + $0x1e4] ss:$16 sps:$4 sm:$0xff]  }
 0x14c   :  { %771 = vmatprep.mubr.bf16.mxu1 %v3871_v52  ;;  %1502 = vmatprep.subr.bf16.mxu0 %v3712_v51 }
 0x14d   :  { %1503 = vmatpush1.bf16.msra.mxu0 %v3710_v1 }
 0x14e   :  { %2702 = vmatprep.subr.bf16.mxu0 %v3718_v11  ;;  %v3730_v11 = vld [vmem:[#allocation4 + $0x44] ss:$8 sps:$4 sm:$0xff]  }
 0x153   :  { %772 = vmatmul.mubr.bf16.gmra.mrb[36].mxu1 %v534_v57  ;;  %v3713_v57 = vld [vmem:[#allocation2 + $0x1e8] ss:$16 sps:$4 sm:$0xff]  }
 0x154   :  { %781 = vmatprep.mubr.bf16.mxu1 %v3871_v52  ;;  %1696 = vmatpush1.bf16.msra.mxu1 %v3713_v57 }
 0x155   :  { %3429 = vmatprep.subr.bf16.mxu1 %v4299_v5 }
 0x15b   :  { %782 = vmatmul.mubr.bf16.gmra.mrb[40].mxu1 %v535_v18  ;;  %v557_v18 = vld [vmem:[%s5488_s4] sm:$0x3] }
 0x15c   :  { %791 = vmatprep.mubr.bf16.mxu1 %v3871_v52  ;;  %v4286_v22 = vrot.slane %v557_v18, %v4277_v17 }
 0x163   :  { %792 = vmatmul.mubr.bf16.gmra.mrb[44].mxu1 %v536_v6 }
 0x164   :  { %801 = vmatprep.mubr.bf16.mxu1 %v3871_v52 }
 0x16b   :  { %802 = vmatmul.mubr.bf16.gmra.mrb[48].mxu1 %v537_v48 }
 0x16c   :  { %811 = vmatprep.mubr.bf16.mxu1 %v3871_v52 }
 0x173   :  { %812 = vmatmul.mubr.bf16.gmra.mrb[52].mxu1 %v538_v2 }
 0x174   :  { %821 = vmatprep.mubr.bf16.mxu1 %v3871_v52 }
 0x17b   :  { %822 = vmatmul.mubr.bf16.gmra.mrb[56].mxu1 %v539_v7 }
 0x17c   :  { %831 = vmatprep.mubr.bf16.mxu1 %v3871_v52  ;;  %v4289_v52 = vrot.slane %v557_v18, %v4283_v20  ;;  %v3761_v18 = vld [vmem:[#allocation4 + $0x110] ss:$8 sps:$4 sm:$0xff]  }
 0x183   :  { %832 = vmatmul.mubr.bf16.gmra.mrb[60].mxu1 %v540_v15  ;;  %v3755_v15 = vld [vmem:[#allocation4 + $0x100] ss:$8 sps:$4 sm:$0xff]  }
 0x1de   :  { %v683_v23 = vpop.f32.mrb[0].mxu1 }
 0x1df   :  { %v684_v24 = vadd.f32 %v683_v23, %v4286_v22  ;;  %v685_v26 = vpop.f32.mrb[1].mxu1 }
 0x1e0   :  { %v686_v27 = vadd.f32 %v685_v26, %v4289_v52  ;;  %v687_v28 = vpop.f32.mrb[2].mxu1 }
 0x1e1   :  { %v906_v29 = vmul.f32 0.01, %v684_v24  ;;  %v688_v30 = vadd.f32 %v687_v28, %v4286_v22  ;;  %v689_v31 = vpop.f32.mrb[3].mxu1  ;;  %vm842_vm2 = vcmp.ge.f32.partialorder %v684_v24, 0.0 }
 0x1e2   :  { %v907_v33 = vmul.f32 0.01, %v686_v27  ;;  %v690_v35 = vadd.f32 %v689_v31, %v4289_v52  ;;  %vm843_vm3 = vcmp.ge.f32.partialorder %v686_v27, 0.0 }
 0x1e3   :  { %vm844_vm4 = vcmp.ge.f32.partialorder %v688_v30, 0.0  ;;  %v908_v6 = vmul.f32 0.01, %v688_v30  ;;  %v970_v12 = vsel %vm842_vm2, %v684_v24, %v906_v29  ;;  %v3769_v24 = vld [vmem:[#allocation4 + $0x124] ss:$8 sps:$4 sm:$0xff]  }
 0x1e4   :  { %vm845_vm5 = vcmp.ge.f32.partialorder %v690_v35, 0.0  ;;  %v909_v8 = vmul.f32 0.01, %v690_v35  ;;  %v971_v40 = vsel %vm843_vm3, %v686_v27, %v907_v33 }
 0x1e5   :  { %v972_v36 = vsel %vm844_vm4, %v688_v30, %v908_v6 }
 0x1e6   :  { %v1034_v37 = vpack.c.bf16 %v972_v36, %v970_v12  ;;  %v693_v39 = vpop.f32.mrb[4].mxu1  ;;  %v973_v41 = vsel %vm845_vm5, %v690_v35, %v909_v8  ;;  %v3728_v8 = vld [vmem:[#allocation4 + $0x40] ss:$8 sps:$4 sm:$0xff]  }
 0x1e7   :  { %v694_v42 = vadd.f32 %v693_v39, %v4286_v22  ;;  %v695_v43 = vpop.f32.mrb[5].mxu1  ;;  %v1035_v44 = vpack.c.bf16 %v973_v41, %v971_v40  ;;  %v3767_v12 = vld [vmem:[#allocation4 + $0x120] ss:$8 sps:$4 sm:$0xff]   ;;  %v3733_v39 = vld [vmem:[#allocation4 + $0x54] ss:$8 sps:$4 sm:$0xff]  }
 0x1e8   :  { %v696_v48 = vadd.f32 %v695_v43, %v4289_v52  ;;  %v697_v49 = vpop.f32.mrb[6].mxu1 }
 0x1e9   :  { %v910_v54 = vmul.f32 0.01, %v694_v42  ;;  %v698_v55 = vadd.f32 %v697_v49, %v4286_v22  ;;  %v699_v56 = vpop.f32.mrb[7].mxu1  ;;  %1504 = vmatprep.mubr.bf16.mxu0 %v1035_v44  ;;  %1697 = vmatprep.mubr.bf16.mxu1 %v1035_v44  ;;  %vm846_vm6 = vcmp.ge.f32.partialorder %v694_v42, 0.0 }
 0x1ea   :  { %v911_v58 = vmul.f32 0.01, %v696_v48  ;;  %v700_v60 = vadd.f32 %v699_v56, %v4289_v52  ;;  %1505 = vmatmul.mubr.bf16.vlgmr.msra.gmra.mrb[32].mxu0 %v1034_v37  ;;  %1698 = vmatmul.mubr.bf16.vlgmr.msra.gmra.mrb[64].mxu1 %v1034_v37  ;;  %vm847_vm7 = vcmp.ge.f32.partialorder %v696_v48, 0.0 }
 0x1eb   :  { %vm848_vm8 = vcmp.ge.f32.partialorder %v698_v55, 0.0  ;;  %v912_v61 = vmul.f32 0.01, %v698_v55  ;;  %2703 = vmatpush1.bf16.msra.mxu0 %v3716_v46  ;;  %v974_v4 = vsel %vm846_vm6, %v694_v42, %v910_v54  ;;  %3445 = vmatpush1.bf16.msra.mxu1 %v3755_v15  ;;  %v3737_v15 = vld [vmem:[#allocation4 + $0x70] ss:$8 sps:$4 sm:$0xff]  }
 0x1ec   :  { %vm849_vm9 = vcmp.ge.f32.partialorder %v700_v60, 0.0  ;;  %v913_v2 = vmul.f32 0.01, %v700_v60  ;;  %2704 = vmatprep.subr.bf16.mxu0 %v3721_v50  ;;  %v975_v25 = vsel %vm847_vm7, %v696_v48, %v911_v58  ;;  %3430 = vmatprep.subr.bf16.mxu1 %v3763_v38  ;;  %v3731_v48 = vld [vmem:[#allocation4 + $0x50] ss:$8 sps:$4 sm:$0xff]  }
 0x1ed   :  { %v976_v19 = vsel %vm848_vm8, %v698_v55, %v912_v61  ;;  %v3736_v50 = vld [vmem:[#allocation4 + $0x64] ss:$8 sps:$4 sm:$0xff]  }
 0x1ee   :  { %v703_v21 = vpop.f32.mrb[8].mxu1  ;;  %v977_v59 = vsel %vm849_vm9, %v700_v60, %v913_v2  ;;  %v1036_v63 = vpack.c.bf16 %v976_v19, %v974_v4  ;;  %v3734_v4 = vld [vmem:[#allocation4 + $0x60] ss:$8 sps:$4 sm:$0xff]  }
 0x1ef   :  { %v704_v7 = vadd.f32 %v703_v21, %v4286_v22  ;;  %v705_v9 = vpop.f32.mrb[9].mxu1  ;;  %v1037_v10 = vpack.c.bf16 %v977_v59, %v975_v25  ;;  %2705 = vmatpush1.bf16.msra.mxu0 %v3719_v0  ;;  %3446 = vmatpush1.bf16.msra.mxu1 %v3761_v18  ;;  %v3739_v25 = vld [vmem:[#allocation4 + $0x74] ss:$8 sps:$4 sm:$0xff]  }
 0x1f0   :  { %v706_v53 = vadd.f32 %v705_v9, %v4289_v52  ;;  %v707_v32 = vpop.f32.mrb[10].mxu1  ;;  %2706 = vmatprep.subr.bf16.mxu0 %v3724_v3  ;;  %3431 = vmatprep.subr.bf16.mxu1 %v3769_v24  ;;  %v3745_v24 = vld [vmem:[#allocation4 + $0x94] ss:$8 sps:$4 sm:$0xff]  }
 0x1f1   :  { %v914_v45 = vmul.f32 0.01, %v704_v7  ;;  %v708_v47 = vadd.f32 %v707_v32, %v4286_v22  ;;  %v709_v51 = vpop.f32.mrb[11].mxu1  ;;  %1514 = vmatprep.mubr.bf16.mxu0 %v1037_v10  ;;  %1707 = vmatprep.mubr.bf16.mxu1 %v1037_v10  ;;  %vm850_vm10 = vcmp.ge.f32.partialorder %v704_v7, 0.0  ;;  %v3742_v32 = vld [vmem:[#allocation4 + $0x84] ss:$8 sps:$4 sm:$0xff]  }
 0x1f2   :  { %v915_v1 = vmul.f32 0.01, %v706_v53  ;;  %v710_v57 = vadd.f32 %v709_v51, %v4289_v52  ;;  %1515 = vmatmul.mubr.bf16.gmra.mrb[36].mxu0 %v1036_v63  ;;  %1708 = vmatmul.mubr.bf16.gmra.mrb[68].mxu1 %v1036_v63  ;;  %vm851_vm11 = vcmp.ge.f32.partialorder %v706_v53, 0.0 }
 0x1f3   :  { %vm852_vm12 = vcmp.ge.f32.partialorder %v708_v47, 0.0  ;;  %v916_v14 = vmul.f32 0.01, %v708_v47  ;;  %2707 = vmatpush1.bf16.msra.mxu0 %v3722_v13  ;;  %v978_v26 = vsel %vm850_vm10, %v704_v7, %v914_v45  ;;  %3447 = vmatpush1.bf16.msra.mxu1 %v3767_v12 }
 0x1f4   :  { %vm853_vm13 = vcmp.ge.f32.partialorder %v710_v57, 0.0  ;;  %v917_v23 = vmul.f32 0.01, %v710_v57  ;;  %2708 = vmatprep.subr.bf16.mxu0 %v3727_v34  ;;  %v979_v29 = vsel %vm851_vm11, %v706_v53, %v915_v1 }
 0x1f5   :  { %v980_v27 = vsel %vm852_vm12, %v708_v47, %v916_v14  ;;  %v3740_v14 = vld [vmem:[#allocation4 + $0x80] ss:$8 sps:$4 sm:$0xff]  }
 0x1f6   :  { %v713_v28 = vpop.f32.mrb[12].mxu1  ;;  %v981_v30 = vsel %vm853_vm13, %v710_v57, %v917_v23  ;;  %v1038_v31 = vpack.c.bf16 %v980_v27, %v978_v26 }
 0x1f7   :  { %v714_v33 = vadd.f32 %v713_v28, %v4286_v22  ;;  %v715_v35 = vpop.f32.mrb[13].mxu1  ;;  %v1039_v6 = vpack.c.bf16 %v981_v30, %v979_v29  ;;  %2709 = vmatpush1.bf16.msra.mxu0 %v3725_v62 }
 0x1f8   :  { %v716_v36 = vadd.f32 %v715_v35, %v4289_v52  ;;  %v717_v37 = vpop.f32.mrb[14].mxu1  ;;  %2710 = vmatprep.subr.bf16.mxu0 %v3730_v11 }
 0x1f9   :  { %v918_v40 = vmul.f32 0.01, %v714_v33  ;;  %v718_v41 = vadd.f32 %v717_v37, %v4286_v22  ;;  %v719_v42 = vpop.f32.mrb[15].mxu1  ;;  %1524 = vmatprep.mubr.bf16.mxu0 %v1039_v6  ;;  %1717 = vmatprep.mubr.bf16.mxu1 %v1039_v6  ;;  %vm854_vm14 = vcmp.ge.f32.partialorder %v714_v33, 0.0  ;;  %v3748_v6 = vld [vmem:[#allocation4 + $0xa4] ss:$8 sps:$4 sm:$0xff]  }
 0x1fa   :  { %v919_v43 = vmul.f32 0.01, %v716_v36  ;;  %v720_v44 = vadd.f32 %v719_v42, %v4289_v52  ;;  %1525 = vmatmul.mubr.bf16.gmra.mrb[40].mxu0 %v1038_v31  ;;  %1718 = vmatmul.mubr.bf16.gmra.mrb[72].mxu1 %v1038_v31  ;;  %vm855_vm15 = vcmp.ge.f32.partialorder %v716_v36, 0.0 }
 0x1fb   :  { %vm856_vm0 = vcmp.ge.f32.partialorder %v718_v41, 0.0  ;;  %v920_v46 = vmul.f32 0.01, %v718_v41  ;;  %2711 = vmatpush1.bf16.msra.mxu0 %v3728_v8  ;;  %v982_v54 = vsel %vm854_vm14, %v714_v33, %v918_v40  ;;  %v3743_v33 = vld [vmem:[#allocation4 + $0x90] ss:$8 sps:$4 sm:$0xff]  }
 0x1fc   :  { %vm857_vm1 = vcmp.ge.f32.partialorder %v720_v44, 0.0  ;;  %v921_v49 = vmul.f32 0.01, %v720_v44  ;;  %2712 = vmatprep.subr.bf16.mxu0 %v3733_v39  ;;  %v983_v58 = vsel %vm855_vm15, %v716_v36, %v919_v43 }
 0x1fd   :  { %v984_v55 = vsel %vm856_vm0, %v718_v41, %v920_v46 }
 0x1fe   :  { %v723_v56 = vpop.f32.mrb[16].mxu1  ;;  %v985_v60 = vsel %vm857_vm1, %v720_v44, %v921_v49  ;;  %v1040_v61 = vpack.c.bf16 %v984_v55, %v982_v54  ;;  %v3746_v44 = vld [vmem:[#allocation4 + $0xa0] ss:$8 sps:$4 sm:$0xff]   ;;  %v3751_v49 = vld [vmem:[#allocation4 + $0xb4] ss:$8 sps:$4 sm:$0xff]  }
 0x1ff   :  { %v724_v0 = vadd.f32 %v723_v56, %v4286_v22  ;;  %v725_v2 = vpop.f32.mrb[17].mxu1  ;;  %v1041_v3 = vpack.c.bf16 %v985_v60, %v983_v58  ;;  %2713 = vmatpush1.bf16.msra.mxu0 %v3731_v48 }
 0x200   :  { %v726_v19 = vadd.f32 %v725_v2, %v4289_v52  ;;  %v727_v21 = vpop.f32.mrb[18].mxu1  ;;  %2714 = vmatprep.subr.bf16.mxu0 %v3736_v50  ;;  %v3754_v2 = vld [vmem:[#allocation4 + $0xc4] ss:$8 sps:$4 sm:$0xff]  }
 0x201   :  { %v922_v59 = vmul.f32 0.01, %v724_v0  ;;  %v728_v63 = vadd.f32 %v727_v21, %v4286_v22  ;;  %v729_v7 = vpop.f32.mrb[19].mxu1  ;;  %1534 = vmatprep.mubr.bf16.mxu0 %v1041_v3  ;;  %1727 = vmatprep.mubr.bf16.mxu1 %v1041_v3  ;;  %vm858_vm2 = vcmp.ge.f32.partialorder %v724_v0, 0.0 }
 0x202   :  { %v923_v9 = vmul.f32 0.01, %v726_v19  ;;  %v730_v10 = vadd.f32 %v729_v7, %v4289_v52  ;;  %1535 = vmatmul.mubr.bf16.gmra.mrb[44].mxu0 %v1040_v61  ;;  %1728 = vmatmul.mubr.bf16.gmra.mrb[76].mxu1 %v1040_v61  ;;  %vm859_vm3 = vcmp.ge.f32.partialorder %v726_v19, 0.0  ;;  %v3749_v61 = vld [vmem:[#allocation4 + $0xb0] ss:$8 sps:$4 sm:$0xff]  }
 0x203   :  { %vm860_vm4 = vcmp.ge.f32.partialorder %v728_v63, 0.0  ;;  %v924_v13 = vmul.f32 0.01, %v728_v63  ;;  %2715 = vmatpush1.bf16.msra.mxu0 %v3734_v4  ;;  %v986_v34 = vsel %vm858_vm2, %v724_v0, %v922_v59 }
 0x204   :  { %vm861_vm5 = vcmp.ge.f32.partialorder %v730_v10, 0.0  ;;  %v925_v53 = vmul.f32 0.01, %v730_v10  ;;  %2716 = vmatprep.subr.bf16.mxu0 %v3739_v25  ;;  %v987_v47 = vsel %vm859_vm3, %v726_v19, %v923_v9 }
 0x205   :  { %v988_v38 = vsel %vm860_vm4, %v728_v63, %v924_v13 }
 0x206   :  { %v733_v45 = vpop.f32.mrb[20].mxu1  ;;  %v989_v51 = vsel %vm861_vm5, %v730_v10, %v925_v53  ;;  %v1042_v62 = vpack.c.bf16 %v988_v38, %v986_v34  ;;  %v3752_v10 = vld [vmem:[#allocation4 + $0xc0] ss:$8 sps:$4 sm:$0xff]   ;;  %v3760_v53 = vld [vmem:[#allocation4 + $0xd4] ss:$8 sps:$4 sm:$0xff]  }
 0x207   :  { %v734_v1 = vadd.f32 %v733_v45, %v4286_v22  ;;  %v735_v57 = vpop.f32.mrb[21].mxu1  ;;  %v1043_v11 = vpack.c.bf16 %v989_v51, %v987_v47  ;;  %2717 = vmatpush1.bf16.msra.mxu0 %v3737_v15 }
 0x208   :  { %v736_v18 = vadd.f32 %v735_v57, %v4289_v52  ;;  %v737_v23 = vpop.f32.mrb[22].mxu1  ;;  %2718 = vmatprep.subr.bf16.mxu0 %v3742_v32  ;;  %v3766_v57 = vld [vmem:[#allocation4 + $0xe4] ss:$8 sps:$4 sm:$0xff]  }
 0x209   :  { %v926_v26 = vmul.f32 0.01, %v734_v1  ;;  %v738_v27 = vadd.f32 %v737_v23, %v4286_v22  ;;  %v739_v28 = vpop.f32.mrb[23].mxu1  ;;  %1544 = vmatprep.mubr.bf16.mxu0 %v1043_v11  ;;  %1737 = vmatprep.mubr.bf16.mxu1 %v1043_v11  ;;  %vm862_vm6 = vcmp.ge.f32.partialorder %v734_v1, 0.0 }
 0x20a   :  { %v927_v29 = vmul.f32 0.01, %v736_v18  ;;  %v740_v30 = vadd.f32 %v739_v28, %v4289_v52  ;;  %1545 = vmatmul.mubr.bf16.gmra.mrb[48].mxu0 %v1042_v62  ;;  %1738 = vmatmul.mubr.bf16.gmra.mrb[80].mxu1 %v1042_v62  ;;  %vm863_vm7 = vcmp.ge.f32.partialorder %v736_v18, 0.0  ;;  %v3758_v62 = vld [vmem:[#allocation4 + $0xd0] ss:$8 sps:$4 sm:$0xff]  }
 0x20b   :  { %vm864_vm8 = vcmp.ge.f32.partialorder %v738_v27, 0.0  ;;  %v928_v31 = vmul.f32 0.01, %v738_v27  ;;  %2719 = vmatpush1.bf16.msra.mxu0 %v3740_v14  ;;  %v990_v8 = vsel %vm862_vm6, %v734_v1, %v926_v26 }
 0x20c   :  { %vm865_vm9 = vcmp.ge.f32.partialorder %v740_v30, 0.0  ;;  %v929_v35 = vmul.f32 0.01, %v740_v30  ;;  %2720 = vmatprep.subr.bf16.mxu0 %v3745_v24  ;;  %v991_v37 = vsel %vm863_vm7, %v736_v18, %v927_v29 }
 0x20d   :  { %v992_v12 = vsel %vm864_vm8, %v738_v27, %v928_v31 }
 0x20e   :  { %v743_v36 = vpop.f32.mrb[24].mxu1  ;;  %v993_v39 = vsel %vm865_vm9, %v740_v30, %v929_v35  ;;  %v1044_v40 = vpack.c.bf16 %v992_v12, %v990_v8  ;;  %v3764_v30 = vld [vmem:[#allocation4 + $0xe0] ss:$8 sps:$4 sm:$0xff]  }
 0x20f   :  { %v744_v41 = vadd.f32 %v743_v36, %v4286_v22  ;;  %v745_v42 = vpop.f32.mrb[25].mxu1  ;;  %v1045_v43 = vpack.c.bf16 %v993_v39, %v991_v37  ;;  %2721 = vmatpush1.bf16.msra.mxu0 %v3743_v33 }
 0x210   :  { %v746_v46 = vadd.f32 %v745_v42, %v4289_v52  ;;  %v747_v48 = vpop.f32.mrb[26].mxu1  ;;  %2722 = vmatprep.subr.bf16.mxu0 %v3748_v6 }
 0x211   :  { %v930_v50 = vmul.f32 0.01, %v744_v41  ;;  %v748_v54 = vadd.f32 %v747_v48, %v4286_v22  ;;  %v749_v55 = vpop.f32.mrb[27].mxu1  ;;  %1554 = vmatprep.mubr.bf16.mxu0 %v1045_v43  ;;  %1747 = vmatprep.mubr.bf16.mxu1 %v1045_v43  ;;  %vm866_vm10 = vcmp.ge.f32.partialorder %v744_v41, 0.0 }
 0x212   :  { %v931_v56 = vmul.f32 0.01, %v746_v46  ;;  %v750_v58 = vadd.f32 %v749_v55, %v4289_v52  ;;  %1555 = vmatmul.mubr.bf16.gmra.mrb[52].mxu0 %v1044_v40  ;;  %1748 = vmatmul.mubr.bf16.gmra.mrb[84].mxu1 %v1044_v40  ;;  %vm867_vm11 = vcmp.ge.f32.partialorder %v746_v46, 0.0 }
 0x213   :  { %vm868_vm12 = vcmp.ge.f32.partialorder %v748_v54, 0.0  ;;  %v932_v60 = vmul.f32 0.01, %v748_v54  ;;  %2723 = vmatpush1.bf16.msra.mxu0 %v3746_v44  ;;  %v994_v3 = vsel %vm866_vm10, %v744_v41, %v930_v50 }
 0x214   :  { %vm869_vm13 = vcmp.ge.f32.partialorder %v750_v58, 0.0  ;;  %v933_v0 = vmul.f32 0.01, %v750_v58  ;;  %2724 = vmatprep.subr.bf16.mxu0 %v3751_v49  ;;  %v995_v21 = vsel %vm867_vm11, %v746_v46, %v931_v56 }
 0x215   :  { %v996_v4 = vsel %vm868_vm12, %v748_v54, %v932_v60 }
 0x216   :  { %v753_v19 = vpop.f32.mrb[28].mxu1  ;;  %v997_v25 = vsel %vm869_vm13, %v750_v58, %v933_v0  ;;  %v1046_v59 = vpack.c.bf16 %v996_v4, %v994_v3 }
 0x217   :  { %v754_v63 = vadd.f32 %v753_v19, %v4286_v22  ;;  %v755_v7 = vpop.f32.mrb[29].mxu1  ;;  %v1047_v9 = vpack.c.bf16 %v997_v25, %v995_v21  ;;  %2725 = vmatpush1.bf16.msra.mxu0 %v3749_v61 }
 0x218   :  { %v756_v13 = vadd.f32 %v755_v7, %v4289_v52  ;;  %v757_v15 = vpop.f32.mrb[30].mxu1  ;;  %2726 = vmatprep.subr.bf16.mxu0 %v3754_v2 }
 0x219   :  { %v934_v32 = vmul.f32 0.01, %v754_v63  ;;  %v758_v34 = vadd.f32 %v757_v15, %v4286_v22  ;;  %v759_v38 = vpop.f32.mrb[31].mxu1  ;;  %1564 = vmatprep.mubr.bf16.mxu0 %v1047_v9  ;;  %1757 = vmatprep.mubr.bf16.mxu1 %v1047_v9  ;;  %vm870_vm14 = vcmp.ge.f32.partialorder %v754_v63, 0.0 }
 0x21a   :  { %v935_v45 = vmul.f32 0.01, %v756_v13  ;;  %v760_v47 = vadd.f32 %v759_v38, %v4289_v52  ;;  %1565 = vmatmul.mubr.bf16.gmra.mrb[56].mxu0 %v1046_v59  ;;  %1758 = vmatmul.mubr.bf16.gmra.mrb[88].mxu1 %v1046_v59  ;;  %vm871_vm15 = vcmp.ge.f32.partialorder %v756_v13, 0.0 }
 0x21b   :  { %vm872_vm0 = vcmp.ge.f32.partialorder %v758_v34, 0.0  ;;  %v936_v51 = vmul.f32 0.01, %v758_v34  ;;  %2727 = vmatpush1.bf16.msra.mxu0 %v3752_v10  ;;  %v998_v11 = vsel %vm870_vm14, %v754_v63, %v934_v32 }
 0x21c   :  { %vm873_vm1 = vcmp.ge.f32.partialorder %v760_v47, 0.0  ;;  %v937_v1 = vmul.f32 0.01, %v760_v47  ;;  %2728 = vmatprep.subr.bf16.mxu0 %v3760_v53  ;;  %v999_v23 = vsel %vm871_vm15, %v756_v13, %v935_v45 }
 0x21d   :  { %v1000_v14 = vsel %vm872_vm0, %v758_v34, %v936_v51 }
 0x21e   :  { %v763_v18 = vpop.f32.mrb[32].mxu1  ;;  %v1001_v24 = vsel %vm873_vm1, %v760_v47, %v937_v1  ;;  %v1048_v26 = vpack.c.bf16 %v1000_v14, %v998_v11 }
 0x21f   :  { %v764_v27 = vadd.f32 %v763_v18, %v4286_v22  ;;  %v765_v28 = vpop.f32.mrb[33].mxu1  ;;  %v1049_v29 = vpack.c.bf16 %v1001_v24, %v999_v23  ;;  %2729 = vmatpush1.bf16.msra.mxu0 %v3758_v62 }
 0x220   :  { %v766_v31 = vadd.f32 %v765_v28, %v4289_v52  ;;  %v767_v33 = vpop.f32.mrb[34].mxu1  ;;  %2730 = vmatprep.subr.bf16.mxu0 %v3766_v57 }
 0x221   :  { %v938_v35 = vmul.f32 0.01, %v764_v27  ;;  %v768_v6 = vadd.f32 %v767_v33, %v4286_v22  ;;  %v769_v8 = vpop.f32.mrb[35].mxu1  ;;  %1574 = vmatprep.mubr.bf16.mxu0 %v1049_v29  ;;  %1767 = vmatprep.mubr.bf16.mxu1 %v1049_v29  ;;  %vm874_vm2 = vcmp.ge.f32.partialorder %v764_v27, 0.0 }
 0x222   :  { %v939_v12 = vmul.f32 0.01, %v766_v31  ;;  %v770_v36 = vadd.f32 %v769_v8, %v4289_v52  ;;  %1575 = vmatmul.mubr.bf16.gmra.mrb[60].mxu0 %v1048_v26  ;;  %1768 = vmatmul.mubr.bf16.gmra.mrb[92].mxu1 %v1048_v26  ;;  %vm875_vm3 = vcmp.ge.f32.partialorder %v766_v31, 0.0 }
 0x223   :  { %vm876_vm4 = vcmp.ge.f32.partialorder %v768_v6, 0.0  ;;  %v940_v37 = vmul.f32 0.01, %v768_v6  ;;  %2731 = vmatpush1.bf16.msra.mxu0 %v3764_v30  ;;  %v1002_v40 = vsel %vm874_vm2, %v764_v27, %v938_v35 }
 0x224   :  { %vm877_vm5 = vcmp.ge.f32.partialorder %v770_v36, 0.0  ;;  %v941_v39 = vmul.f32 0.01, %v770_v36  ;;  %v1003_v43 = vsel %vm875_vm3, %v766_v31, %v939_v12 }
 0x225   :  { %v1004_v41 = vsel %vm876_vm4, %v768_v6, %v940_v37 }
 0x226   :  { %v773_v42 = vpop.f32.mrb[36].mxu1  ;;  %v1005_v44 = vsel %vm877_vm5, %v770_v36, %v941_v39  ;;  %v1050_v46 = vpack.c.bf16 %v1004_v41, %v1002_v40 }
 0x227   :  { %v774_v48 = vadd.f32 %v773_v42, %v4286_v22  ;;  %v775_v49 = vpop.f32.mrb[37].mxu1  ;;  %v1051_v50 = vpack.c.bf16 %v1005_v44, %v1003_v43 }
 0x228   :  { %v776_v54 = vadd.f32 %v775_v49, %v4289_v52  ;;  %v777_v55 = vpop.f32.mrb[38].mxu1 }
 0x229   :  { %v942_v56 = vmul.f32 0.01, %v774_v48  ;;  %v778_v58 = vadd.f32 %v777_v55, %v4286_v22  ;;  %v779_v60 = vpop.f32.mrb[39].mxu1  ;;  %1584 = vmatprep.mubr.bf16.mxu0 %v1051_v50  ;;  %1777 = vmatprep.mubr.bf16.mxu1 %v1051_v50  ;;  %vm878_vm6 = vcmp.ge.f32.partialorder %v774_v48, 0.0 }
 0x22a   :  { %v943_v61 = vmul.f32 0.01, %v776_v54  ;;  %v780_v0 = vadd.f32 %v779_v60, %v4289_v52  ;;  %1585 = vmatmul.mubr.bf16.gmra.mrb[64].mxu0 %v1050_v46  ;;  %1778 = vmatmul.mubr.bf16.gmra.mrb[96].mxu1 %v1050_v46  ;;  %vm879_vm7 = vcmp.ge.f32.partialorder %v776_v54, 0.0 }
 0x22b   :  { %vm880_vm8 = vcmp.ge.f32.partialorder %v778_v58, 0.0  ;;  %v944_v2 = vmul.f32 0.01, %v778_v58  ;;  %v1006_v4 = vsel %vm878_vm6, %v774_v48, %v942_v56 }
 0x22c   :  { %vm881_vm9 = vcmp.ge.f32.partialorder %v780_v0, 0.0  ;;  %v945_v3 = vmul.f32 0.01, %v780_v0  ;;  %v1007_v25 = vsel %vm879_vm7, %v776_v54, %v943_v61 }
 0x22d   :  { %v1008_v19 = vsel %vm880_vm8, %v778_v58, %v944_v2  ;;  %v3772_v2 = vld [vmem:[#allocation4 + $0xf4] ss:$8 sps:$4 sm:$0xff]  }
 0x22e   :  { %v783_v21 = vpop.f32.mrb[40].mxu1  ;;  %v1009_v59 = vsel %vm881_vm9, %v780_v0, %v945_v3  ;;  %v1052_v63 = vpack.c.bf16 %v1008_v19, %v1006_v4  ;;  %v4347_v3 = vld [vmem:[#allocation4 + $0x134] ss:$8 sps:$4 sm:$0xff]   ;;  %2732 = vmatprep.subr.bf16.mxu0 %v3772_v2  ;;  %v4385_v2 = vld [vmem:[#allocation4 + $0x170] ss:$8 sps:$4 sm:$0xff]  }
 0x22f   :  { %v784_v7 = vadd.f32 %v783_v21, %v4286_v22  ;;  %v785_v9 = vpop.f32.mrb[41].mxu1  ;;  %v1053_v10 = vpack.c.bf16 %v1009_v59, %v1007_v25  ;;  %v3770_v59 = vld [vmem:[#allocation4 + $0xf0] ss:$8 sps:$4 sm:$0xff]   ;;  %3432 = vmatprep.subr.bf16.mxu1 %v4347_v3 }
 0x230   :  { %v786_v13 = vadd.f32 %v785_v9, %v4289_v52  ;;  %v787_v15 = vpop.f32.mrb[42].mxu1  ;;  %2733 = vmatpush1.bf16.msra.mxu0 %v3770_v59 }
 0x231   :  { %v946_v53 = vmul.f32 0.01, %v784_v7  ;;  %v788_v32 = vadd.f32 %v787_v15, %v4286_v22  ;;  %v789_v34 = vpop.f32.mrb[43].mxu1  ;;  %1594 = vmatprep.mubr.bf16.mxu0 %v1053_v10  ;;  %1787 = vmatprep.mubr.bf16.mxu1 %v1053_v10  ;;  %vm882_vm10 = vcmp.ge.f32.partialorder %v784_v7, 0.0 }
 0x232   :  { %v947_v38 = vmul.f32 0.01, %v786_v13  ;;  %v790_v45 = vadd.f32 %v789_v34, %v4289_v52  ;;  %1595 = vmatmul.mubr.bf16.gmra.mrb[68].mxu0 %v1052_v63  ;;  %1788 = vmatmul.mubr.bf16.gmra.mrb[100].mxu1 %v1052_v63  ;;  %vm883_vm11 = vcmp.ge.f32.partialorder %v786_v13, 0.0  ;;  %v4349_v63 = vld [vmem:[#allocation4 + $0x130] ss:$8 sps:$4 sm:$0xff]  }
 0x233   :  { %vm884_vm12 = vcmp.ge.f32.partialorder %v788_v32, 0.0  ;;  %v948_v47 = vmul.f32 0.01, %v788_v32  ;;  %v1010_v62 = vsel %vm882_vm10, %v784_v7, %v946_v53  ;;  %3448 = vmatpush1.bf16.msra.mxu1 %v4349_v63  ;;  %2895 = vmatprep.subr.bf16.mxu0 %v4299_v5 }
 0x234   :  { %vm885_vm13 = vcmp.ge.f32.partialorder %v790_v45, 0.0  ;;  %v949_v51 = vmul.f32 0.01, %v790_v45  ;;  %v1011_v11 = vsel %vm883_vm11, %v786_v13, %v947_v38 }
 0x235   :  { %v1012_v1 = vsel %vm884_vm12, %v788_v32, %v948_v47 }
 0x236   :  { %v793_v57 = vpop.f32.mrb[44].mxu1  ;;  %v1013_v14 = vsel %vm885_vm13, %v790_v45, %v949_v51  ;;  %v1054_v18 = vpack.c.bf16 %v1012_v1, %v1010_v62  ;;  %v4358_v62 = vld [vmem:[#allocation4 + $0x144] ss:$8 sps:$4 sm:$0xff]  }
 0x237   :  { %v794_v23 = vadd.f32 %v793_v57, %v4286_v22  ;;  %v795_v24 = vpop.f32.mrb[45].mxu1  ;;  %v1055_v26 = vpack.c.bf16 %v1013_v14, %v1011_v11  ;;  %v4360_v11 = vld [vmem:[#allocation4 + $0x140] ss:$8 sps:$4 sm:$0xff]   ;;  %3433 = vmatprep.subr.bf16.mxu1 %v4358_v62 }
 0x238   :  { %v796_v27 = vadd.f32 %v795_v24, %v4289_v52  ;;  %v797_v28 = vpop.f32.mrb[46].mxu1  ;;  %3449 = vmatpush1.bf16.msra.mxu1 %v4360_v11 }
 0x239   :  { %v950_v29 = vmul.f32 0.01, %v794_v23  ;;  %v798_v30 = vadd.f32 %v797_v28, %v4286_v22  ;;  %v799_v31 = vpop.f32.mrb[47].mxu1  ;;  %1604 = vmatprep.mubr.bf16.mxu0 %v1055_v26  ;;  %1797 = vmatprep.mubr.bf16.mxu1 %v1055_v26  ;;  %vm886_vm14 = vcmp.ge.f32.partialorder %v794_v23, 0.0 }
 0x23a   :  { %v951_v33 = vmul.f32 0.01, %v796_v27  ;;  %v800_v35 = vadd.f32 %v799_v31, %v4289_v52  ;;  %1605 = vmatmul.mubr.bf16.gmra.mrb[72].mxu0 %v1054_v18  ;;  %1798 = vmatmul.mubr.bf16.gmra.mrb[104].mxu1 %v1054_v18  ;;  %vm887_vm15 = vcmp.ge.f32.partialorder %v796_v27, 0.0 }
 0x23b   :  { %vm888_vm0 = vcmp.ge.f32.partialorder %v798_v30, 0.0  ;;  %v952_v6 = vmul.f32 0.01, %v798_v30  ;;  %v1014_v12 = vsel %vm886_vm14, %v794_v23, %v950_v29 }
 0x23c   :  { %vm889_vm1 = vcmp.ge.f32.partialorder %v800_v35, 0.0  ;;  %v953_v8 = vmul.f32 0.01, %v800_v35  ;;  %v1015_v39 = vsel %vm887_vm15, %v796_v27, %v951_v33 }
 0x23d   :  { %v1016_v36 = vsel %vm888_vm0, %v798_v30, %v952_v6  ;;  %v4366_v30 = vld [vmem:[#allocation4 + $0x154] ss:$8 sps:$4 sm:$0xff]   ;;  %v4369_v6 = vld [vmem:[#allocation4 + $0x150] ss:$8 sps:$4 sm:$0xff]  }
 0x23e   :  { %v803_v37 = vpop.f32.mrb[48].mxu1  ;;  %v1017_v40 = vsel %vm889_vm1, %v800_v35, %v953_v8  ;;  %v1056_v41 = vpack.c.bf16 %v1016_v36, %v1014_v12  ;;  %3434 = vmatprep.subr.bf16.mxu1 %v4366_v30 }
 0x23f   :  { %v804_v42 = vadd.f32 %v803_v37, %v4286_v22  ;;  %v805_v43 = vpop.f32.mrb[49].mxu1  ;;  %v1057_v44 = vpack.c.bf16 %v1017_v40, %v1015_v39  ;;  %3450 = vmatpush1.bf16.msra.mxu1 %v4369_v6  ;;  %v4374_v39 = vld [vmem:[#allocation4 + $0x164] ss:$8 sps:$4 sm:$0xff]  }
 0x240   :  { %v806_v46 = vadd.f32 %v805_v43, %v4289_v52  ;;  %v807_v48 = vpop.f32.mrb[50].mxu1  ;;  %3435 = vmatprep.subr.bf16.mxu1 %v4374_v39 }
 0x241   :  { %v954_v49 = vmul.f32 0.01, %v804_v42  ;;  %v808_v50 = vadd.f32 %v807_v48, %v4286_v22  ;;  %v809_v54 = vpop.f32.mrb[51].mxu1  ;;  %1614 = vmatprep.mubr.bf16.mxu0 %v1057_v44  ;;  %1807 = vmatprep.mubr.bf16.mxu1 %v1057_v44  ;;  %vm890_vm2 = vcmp.ge.f32.partialorder %v804_v42, 0.0 }
 0x242   :  { %v955_v55 = vmul.f32 0.01, %v806_v46  ;;  %v810_v56 = vadd.f32 %v809_v54, %v4289_v52  ;;  %1615 = vmatmul.mubr.bf16.gmra.mrb[76].mxu0 %v1056_v41  ;;  %1808 = vmatmul.mubr.bf16.gmra.mrb[108].mxu1 %v1056_v41  ;;  %vm891_vm3 = vcmp.ge.f32.partialorder %v806_v46, 0.0 }
 0x243   :  { %vm892_vm4 = vcmp.ge.f32.partialorder %v808_v50, 0.0  ;;  %v956_v58 = vmul.f32 0.01, %v808_v50  ;;  %v1018_v61 = vsel %vm890_vm2, %v804_v42, %v954_v49  ;;  %v4376_v42 = vld [vmem:[#allocation4 + $0x160] ss:$8 sps:$4 sm:$0xff]  }
 0x244   :  { %vm893_vm5 = vcmp.ge.f32.partialorder %v810_v56, 0.0  ;;  %v957_v60 = vmul.f32 0.01, %v810_v56  ;;  %v1019_v19 = vsel %vm891_vm3, %v806_v46, %v955_v55  ;;  %3451 = vmatpush1.bf16.msra.mxu1 %v4376_v42 }
 0x245   :  { %v1020_v0 = vsel %vm892_vm4, %v808_v50, %v956_v58  ;;  %v4382_v58 = vld [vmem:[#allocation4 + $0x174] ss:$8 sps:$4 sm:$0xff]  }
 0x246   :  { %v813_v4 = vpop.f32.mrb[52].mxu1  ;;  %v1021_v21 = vsel %vm893_vm5, %v810_v56, %v957_v60  ;;  %v1058_v25 = vpack.c.bf16 %v1020_v0, %v1018_v61  ;;  %3436 = vmatprep.subr.bf16.mxu1 %v4382_v58 }
 0x247   :  { %v814_v7 = vadd.f32 %v813_v4, %v4286_v22  ;;  %v815_v9 = vpop.f32.mrb[53].mxu1  ;;  %v1059_v10 = vpack.c.bf16 %v1021_v21, %v1019_v19 }
 0x248   :  { %v816_v13 = vadd.f32 %v815_v9, %v4289_v52  ;;  %v817_v15 = vpop.f32.mrb[54].mxu1  ;;  %3452 = vmatpush1.bf16.msra.mxu1 %v4385_v2 }
 0x249   :  { %v958_v53 = vmul.f32 0.01, %v814_v7  ;;  %v818_v32 = vadd.f32 %v817_v15, %v4286_v22  ;;  %v819_v34 = vpop.f32.mrb[55].mxu1  ;;  %1624 = vmatprep.mubr.bf16.mxu0 %v1059_v10  ;;  %1817 = vmatprep.mubr.bf16.mxu1 %v1059_v10  ;;  %vm894_vm6 = vcmp.ge.f32.partialorder %v814_v7, 0.0  ;;  %v4392_v15 = vld [vmem:[#allocation4 + $0x180] ss:$8 sps:$4 sm:$0xff]  }
 0x24a   :  { %v959_v38 = vmul.f32 0.01, %v816_v13  ;;  %v820_v45 = vadd.f32 %v819_v34, %v4289_v52  ;;  %1625 = vmatmul.mubr.bf16.gmra.mrb[80].mxu0 %v1058_v25  ;;  %1818 = vmatmul.mubr.bf16.gmra.mrb[112].mxu1 %v1058_v25  ;;  %vm895_vm7 = vcmp.ge.f32.partialorder %v816_v13, 0.0  ;;  %v4402_v34 = vld [vmem:[#allocation4 + $0x1a4] ss:$8 sps:$4 sm:$0xff]  }
 0x24b   :  { %vm896_vm8 = vcmp.ge.f32.partialorder %v818_v32, 0.0  ;;  %v960_v47 = vmul.f32 0.01, %v818_v32  ;;  %v1022_v1 = vsel %vm894_vm6, %v814_v7, %v958_v53  ;;  %v4390_v7 = vld [vmem:[#allocation4 + $0x184] ss:$8 sps:$4 sm:$0xff]  }
 0x24c   :  { %vm897_vm9 = vcmp.ge.f32.partialorder %v820_v45, 0.0  ;;  %v961_v51 = vmul.f32 0.01, %v820_v45  ;;  %v1023_v18 = vsel %vm895_vm7, %v816_v13, %v959_v38  ;;  %3437 = vmatprep.subr.bf16.mxu1 %v4390_v7  ;;  %v4396_v53 = vld [vmem:[#allocation4 + $0x194] ss:$8 sps:$4 sm:$0xff]  }
 0x24d   :  { %v1024_v57 = vsel %vm896_vm8, %v818_v32, %v960_v47  ;;  %3453 = vmatpush1.bf16.msra.mxu1 %v4392_v15  ;;  %v4398_v32 = vld [vmem:[#allocation4 + $0x190] ss:$8 sps:$4 sm:$0xff]   ;;  %v4404_v38 = vld [vmem:[#allocation4 + $0x1a0] ss:$8 sps:$4 sm:$0xff]  }
 0x24e   :  { %v823_v14 = vpop.f32.mrb[56].mxu1  ;;  %v1025_v23 = vsel %vm897_vm9, %v820_v45, %v961_v51  ;;  %v1060_v24 = vpack.c.bf16 %v1024_v57, %v1022_v1  ;;  %3438 = vmatprep.subr.bf16.mxu1 %v4396_v53  ;;  %v4408_v45 = vld [vmem:[#allocation4 + $0x1b4] ss:$8 sps:$4 sm:$0xff]   ;;  %v4410_v47 = vld [vmem:[#allocation4 + $0x1b0] ss:$8 sps:$4 sm:$0xff]  }
 0x24f   :  { %v824_v26 = vadd.f32 %v823_v14, %v4286_v22  ;;  %v825_v27 = vpop.f32.mrb[57].mxu1  ;;  %v1061_v28 = vpack.c.bf16 %v1025_v23, %v1023_v18  ;;  %v4414_v51 = vld [vmem:[#allocation4 + $0x1c4] ss:$8 sps:$4 sm:$0xff]   ;;  %v4416_v1 = vld [vmem:[#allocation4 + $0x1c0] ss:$8 sps:$4 sm:$0xff]  }
 0x250   :  { %v826_v5 = vadd.f32 %v825_v27, %v4289_v52  ;;  %v827_v29 = vpop.f32.mrb[58].mxu1  ;;  %v4420_v57 = vld [vmem:[#allocation4 + $0x1d4] ss:$8 sps:$4 sm:$0xff]   ;;  %v4422_v14 = vld [vmem:[#allocation4 + $0x1d0] ss:$8 sps:$4 sm:$0xff]   ;;  %v1142_v27 = vsub.s32 2, %v4274_v16 }
 0x251   :  { %v962_v31 = vmul.f32 0.01, %v824_v26  ;;  %v828_v33 = vadd.f32 %v827_v29, %v4286_v22  ;;  %v829_v35 = vpop.f32.mrb[59].mxu1  ;;  %1634 = vmatprep.mubr.bf16.mxu0 %v1061_v28  ;;  %1827 = vmatprep.mubr.bf16.mxu1 %v1061_v28  ;;  %vm898_vm10 = vcmp.ge.f32.partialorder %v824_v26, 0.0  ;;  %v4426_v18 = vld [vmem:[#allocation4 + $0x1e4] ss:$8 sps:$4 sm:$0xff]  }
 0x252   :  { %v963_v8 = vmul.f32 0.01, %v826_v5  ;;  %v830_v12 = vadd.f32 %v829_v35, %v4289_v52  ;;  %1635 = vmatmul.mubr.bf16.gmra.mrb[84].mxu0 %v1060_v24  ;;  %1828 = vmatmul.mubr.bf16.gmra.mrb[116].mxu1 %v1060_v24  ;;  %vm899_vm11 = vcmp.ge.f32.partialorder %v826_v5, 0.0  ;;  %v4428_v23 = vld [vmem:[#allocation4 + $0x1e0] ss:$8 sps:$4 sm:$0xff]  }
 0x253   :  { %vm900_vm12 = vcmp.ge.f32.partialorder %v828_v33, 0.0  ;;  %v964_v36 = vmul.f32 0.01, %v828_v33  ;;  %v1026_v40 = vsel %vm898_vm10, %v824_v26, %v962_v31  ;;  %3454 = vmatpush1.bf16.msra.mxu1 %v4398_v32  ;;  %v4432_v24 = vld [vmem:[#allocation4 + $0x1f4] ss:$8 sps:$4 sm:$0xff]  }
 0x254   :  { %vm901_vm13 = vcmp.ge.f32.partialorder %v830_v12, 0.0  ;;  %v965_v37 = vmul.f32 0.01, %v830_v12  ;;  %v1027_v44 = vsel %vm899_vm11, %v826_v5, %v963_v8  ;;  %3439 = vmatprep.subr.bf16.mxu1 %v4402_v34  ;;  %v4434_v26 = vld [vmem:[#allocation4 + $0x1f0] ss:$8 sps:$4 sm:$0xff]   ;;  %v1146_v5 = vsub.s32 3, %v4274_v16 }
 0x255   :  { %v1028_v41 = vsel %vm900_vm12, %v828_v33, %v964_v36  ;;  %v1130_v28 = vld [vmem:[%s5490_s6] sm:$0xf] }
 0x256   :  { %v833_v43 = vpop.f32.mrb[60].mxu1  ;;  %v1029_v46 = vsel %vm901_vm13, %v830_v12, %v965_v37  ;;  %v1062_v48 = vpack.c.bf16 %v1028_v41, %v1026_v40  ;;  %v4444_v29 = vrot.slane %v1130_v28, %v4277_v17  ;;  %v4446_v31 = vrot.slane %v1130_v28, %v1142_v27 }
 0x257   :  { %v834_v49 = vadd.f32 %v833_v43, %v4286_v22  ;;  %v835_v50 = vpop.f32.mrb[61].mxu1  ;;  %v1063_v54 = vpack.c.bf16 %v1029_v46, %v1027_v44  ;;  %3455 = vmatpush1.bf16.msra.mxu1 %v4404_v38  ;;  %v4449_v33 = vrot.slane %v1130_v28, %v4283_v20  ;;  %v4451_v35 = vrot.slane %v1130_v28, %v1146_v5 }
 0x258   :  { %v836_v55 = vadd.f32 %v835_v50, %v4289_v52  ;;  %v837_v56 = vpop.f32.mrb[62].mxu1  ;;  %3440 = vmatprep.subr.bf16.mxu1 %v4408_v45 }
 0x259   :  { %v966_v60 = vmul.f32 0.01, %v834_v49  ;;  %v838_v61 = vadd.f32 %v837_v56, %v4286_v22  ;;  %v839_v0 = vpop.f32.mrb[63].mxu1  ;;  %1644 = vmatprep.mubr.bf16.mxu0 %v1063_v54  ;;  %1837 = vmatprep.mubr.bf16.mxu1 %v1063_v54  ;;  %vm902_vm14 = vcmp.ge.f32.partialorder %v834_v49, 0.0 }
 0x25a   :  { %v967_v4 = vmul.f32 0.01, %v836_v55  ;;  %v840_v19 = vadd.f32 %v839_v0, %v4289_v52  ;;  %1645 = vmatmul.mubr.bf16.gmra.mrb[88].mxu0 %v1062_v48  ;;  %1838 = vmatmul.mubr.bf16.gmra.mrb[120].mxu1 %v1062_v48  ;;  %vm903_vm15 = vcmp.ge.f32.partialorder %v836_v55, 0.0 }
 0x25b   :  { %vm904_vm0 = vcmp.ge.f32.partialorder %v838_v61, 0.0  ;;  %v968_v21 = vmul.f32 0.01, %v838_v61  ;;  %v1030_v22 = vsel %vm902_vm14, %v834_v49, %v966_v60  ;;  %3456 = vmatpush1.bf16.msra.mxu1 %v4410_v47 }
 0x25c   :  { %vm905_vm1 = vcmp.ge.f32.partialorder %v840_v19, 0.0  ;;  %v969_v25 = vmul.f32 0.01, %v840_v19  ;;  %v1031_v9 = vsel %vm903_vm15, %v836_v55, %v967_v4  ;;  %3441 = vmatprep.subr.bf16.mxu1 %v4414_v51 }
 0x25d   :  { %v1032_v59 = vsel %vm904_vm0, %v838_v61, %v968_v21 }
 0x25e   :  { %v1033_v10 = vsel %vm905_vm1, %v840_v19, %v969_v25  ;;  %v1064_v13 = vpack.c.bf16 %v1032_v59, %v1030_v22 }
 0x25f   :  { %v1065_v52 = vpack.c.bf16 %v1033_v10, %v1031_v9  ;;  %3457 = vmatpush1.bf16.msra.mxu1 %v4416_v1 }
 0x260   :  { %3442 = vmatprep.subr.bf16.mxu1 %v4420_v57 }
 0x261   :  { %1654 = vmatprep.mubr.bf16.mxu0 %v1065_v52  ;;  %1847 = vmatprep.mubr.bf16.mxu1 %v1065_v52 }
 0x262   :  { %1655 = vmatmul.mubr.bf16.gmra.mrb[92].mxu0 %v1064_v13  ;;  %1848 = vmatmul.mubr.bf16.gmra.mrb[124].mxu1 %v1064_v13 }
 0x263   :  { %3458 = vmatpush1.bf16.msra.mxu1 %v4422_v14 }
 0x264   :  { %3443 = vmatprep.subr.bf16.mxu1 %v4426_v18 }
 0x267   :  { %3459 = vmatpush1.bf16.msra.mxu1 %v4428_v23 }
 0x268   :  { %3444 = vmatprep.subr.bf16.mxu1 %v4432_v24 }
 0x26b   :  { %3460 = vmatpush1.bf16.msra.mxu1 %v4434_v26 }
 0x2bd   :  { %v1506_v8 = vpop.f32.mrb[32].mxu0  ;;  %v1699_v12 = vpop.f32.mrb[64].mxu1 }
 0x2be   :  { %v1507_v36 = vadd.f32 %v1506_v8, %v4444_v29  ;;  %v1700_v37 = vadd.f32 %v1699_v12, %v4446_v31  ;;  %v1508_v40 = vpop.f32.mrb[33].mxu0  ;;  %v1701_v41 = vpop.f32.mrb[65].mxu1 }
 0x2bf   :  { %v1509_v16 = vadd.f32 %v1508_v40, %v4449_v33  ;;  %v1702_v43 = vadd.f32 %v1701_v41, %v4451_v35  ;;  %v1510_v44 = vpop.f32.mrb[34].mxu0  ;;  %v1703_v46 = vpop.f32.mrb[66].mxu1 }
 0x2c0   :  { %vm1858_vm2 = vcmp.ge.f32.partialorder %v1507_v36, 0.0  ;;  %v1986_v48 = vmul.f32 0.01, %v1507_v36  ;;  %vm1860_vm3 = vcmp.ge.f32.partialorder %v1700_v37, 0.0  ;;  %v1988_v49 = vmul.f32 0.01, %v1700_v37 }
 0x2c1   :  { %vm1859_vm4 = vcmp.ge.f32.partialorder %v1509_v16, 0.0  ;;  %v1987_v50 = vmul.f32 0.01, %v1509_v16  ;;  %v1511_v54 = vadd.f32 %v1510_v44, %v4444_v29  ;;  %v1704_v55 = vadd.f32 %v1703_v46, %v4446_v31  ;;  %v1512_v56 = vpop.f32.mrb[35].mxu0  ;;  %v1705_v60 = vpop.f32.mrb[67].mxu1 }
 0x2c2   :  { %vm1861_vm5 = vcmp.ge.f32.partialorder %v1702_v43, 0.0  ;;  %v1989_v61 = vmul.f32 0.01, %v1702_v43  ;;  %v1513_v0 = vadd.f32 %v1512_v56, %v4449_v33  ;;  %v1706_v4 = vadd.f32 %v1705_v60, %v4451_v35 }
 0x2c3   :  { %vm1862_vm6 = vcmp.ge.f32.partialorder %v1511_v54, 0.0  ;;  %v1990_v19 = vmul.f32 0.01, %v1511_v54  ;;  %vm1864_vm7 = vcmp.ge.f32.partialorder %v1704_v55, 0.0  ;;  %v1992_v21 = vmul.f32 0.01, %v1704_v55 }
 0x2c4   :  { %v2114_v25 = vsel %vm1858_vm2, %v1507_v36, %v1986_v48  ;;  %vm1863_vm8 = vcmp.ge.f32.partialorder %v1513_v0, 0.0  ;;  %v1991_v22 = vmul.f32 0.01, %v1513_v0  ;;  %v1993_v59 = vmul.f32 0.01, %v1706_v4 }
 0x2c5   :  { %v4463_v9 = vsel %vm1860_vm3, %v1700_v37, %v1988_v49  ;;  %v2118_v10 = vsel %vm1862_vm6, %v1511_v54, %v1990_v19  ;;  %v4465_v13 = vsel %vm1864_vm7, %v1704_v55, %v1992_v21  ;;  %vm1865_vm9 = vcmp.ge.f32.partialorder %v1706_v4, 0.0  ;;  %v1516_v52 = vpop.f32.mrb[36].mxu0  ;;  %v1709_v27 = vpop.f32.mrb[68].mxu1 }
 0x2c6   :  { %5510 = vst [vmem:[#allocation10_spill] sm:$0xff] %v4463_v9  ;;  %5511 = vst [vmem:[#allocation11_spill] sm:$0xff] %v4465_v13  ;;  %v2242_v28 = vpack.c.bf16 %v2118_v10, %v2114_v25  ;;  %v1517_v8 = vadd.f32 %v1516_v52, %v4444_v29  ;;  %v4471_v12 = vadd.f32 %v1709_v27, %v4446_v31  ;;  %v1518_v36 = vpop.f32.mrb[37].mxu0  ;;  %v1711_v40 = vpop.f32.mrb[69].mxu1 }
 0x2c7   :  { %v1519_v37 = vadd.f32 %v1518_v36, %v4449_v33  ;;  %v1520_v41 = vpop.f32.mrb[38].mxu0  ;;  %v1713_v44 = vpop.f32.mrb[70].mxu1  ;;  %v2119_v46 = vsel %vm1863_vm8, %v1513_v0, %v1991_v22  ;;  %v1712_v48 = vadd.f32 %v1711_v40, %v4451_v35  ;;  %v2115_v49 = vsel %vm1859_vm4, %v1509_v16, %v1987_v50  ;;  %v3812_v36 = vld [vmem:[#allocation4 + $0x100] ss:$8 sps:$4 sm:$0xff]  }
 0x2c8   :  { %v4477_v54 = vsel %vm1865_vm9, %v1706_v4, %v1993_v59  ;;  %vm1866_vm10 = vcmp.ge.f32.partialorder %v1517_v8, 0.0  ;;  %v1994_v55 = vmul.f32 0.01, %v1517_v8  ;;  %v1996_v56 = vmul.f32 0.01, %v4471_v12  ;;  %v1522_v25 = vpop.f32.mrb[39].mxu0 }
 0x2c9   :  { %5512 = vst [vmem:[#allocation12_spill] sm:$0xff] %v4477_v54  ;;  %v4481_v60 = vsel %vm1861_vm5, %v1702_v43, %v1989_v61  ;;  %vm1867_vm11 = vcmp.ge.f32.partialorder %v1519_v37, 0.0  ;;  %v1521_v19 = vadd.f32 %v1520_v41, %v4444_v29  ;;  %v1714_v21 = vadd.f32 %v1713_v44, %v4446_v31  ;;  %v1715_v0 = vpop.f32.mrb[71].mxu1 }
 0x2ca   :  { %5513 = vst [vmem:[#allocation13_spill] sm:$0xff] %v4481_v60  ;;  %v2243_v22 = vpack.c.bf16 %v2119_v46, %v2115_v49  ;;  %v1995_v10 = vmul.f32 0.01, %v1519_v37  ;;  %v1523_v16 = vadd.f32 %v1522_v25, %v4449_v33  ;;  %v1716_v50 = vadd.f32 %v1715_v0, %v4451_v35 }
 0x2cb   :  { %vm1869_vm12 = vcmp.ge.f32.partialorder %v1712_v48, 0.0  ;;  %vm1870_vm13 = vcmp.ge.f32.partialorder %v1521_v19, 0.0  ;;  %v1998_v43 = vmul.f32 0.01, %v1521_v19  ;;  %v2000_v61 = vmul.f32 0.01, %v1714_v21 }
 0x2cc   :  { %2734 = vmatprep.mubr.bf16.mxu0 %v2243_v22  ;;  %vm1871_vm14 = vcmp.ge.f32.partialorder %v1523_v16, 0.0  ;;  %v1999_v59 = vmul.f32 0.01, %v1523_v16  ;;  %vm1873_vm15 = vcmp.ge.f32.partialorder %v1716_v50, 0.0  ;;  %v2001_v52 = vmul.f32 0.01, %v1716_v50 }
 0x2cd   :  { %2735 = vmatmul.mubr.bf16.vlgmr.msra.gmra.mrb[96].mxu0 %v2242_v28  ;;  %v1997_v27 = vmul.f32 0.01, %v1712_v48  ;;  %vm1872_vm0 = vcmp.ge.f32.partialorder %v1714_v21, 0.0  ;;  %v1526_v40 = vpop.f32.mrb[40].mxu0  ;;  %v4489_v41 = vpop.f32.mrb[72].mxu1  ;;  %v2122_v44 = vsel %vm1866_vm10, %v1517_v8, %v1994_v55  ;;  %v2126_v46 = vsel %vm1870_vm13, %v1521_v19, %v1998_v43 }
 0x2ce   :  { %2896 = vmatpush1.bf16.msra.mxu0 %v3812_v36  ;;  %v1527_v49 = vadd.f32 %v1526_v40, %v4444_v29  ;;  %v1528_v25 = vpop.f32.mrb[41].mxu0  ;;  %v1721_v0 = vpop.f32.mrb[73].mxu1  ;;  %v2123_v22 = vsel %vm1867_vm11, %v1519_v37, %v1995_v10  ;;  %v2127_v5 = vsel %vm1871_vm14, %v1523_v16, %v1999_v59  ;;  %v3813_v28 = vld [vmem:[#allocation4 + $0x114] ss:$8 sps:$4 sm:$0xff]   ;;  %v2246_v4 = vpack.c.bf16 %v2126_v46, %v2122_v44  ;;  %v3814_v37 = vld [vmem:[#allocation4 + $0x110] ss:$8 sps:$4 sm:$0xff]  }
 0x2cf   :  { %2897 = vmatprep.subr.bf16.mxu0 %v3813_v28  ;;  %vm1868_vm1 = vcmp.ge.f32.partialorder %v4471_v12, 0.0  ;;  %v1530_v36 = vpop.f32.mrb[42].mxu0  ;;  %v4497_v20 = vpop.f32.mrb[74].mxu1  ;;  %v2247_v17 = vpack.c.bf16 %v2127_v5, %v2123_v22  ;;  %v4500_v8 = vsel %vm1873_vm15, %v1716_v50, %v2001_v52  ;;  %v4503_v55 = vsel %vm1872_vm0, %v1714_v21, %v2000_v61  ;;  %v3815_v5 = vld [vmem:[#allocation4 + $0x124] ss:$8 sps:$4 sm:$0xff]  }
 0x2d0   :  { %5514 = vst [vmem:[#allocation14_spill] sm:$0xff] %v4500_v8  ;;  %5515 = vst [vmem:[#allocation15_spill] sm:$0xff] %v4503_v55  ;;  %v1529_v19 = vadd.f32 %v1528_v25, %v4449_v33  ;;  %v4507_v10 = vsel %vm1869_vm12, %v1712_v48, %v1997_v27  ;;  %v2002_v16 = vmul.f32 0.01, %v1527_v49  ;;  %v1531_v43 = vadd.f32 %v1530_v36, %v4444_v29  ;;  %v1532_v59 = vpop.f32.mrb[43].mxu0  ;;  %v1725_v40 = vpop.f32.mrb[75].mxu1 }
 0x2d1   :  { %2744 = vmatprep.mubr.bf16.mxu0 %v2247_v17  ;;  %5516 = vst [vmem:[#allocation16_spill] sm:$0xff] %v4507_v10  ;;  %v4515_v21 = vsel %vm1868_vm1, %v4471_v12, %v1996_v56  ;;  %vm1874_vm2 = vcmp.ge.f32.partialorder %v1527_v49, 0.0  ;;  %v1533_v17 = vadd.f32 %v1532_v59, %v4449_v33  ;;  %v1726_v48 = vadd.f32 %v1725_v40, %v4451_v35  ;;  %v3816_v56 = vld [vmem:[#allocation4 + $0x120] ss:$8 sps:$4 sm:$0xff]  }
 0x2d2   :  { %2898 = vmatpush1.bf16.msra.mxu0 %v3814_v37  ;;  %5517 = vst [vmem:[#allocation17_spill] sm:$0xff] %v4515_v21  ;;  %v1722_v44 = vadd.f32 %v1721_v0, %v4451_v35  ;;  %vm1878_vm3 = vcmp.ge.f32.partialorder %v1531_v43, 0.0  ;;  %v2006_v46 = vmul.f32 0.01, %v1531_v43  ;;  %v2003_v25 = vmul.f32 0.01, %v1529_v19 }
 0x2d3   :  { %2899 = vmatprep.subr.bf16.mxu0 %v3815_v5  ;;  %vm1879_vm4 = vcmp.ge.f32.partialorder %v1533_v17, 0.0  ;;  %v2007_v12 = vmul.f32 0.01, %v1533_v17  ;;  %vm1875_vm5 = vcmp.ge.f32.partialorder %v1529_v19, 0.0  ;;  %v2130_v37 = vsel %vm1874_vm2, %v1527_v49, %v2002_v16 }
 0x2d4   :  { %v2134_v59 = vsel %vm1878_vm3, %v1531_v43, %v2006_v46  ;;  %v2009_v0 = vmul.f32 0.01, %v1726_v48  ;;  %v2005_v50 = vmul.f32 0.01, %v1722_v44  ;;  %vm1881_vm6 = vcmp.ge.f32.partialorder %v1726_v48, 0.0 }
 0x2d5   :  { %v1536_v61 = vpop.f32.mrb[44].mxu0  ;;  %v4519_v52 = vpop.f32.mrb[76].mxu1  ;;  %2745 = vmatmul.mubr.bf16.gmra.mrb[100].mxu0 %v2246_v4  ;;  %v2135_v4 = vsel %vm1879_vm4, %v1533_v17, %v2007_v12  ;;  %v2250_v27 = vpack.c.bf16 %v2134_v59, %v2130_v37  ;;  %vm1877_vm7 = vcmp.ge.f32.partialorder %v1722_v44, 0.0 }
 0x2d6   :  { %2900 = vmatpush1.bf16.msra.mxu0 %v3816_v56  ;;  %v1537_v22 = vadd.f32 %v1536_v61, %v4444_v29  ;;  %v1538_v28 = vpop.f32.mrb[45].mxu0  ;;  %v4525_v36 = vpop.f32.mrb[77].mxu1  ;;  %v2131_v61 = vsel %vm1875_vm5, %v1529_v19, %v2003_v25  ;;  %v4548_v25 = vsel %vm1877_vm7, %v1722_v44, %v2005_v50  ;;  %v1724_v50 = vadd.f32 %v4497_v20, %v4446_v31 }
 0x2d7   :  { %2901 = vmatprep.subr.bf16.mxu0 %v4347_v3  ;;  %v1540_v40 = vpop.f32.mrb[46].mxu0  ;;  %v4529_v5 = vpop.f32.mrb[78].mxu1  ;;  %v1539_v56 = vadd.f32 %v1538_v28, %v4449_v33  ;;  %v2251_v43 = vpack.c.bf16 %v2135_v4, %v2131_v61  ;;  %v4541_v28 = vsel %vm1881_vm6, %v1726_v48, %v2009_v0  ;;  %5519 = vst [vmem:[#allocation19_spill] sm:$0xff] %v4548_v25 }
 0x2d8   :  { %v2010_v21 = vmul.f32 0.01, %v1537_v22  ;;  %v1541_v49 = vadd.f32 %v1540_v40, %v4444_v29  ;;  %v1542_v16 = vpop.f32.mrb[47].mxu0  ;;  %v4535_v3 = vpop.f32.mrb[79].mxu1  ;;  %vm1882_vm8 = vcmp.ge.f32.partialorder %v1537_v22, 0.0  ;;  %5518 = vst [vmem:[#allocation18_spill] sm:$0xff] %v4541_v28 }
 0x2d9   :  { %v1543_v17 = vadd.f32 %v1542_v16, %v4449_v33  ;;  %2754 = vmatprep.mubr.bf16.mxu0 %v2251_v43  ;;  %vm1883_vm10 = vcmp.ge.f32.partialorder %v1539_v56, 0.0  ;;  %v2008_v20 = vmul.f32 0.01, %v1724_v50  ;;  %vm1880_vm14 = vcmp.ge.f32.partialorder %v1724_v50, 0.0 }
 0x2da   :  { %2902 = vmatpush1.bf16.msra.mxu0 %v4349_v63  ;;  %v4545_v63 = vadd.f32 %v4489_v41, %v4446_v31  ;;  %vm1886_vm9 = vcmp.ge.f32.partialorder %v1541_v49, 0.0  ;;  %v2014_v19 = vmul.f32 0.01, %v1541_v49  ;;  %v2138_v0 = vsel %vm1882_vm8, %v1537_v22, %v2010_v21 }
 0x2db   :  { %2903 = vmatprep.subr.bf16.mxu0 %v4358_v62  ;;  %v2011_v62 = vmul.f32 0.01, %v1539_v56  ;;  %vm1887_vm11 = vcmp.ge.f32.partialorder %v1543_v17, 0.0  ;;  %v2015_v37 = vmul.f32 0.01, %v1543_v17 }
 0x2dc   :  { %v2142_v41 = vsel %vm1886_vm9, %v1541_v49, %v2014_v19  ;;  %v2004_v22 = vmul.f32 0.01, %v4545_v63  ;;  %vm1876_vm1 = vcmp.ge.f32.partialorder %v4545_v63, 0.0 }
 0x2dd   :  { %v1546_v46 = vpop.f32.mrb[48].mxu0  ;;  %v4539_v12 = vpop.f32.mrb[80].mxu1  ;;  %2755 = vmatmul.mubr.bf16.gmra.mrb[104].mxu0 %v2250_v27  ;;  %v2143_v27 = vsel %vm1887_vm11, %v1543_v17, %v2015_v37  ;;  %v2254_v16 = vpack.c.bf16 %v2142_v41, %v2138_v0  ;;  %v2139_v21 = vsel %vm1883_vm10, %v1539_v56, %v2011_v62  ;;  %v4571_v56 = vadd.f32 %v4519_v52, %v4446_v31 }
 0x2de   :  { %v1547_v59 = vadd.f32 %v1546_v46, %v4444_v29  ;;  %v1548_v40 = vpop.f32.mrb[49].mxu0  ;;  %v4551_v48 = vpop.f32.mrb[81].mxu1  ;;  %2904 = vmatpush1.bf16.msra.mxu0 %v4360_v11  ;;  %v2255_v4 = vpack.c.bf16 %v2143_v27, %v2139_v21  ;;  %v4575_v62 = vadd.f32 %v4525_v36, %v4451_v35 }
 0x2df   :  { %v1550_v44 = vpop.f32.mrb[50].mxu0  ;;  %v4559_v61 = vpop.f32.mrb[82].mxu1  ;;  %2905 = vmatprep.subr.bf16.mxu0 %v4366_v30  ;;  %v1549_v43 = vadd.f32 %v1548_v40, %v4449_v33 }
 0x2e0   :  { %v2018_v11 = vmul.f32 0.01, %v1547_v59  ;;  %v1551_v49 = vadd.f32 %v1550_v44, %v4444_v29  ;;  %v1552_v46 = vpop.f32.mrb[51].mxu0  ;;  %v1745_v19 = vpop.f32.mrb[83].mxu1  ;;  %vm1890_vm12 = vcmp.ge.f32.partialorder %v1547_v59, 0.0  ;;  %2764 = vmatprep.mubr.bf16.mxu0 %v2255_v4 }
 0x2e1   :  { %v1553_v17 = vadd.f32 %v1552_v46, %v4449_v33  ;;  %vm1891_vm0 = vcmp.ge.f32.partialorder %v1549_v43, 0.0 }
 0x2e2   :  { %2906 = vmatpush1.bf16.msra.mxu0 %v4369_v6  ;;  %vm1894_vm13 = vcmp.ge.f32.partialorder %v1551_v49, 0.0  ;;  %v2022_v40 = vmul.f32 0.01, %v1551_v49  ;;  %v2019_v6 = vmul.f32 0.01, %v1549_v43  ;;  %v2146_v52 = vsel %vm1890_vm12, %v1547_v59, %v2018_v11 }
 0x2e3   :  { %2907 = vmatprep.subr.bf16.mxu0 %v4374_v39  ;;  %vm1895_vm15 = vcmp.ge.f32.partialorder %v1553_v17, 0.0  ;;  %v2023_v0 = vmul.f32 0.01, %v1553_v17  ;;  %v4592_v59 = vadd.f32 %v4529_v5, %v4446_v31  ;;  %v4599_v11 = vadd.f32 %v4535_v3, %v4451_v35 }
 0x2e4   :  { %v2150_v27 = vsel %vm1894_vm13, %v1551_v49, %v2022_v40  ;;  %v4614_v3 = vsel %vm1876_vm1, %v4545_v63, %v2004_v22  ;;  %v4629_v63 = vadd.f32 %v1745_v19, %v4451_v35 }
 0x2e5   :  { %v1556_v37 = vpop.f32.mrb[52].mxu0  ;;  %v1749_v30 = vpop.f32.mrb[84].mxu1  ;;  %2765 = vmatmul.mubr.bf16.gmra.mrb[108].mxu0 %v2254_v16  ;;  %v2151_v4 = vsel %vm1895_vm15, %v1553_v17, %v2023_v0  ;;  %v2258_v46 = vpack.c.bf16 %v2150_v27, %v2146_v52  ;;  %v4585_v16 = vmul.f32 0.01, %v4571_v56  ;;  %v2147_v17 = vsel %vm1891_vm0, %v1549_v43, %v2019_v6  ;;  %5521 = vst [vmem:[#allocation21_spill] sm:$0xff] %v4614_v3 }
 0x2e6   :  { %v1557_v41 = vadd.f32 %v1556_v37, %v4444_v29  ;;  %v1558_v39 = vpop.f32.mrb[53].mxu0  ;;  %v1751_v44 = vpop.f32.mrb[85].mxu1  ;;  %2908 = vmatpush1.bf16.msra.mxu0 %v4376_v42  ;;  %v4588_v37 = vmul.f32 0.01, %v4575_v62  ;;  %v4595_v42 = vsel %vm1880_vm14, %v1724_v50, %v2008_v20  ;;  %v2259_v50 = vpack.c.bf16 %v2151_v4, %v2147_v17 }
 0x2e7   :  { %v1560_v36 = vpop.f32.mrb[54].mxu0  ;;  %v4581_v21 = vpop.f32.mrb[86].mxu1  ;;  %2909 = vmatprep.subr.bf16.mxu0 %v4382_v58  ;;  %5520 = vst [vmem:[#allocation20_spill] sm:$0xff] %v4595_v42  ;;  %v4603_v58 = vadd.f32 %v4539_v12, %v4446_v31  ;;  %v1559_v49 = vadd.f32 %v1558_v39, %v4449_v33  ;;  %v4618_v12 = vadd.f32 %v4551_v48, %v4451_v35  ;;  %v4638_v19 = vmul.f32 0.01, %v4592_v59 }
 0x2e8   :  { %v2026_v40 = vmul.f32 0.01, %v1557_v41  ;;  %v1561_v0 = vadd.f32 %v1560_v36, %v4444_v29  ;;  %v1562_v5 = vpop.f32.mrb[55].mxu0  ;;  %v4608_v52 = vpop.f32.mrb[87].mxu1  ;;  %vm1898_vm2 = vcmp.ge.f32.partialorder %v1557_v41, 0.0  ;;  %2774 = vmatprep.mubr.bf16.mxu0 %v2259_v50  ;;  %v4632_v22 = vadd.f32 %v1749_v30, %v4446_v31 }
 0x2e9   :  { %v1563_v43 = vadd.f32 %v1562_v5, %v4449_v33  ;;  %v2027_v27 = vmul.f32 0.01, %v1559_v49  ;;  %vm1899_vm5 = vcmp.ge.f32.partialorder %v1559_v49, 0.0  ;;  %v4641_v30 = vmul.f32 0.01, %v4599_v11 }
 0x2ea   :  { %2910 = vmatpush1.bf16.msra.mxu0 %v4385_v2  ;;  %v4626_v2 = vadd.f32 %v4559_v61, %v4446_v31  ;;  %vm1902_vm3 = vcmp.ge.f32.partialorder %v1561_v0, 0.0  ;;  %v2030_v48 = vmul.f32 0.01, %v1561_v0  ;;  %v2154_v61 = vsel %vm1898_vm2, %v1557_v41, %v2026_v40 }
 0x2eb   :  { %2911 = vmatprep.subr.bf16.mxu0 %v4390_v7  ;;  %vm1903_vm4 = vcmp.ge.f32.partialorder %v1563_v43, 0.0  ;;  %v2031_v36 = vmul.f32 0.01, %v1563_v43  ;;  %v4648_v41 = vmul.f32 0.01, %v4618_v12 }
 0x2ec   :  { %v2158_v5 = vsel %vm1902_vm3, %v1561_v0, %v2030_v48  ;;  %v4655_v0 = vmul.f32 0.01, %v4629_v63  ;;  %v4658_v48 = vadd.f32 %v1751_v44, %v4451_v35 }
 0x2ed   :  { %v1566_v20 = vpop.f32.mrb[56].mxu0  ;;  %v1759_v6 = vpop.f32.mrb[88].mxu1  ;;  %2775 = vmatmul.mubr.bf16.gmra.mrb[112].mxu0 %v2258_v46  ;;  %v2159_v3 = vsel %vm1903_vm4, %v1563_v43, %v2031_v36  ;;  %v2262_v46 = vpack.c.bf16 %v2158_v5, %v2154_v61  ;;  %v4663_v36 = vmul.f32 0.01, %v4632_v22 }
 0x2ee   :  { %v1760_v7 = vadd.f32 %v1759_v6, %v4446_v31  ;;  %v1568_v4 = vpop.f32.mrb[57].mxu0  ;;  %v1761_v17 = vpop.f32.mrb[89].mxu1  ;;  %2912 = vmatpush1.bf16.msra.mxu0 %v4392_v15  ;;  %v4645_v6 = vmul.f32 0.01, %v4603_v58  ;;  %v4651_v15 = vmul.f32 0.01, %v4626_v2 }
 0x2ef   :  { %v1570_v50 = vpop.f32.mrb[58].mxu0  ;;  %v1763_v39 = vpop.f32.mrb[90].mxu1  ;;  %2913 = vmatprep.subr.bf16.mxu0 %v4396_v53  ;;  %v1569_v40 = vadd.f32 %v1568_v4, %v4449_v33  ;;  %5524 = vst [vmem:[#allocation24_spill] sm:$0xff] %v4655_v0  ;;  %v1762_v43 = vadd.f32 %v1761_v17, %v4451_v35  ;;  %v2155_v53 = vsel %vm1899_vm5, %v1559_v49, %v2027_v27  ;;  %5525 = vst [vmem:[#allocation25_spill] sm:$0xff] %v4663_v36 }
 0x2f0   :  { %5522 = vst [vmem:[#allocation22_spill] sm:$0xff] %v4645_v6  ;;  %5523 = vst [vmem:[#allocation23_spill] sm:$0xff] %v4651_v15  ;;  %v2036_v61 = vmul.f32 0.01, %v1760_v7  ;;  %v1764_v5 = vadd.f32 %v1763_v39, %v4446_v31  ;;  %v1572_v42 = vpop.f32.mrb[59].mxu0  ;;  %v1765_v25 = vpop.f32.mrb[91].mxu1  ;;  %v2263_v28 = vpack.c.bf16 %v2159_v3, %v2155_v53  ;;  %v1571_v4 = vadd.f32 %v1570_v50, %v4444_v29 }
 0x2f1   :  { %vm1908_vm6 = vcmp.ge.f32.partialorder %v1760_v7, 0.0  ;;  %v1573_v44 = vadd.f32 %v1572_v42, %v4449_v33  ;;  %v1766_v17 = vadd.f32 %v1765_v25, %v4451_v35  ;;  %v1567_v27 = vadd.f32 %v1566_v20, %v4444_v29 }
 0x2f2   :  { %2914 = vmatpush1.bf16.msra.mxu0 %v4398_v32  ;;  %v2035_v10 = vmul.f32 0.01, %v1569_v40  ;;  %vm1912_vm7 = vcmp.ge.f32.partialorder %v1764_v5, 0.0  ;;  %v2040_v39 = vmul.f32 0.01, %v1764_v5  ;;  %2784 = vmatprep.mubr.bf16.mxu0 %v2263_v28  ;;  %vm1907_vm8 = vcmp.ge.f32.partialorder %v1569_v40, 0.0 }
 0x2f3   :  { %2915 = vmatprep.subr.bf16.mxu0 %v4402_v34  ;;  %v2037_v3 = vmul.f32 0.01, %v1762_v43  ;;  %vm1911_vm9 = vcmp.ge.f32.partialorder %v1573_v44, 0.0  ;;  %v2039_v32 = vmul.f32 0.01, %v1573_v44  ;;  %v2164_v50 = vsel %vm1908_vm6, %v1760_v7, %v2036_v61 }
 0x2f4   :  { %vm1909_vm10 = vcmp.ge.f32.partialorder %v1762_v43, 0.0  ;;  %v2168_v42 = vsel %vm1912_vm7, %v1764_v5, %v2040_v39  ;;  %v2041_v25 = vmul.f32 0.01, %v1766_v17  ;;  %v2038_v34 = vmul.f32 0.01, %v1571_v4 }
 0x2f5   :  { %v1576_v55 = vpop.f32.mrb[60].mxu0  ;;  %v1769_v49 = vpop.f32.mrb[92].mxu1  ;;  %2785 = vmatmul.mubr.bf16.gmra.mrb[116].mxu0 %v2262_v46  ;;  %v2268_v20 = vpack.c.bf16 %v2168_v42, %v2164_v50  ;;  %vm1913_vm11 = vcmp.ge.f32.partialorder %v1766_v17, 0.0  ;;  %v2167_v28 = vsel %vm1911_vm9, %v1573_v44, %v2039_v32  ;;  %v4677_v46 = vadd.f32 %v4581_v21, %v4446_v31 }
 0x2f6   :  { %v1578_v53 = vpop.f32.mrb[61].mxu0  ;;  %v1771_v8 = vpop.f32.mrb[93].mxu1  ;;  %2916 = vmatpush1.bf16.msra.mxu0 %v4404_v38  ;;  %v2034_v7 = vmul.f32 0.01, %v1567_v27  ;;  %vm1910_vm12 = vcmp.ge.f32.partialorder %v1571_v4, 0.0  ;;  %vm1906_vm13 = vcmp.ge.f32.partialorder %v1567_v27, 0.0  ;;  %v2163_v38 = vsel %vm1907_vm8, %v1569_v40, %v2035_v10 }
 0x2f7   :  { %v1580_v9 = vpop.f32.mrb[62].mxu0  ;;  %v1773_v13 = vpop.f32.mrb[94].mxu1  ;;  %2917 = vmatprep.subr.bf16.mxu0 %v4408_v45  ;;  %v1579_v61 = vadd.f32 %v1578_v53, %v4449_v33  ;;  %v4681_v5 = vmul.f32 0.01, %v4658_v48  ;;  %v2165_v39 = vsel %vm1909_vm10, %v1762_v43, %v2037_v3  ;;  %v4686_v44 = vadd.f32 %v1576_v55, %v4444_v29 }
 0x2f8   :  { %v1772_v45 = vadd.f32 %v1771_v8, %v4451_v35  ;;  %v1582_v32 = vpop.f32.mrb[63].mxu0  ;;  %v1775_v21 = vpop.f32.mrb[95].mxu1  ;;  %v2267_v50 = vpack.c.bf16 %v2167_v28, %v2163_v38  ;;  %v2169_v42 = vsel %vm1913_vm11, %v1766_v17, %v2041_v25  ;;  %v2166_v10 = vsel %vm1910_vm12, %v1571_v4, %v2038_v34 }
 0x2f9   :  { %5526 = vst [vmem:[#allocation26_spill] sm:$0xff] %v4681_v5  ;;  %v1583_v53 = vadd.f32 %v1582_v32, %v4449_v33  ;;  %v1776_v60 = vadd.f32 %v1775_v21, %v4451_v35  ;;  %v2269_v54 = vpack.c.bf16 %v2169_v42, %v2165_v39  ;;  %v4696_v8 = vmul.f32 0.01, %v4677_v46 }
 0x2fa   :  { %2918 = vmatpush1.bf16.msra.mxu0 %v4410_v47  ;;  %v1770_v55 = vadd.f32 %v1769_v49, %v4446_v31  ;;  %vm1915_vm14 = vcmp.ge.f32.partialorder %v1579_v61, 0.0  ;;  %2794 = vmatprep.mubr.bf16.mxu0 %v2267_v50  ;;  %v2162_v47 = vsel %vm1906_vm13, %v1567_v27, %v2034_v7  ;;  %v2043_v17 = vmul.f32 0.01, %v1579_v61 }
 0x2fb   :  { %2919 = vmatprep.subr.bf16.mxu0 %v4414_v51  ;;  %5527 = vst [vmem:[#allocation27_spill] sm:$0xff] %v4696_v8  ;;  %v1581_v3 = vadd.f32 %v1580_v9, %v4444_v29  ;;  %vm1919_vm15 = vcmp.ge.f32.partialorder %v1583_v53, 0.0  ;;  %v2047_v25 = vmul.f32 0.01, %v1583_v53  ;;  %2987 = vmatprep.mubr.bf16.mxu1 %v2269_v54  ;;  %v2045_v4 = vmul.f32 0.01, %v1772_v45 }
 0x2fc   :  { %v1774_v34 = vadd.f32 %v1773_v13, %v4446_v31  ;;  %v2049_v28 = vmul.f32 0.01, %v1776_v60  ;;  %v2266_v51 = vpack.c.bf16 %v2166_v10, %v2162_v47  ;;  %2988 = vmatmul.mubr.bf16.vlgmr.msra.gmra.mrb[128].mxu1 %v2268_v20  ;;  %vm1914_vm0 = vcmp.ge.f32.partialorder %v4686_v44, 0.0 }
 0x2fd   :  { %v1586_v40 = vpop.f32.mrb[64].mxu0  ;;  %v1779_v43 = vpop.f32.mrb[96].mxu1  ;;  %vm1917_vm1 = vcmp.ge.f32.partialorder %v1772_v45, 0.0  ;;  %vm1921_vm2 = vcmp.ge.f32.partialorder %v1776_v60, 0.0  ;;  %v2175_v7 = vsel %vm1919_vm15, %v1583_v53, %v2047_v25  ;;  %v2042_v9 = vmul.f32 0.01, %v4686_v44 }
 0x2fe   :  { %v1588_v38 = vpop.f32.mrb[65].mxu0  ;;  %v1781_v39 = vpop.f32.mrb[97].mxu1  ;;  %2920 = vmatpush1.bf16.msra.mxu0 %v4416_v1  ;;  %vm1916_vm3 = vcmp.ge.f32.partialorder %v1770_v55, 0.0  ;;  %v4706_v13 = vadd.f32 %v1586_v40, %v4444_v29  ;;  %v4709_v54 = vadd.f32 %v1779_v43, %v4446_v31  ;;  %v2044_v20 = vmul.f32 0.01, %v1770_v55 }
 0x2ff   :  { %v1590_v49 = vpop.f32.mrb[66].mxu0  ;;  %v1783_v27 = vpop.f32.mrb[98].mxu1  ;;  %2795 = vmatmul.mubr.bf16.gmra.mrb[120].mxu0 %v2266_v51  ;;  %2921 = vmatprep.subr.bf16.mxu0 %v4420_v57  ;;  %v2046_v32 = vmul.f32 0.01, %v1581_v3  ;;  %v4713_v21 = vadd.f32 %v1588_v38, %v4449_v33  ;;  %v2171_v50 = vsel %vm1915_vm14, %v1579_v61, %v2043_v17  ;;  %v2048_v1 = vmul.f32 0.01, %v1774_v34 }
 0x300   :  { %v1592_v42 = vpop.f32.mrb[67].mxu0  ;;  %v1785_v53 = vpop.f32.mrb[99].mxu1  ;;  %v2271_v10 = vpack.c.bf16 %v2175_v7, %v2171_v50  ;;  %v2173_v47 = vsel %vm1917_vm1, %v1772_v45, %v2045_v4  ;;  %v2177_v40 = vsel %vm1921_vm2, %v1776_v60, %v2049_v28  ;;  %vm1918_vm4 = vcmp.ge.f32.partialorder %v1581_v3, 0.0 }
 0x301   :  { %vm1920_vm5 = vcmp.ge.f32.partialorder %v1774_v34, 0.0  ;;  %v4719_v43 = vadd.f32 %v1781_v39, %v4451_v35  ;;  %v2273_v57 = vpack.c.bf16 %v2177_v40, %v2173_v47  ;;  %vm1922_vm6 = vcmp.ge.f32.partialorder %v4706_v13, 0.0 }
 0x302   :  { %2922 = vmatpush1.bf16.msra.mxu0 %v4422_v14  ;;  %v4724_v61 = vmul.f32 0.01, %v4706_v13  ;;  %vm1924_vm7 = vcmp.ge.f32.partialorder %v4709_v54, 0.0  ;;  %v1593_v45 = vadd.f32 %v1592_v42, %v4449_v33  ;;  %v1786_v60 = vadd.f32 %v1785_v53, %v4451_v35  ;;  %2804 = vmatprep.mubr.bf16.mxu0 %v2271_v10 }
 0x303   :  { %2923 = vmatprep.subr.bf16.mxu0 %v4426_v18  ;;  %v2052_v17 = vmul.f32 0.01, %v4709_v54  ;;  %vm1923_vm8 = vcmp.ge.f32.partialorder %v4713_v21, 0.0  ;;  %v1591_v14 = vadd.f32 %v1590_v49, %v4444_v29  ;;  %v1784_v4 = vadd.f32 %v1783_v27, %v4446_v31  ;;  %2997 = vmatprep.mubr.bf16.mxu1 %v2273_v57 }
 0x304   :  { %v2170_v28 = vsel %vm1914_vm0, %v4686_v44, %v2042_v9  ;;  %v2174_v38 = vsel %vm1918_vm4, %v1581_v3, %v2046_v32  ;;  %v2172_v39 = vsel %vm1916_vm3, %v1770_v55, %v2044_v20  ;;  %v2176_v7 = vsel %vm1920_vm5, %v1774_v34, %v2048_v1 }
 0x305   :  { %v1596_v25 = vpop.f32.mrb[68].mxu0  ;;  %v1789_v51 = vpop.f32.mrb[100].mxu1  ;;  %v2051_v42 = vmul.f32 0.01, %v4713_v21  ;;  %v2270_v53 = vpack.c.bf16 %v2174_v38, %v2170_v28  ;;  %v2272_v10 = vpack.c.bf16 %v2176_v7, %v2172_v39  ;;  %v2055_v44 = vmul.f32 0.01, %v1593_v45 }
 0x306   :  { %v1598_v18 = vpop.f32.mrb[69].mxu0  ;;  %v1791_v50 = vpop.f32.mrb[101].mxu1  ;;  %v4742_v49 = vadd.f32 %v1596_v25, %v4444_v29  ;;  %2924 = vmatpush1.bf16.msra.mxu0 %v4428_v23  ;;  %v2057_v9 = vmul.f32 0.01, %v1786_v60  ;;  %v2053_v55 = vmul.f32 0.01, %v4719_v43  ;;  %v4748_v34 = vadd.f32 %v1789_v51, %v4446_v31 }
 0x307   :  { %v1600_v27 = vpop.f32.mrb[70].mxu0  ;;  %v1793_v47 = vpop.f32.mrb[102].mxu1  ;;  %2925 = vmatprep.subr.bf16.mxu0 %v4432_v24  ;;  %vm1927_vm9 = vcmp.ge.f32.partialorder %v1593_v45, 0.0  ;;  %vm1929_vm10 = vcmp.ge.f32.partialorder %v1786_v60, 0.0  ;;  %2805 = vmatmul.mubr.bf16.gmra.mrb[124].mxu0 %v2270_v53  ;;  %vm1925_vm11 = vcmp.ge.f32.partialorder %v4719_v43, 0.0  ;;  %vm1926_vm12 = vcmp.ge.f32.partialorder %v1591_v14, 0.0 }
 0x308   :  { %v1602_v3 = vpop.f32.mrb[71].mxu0  ;;  %v1795_v32 = vpop.f32.mrb[103].mxu1  ;;  %2998 = vmatmul.mubr.bf16.gmra.mrb[132].mxu1 %v2272_v10  ;;  %v2054_v20 = vmul.f32 0.01, %v1591_v14  ;;  %vm1928_vm13 = vcmp.ge.f32.partialorder %v1784_v4, 0.0  ;;  %v4753_v23 = vadd.f32 %v4608_v52, %v4451_v35  ;;  %v1599_v40 = vadd.f32 %v1598_v18, %v4449_v33 }
 0x309   :  { %v2056_v1 = vmul.f32 0.01, %v1784_v4  ;;  %v4756_v24 = vmul.f32 0.01, %v4742_v49  ;;  %vm1930_vm14 = vcmp.ge.f32.partialorder %v4742_v49, 0.0  ;;  %v4762_v51 = vadd.f32 %v1791_v50, %v4451_v35 }
 0x30a   :  { %2926 = vmatpush1.bf16.msra.mxu0 %v4434_v26  ;;  %v4765_v28 = vadd.f32 %v1600_v27, %v4444_v29  ;;  %v2183_v52 = vsel %vm1927_vm9, %v1593_v45, %v2055_v44  ;;  %v2185_v38 = vsel %vm1929_vm10, %v1786_v60, %v2057_v9  ;;  %vm1932_vm15 = vcmp.ge.f32.partialorder %v4748_v34, 0.0 }
 0x30b   :  { %v1603_v18 = vadd.f32 %v1602_v3, %v4449_v33  ;;  %v2179_v26 = vsel %vm1923_vm8, %v4713_v21, %v2051_v42  ;;  %v2181_v50 = vsel %vm1925_vm11, %v4719_v43, %v2053_v55  ;;  %v1794_v53 = vadd.f32 %v1793_v47, %v4446_v31 }
 0x30c   :  { %v1796_v45 = vadd.f32 %v1795_v32, %v4451_v35  ;;  %v2275_v10 = vpack.c.bf16 %v2183_v52, %v2179_v26  ;;  %v2277_v60 = vpack.c.bf16 %v2185_v38, %v2181_v50  ;;  %v2178_v9 = vsel %vm1922_vm6, %v4706_v13, %v4724_v61 }
 0x30d   :  { %v1606_v57 = vpop.f32.mrb[72].mxu0  ;;  %v1799_v25 = vpop.f32.mrb[104].mxu1  ;;  %v2182_v3 = vsel %vm1926_vm12, %v1591_v14, %v2054_v20  ;;  %v2180_v21 = vsel %vm1924_vm7, %v4709_v54, %v2052_v17  ;;  %v2184_v43 = vsel %vm1928_vm13, %v1784_v4, %v2056_v1  ;;  %v2060_v32 = vmul.f32 0.01, %v4748_v34 }
 0x30e   :  { %v1608_v39 = vpop.f32.mrb[73].mxu0  ;;  %v1801_v7 = vpop.f32.mrb[105].mxu1  ;;  %2814 = vmatprep.mubr.bf16.mxu0 %v2275_v10  ;;  %3007 = vmatprep.mubr.bf16.mxu1 %v2277_v60  ;;  %v2274_v55 = vpack.c.bf16 %v2182_v3, %v2178_v9  ;;  %v2276_v52 = vpack.c.bf16 %v2184_v43, %v2180_v21  ;;  %v4790_v38 = vadd.f32 %v1606_v57, %v4444_v29  ;;  %vm1931_vm0 = vcmp.ge.f32.partialorder %v1599_v40, 0.0 }
 0x30f   :  { %v1610_v27 = vpop.f32.mrb[74].mxu0  ;;  %v1803_v44 = vpop.f32.mrb[106].mxu1  ;;  %v2059_v13 = vmul.f32 0.01, %v1599_v40  ;;  %v2063_v61 = vmul.f32 0.01, %v1603_v18  ;;  %v4793_v14 = vadd.f32 %v1799_v25, %v4446_v31  ;;  %v1609_v20 = vadd.f32 %v1608_v39, %v4449_v33 }
 0x310   :  { %v1612_v42 = vpop.f32.mrb[75].mxu0  ;;  %v1805_v47 = vpop.f32.mrb[107].mxu1  ;;  %vm1933_vm1 = vcmp.ge.f32.partialorder %v4762_v51, 0.0  ;;  %v2061_v54 = vmul.f32 0.01, %v4762_v51  ;;  %vm1935_vm2 = vcmp.ge.f32.partialorder %v1603_v18, 0.0  ;;  %2815 = vmatmul.mubr.bf16.gmra.mrb[128].mxu0 %v2274_v55  ;;  %3008 = vmatmul.mubr.bf16.gmra.mrb[136].mxu1 %v2276_v52  ;;  %v4804_v25 = vadd.f32 %v1801_v7, %v4451_v35 }
 0x311   :  { %v2065_v17 = vmul.f32 0.01, %v1796_v45  ;;  %vm1934_vm3 = vcmp.ge.f32.partialorder %v4765_v28, 0.0  ;;  %v2062_v4 = vmul.f32 0.01, %v4765_v28  ;;  %vm1937_vm4 = vcmp.ge.f32.partialorder %v1796_v45, 0.0 }
 0x312   :  { %vm1936_vm5 = vcmp.ge.f32.partialorder %v1794_v53, 0.0  ;;  %v2064_v1 = vmul.f32 0.01, %v1794_v53  ;;  %v4801_v57 = vmul.f32 0.01, %v4790_v38  ;;  %vm1938_vm6 = vcmp.ge.f32.partialorder %v4790_v38, 0.0 }
 0x313   :  { %v4808_v26 = vmul.f32 0.01, %v4793_v14  ;;  %v4811_v50 = vadd.f32 %v1610_v27, %v4444_v29  ;;  %v2187_v10 = vsel %vm1931_vm0, %v1599_v40, %v2059_v13  ;;  %v2191_v39 = vsel %vm1935_vm2, %v1603_v18, %v2063_v61 }
 0x314   :  { %vm1940_vm7 = vcmp.ge.f32.partialorder %v4793_v14, 0.0  ;;  %v4817_v3 = vadd.f32 %v1803_v44, %v4446_v31  ;;  %v1613_v7 = vadd.f32 %v1612_v42, %v4449_v33  ;;  %v2279_v21 = vpack.c.bf16 %v2191_v39, %v2187_v10 }
 0x315   :  { %v1616_v60 = vpop.f32.mrb[76].mxu0  ;;  %v1809_v9 = vpop.f32.mrb[108].mxu1  ;;  %v2193_v43 = vsel %vm1937_vm4, %v1796_v45, %v2065_v17  ;;  %vm1939_vm8 = vcmp.ge.f32.partialorder %v1609_v20, 0.0  ;;  %v1806_v27 = vadd.f32 %v1805_v47, %v4451_v35  ;;  %v2189_v40 = vsel %vm1933_vm1, %v4762_v51, %v2061_v54 }
 0x316   :  { %v1618_v55 = vpop.f32.mrb[77].mxu0  ;;  %v1811_v52 = vpop.f32.mrb[109].mxu1  ;;  %v2186_v18 = vsel %vm1930_vm14, %v4742_v49, %v4756_v24  ;;  %2824 = vmatprep.mubr.bf16.mxu0 %v2279_v21  ;;  %v2281_v44 = vpack.c.bf16 %v2193_v43, %v2189_v40  ;;  %v2190_v45 = vsel %vm1934_vm3, %v4765_v28, %v2062_v4  ;;  %v2188_v42 = vsel %vm1932_vm15, %v4748_v34, %v2060_v32 }
 0x317   :  { %v2192_v47 = vsel %vm1936_vm5, %v1794_v53, %v2064_v1  ;;  %v1620_v13 = vpop.f32.mrb[78].mxu0  ;;  %v1813_v61 = vpop.f32.mrb[110].mxu1  ;;  %v2067_v51 = vmul.f32 0.01, %v1609_v20  ;;  %v2278_v54 = vpack.c.bf16 %v2190_v45, %v2186_v18  ;;  %v4837_v10 = vadd.f32 %v1616_v60, %v4444_v29 }
 0x318   :  { %v2280_v17 = vpack.c.bf16 %v2192_v47, %v2188_v42  ;;  %v1622_v49 = vpop.f32.mrb[79].mxu0  ;;  %v1815_v24 = vpop.f32.mrb[111].mxu1  ;;  %vm1941_vm9 = vcmp.ge.f32.partialorder %v4804_v25, 0.0  ;;  %v2071_v39 = vmul.f32 0.01, %v1613_v7  ;;  %3017 = vmatprep.mubr.bf16.mxu1 %v2281_v44  ;;  %v4841_v28 = vadd.f32 %v1809_v9, %v4446_v31 }
 0x319   :  { %v4844_v34 = vadd.f32 %v1618_v55, %v4449_v33  ;;  %v2069_v53 = vmul.f32 0.01, %v4804_v25  ;;  %vm1942_vm10 = vcmp.ge.f32.partialorder %v4811_v50, 0.0  ;;  %vm1943_vm11 = vcmp.ge.f32.partialorder %v1613_v7, 0.0  ;;  %2825 = vmatmul.mubr.bf16.gmra.mrb[132].mxu0 %v2278_v54 }
 0x31a   :  { %v2073_v32 = vmul.f32 0.01, %v1806_v27  ;;  %3018 = vmatmul.mubr.bf16.gmra.mrb[140].mxu1 %v2280_v17  ;;  %v2070_v4 = vmul.f32 0.01, %v4811_v50  ;;  %vm1944_vm12 = vcmp.ge.f32.partialorder %v4817_v3, 0.0  ;;  %vm1945_vm13 = vcmp.ge.f32.partialorder %v1806_v27, 0.0 }
 0x31b   :  { %v4851_v1 = vadd.f32 %v1811_v52, %v4451_v35  ;;  %v2072_v60 = vmul.f32 0.01, %v4817_v3  ;;  %v4855_v9 = vmul.f32 0.01, %v4837_v10  ;;  %v4858_v21 = vadd.f32 %v1620_v13, %v4444_v29 }
 0x31c   :  { %v4861_v43 = vadd.f32 %v1813_v61, %v4446_v31  ;;  %vm1946_vm14 = vcmp.ge.f32.partialorder %v4837_v10, 0.0  ;;  %v4865_v55 = vmul.f32 0.01, %v4841_v28  ;;  %vm1947_vm15 = vcmp.ge.f32.partialorder %v4844_v34, 0.0 }
 0x31d   :  { %v2195_v52 = vsel %vm1939_vm8, %v1609_v20, %v2067_v51  ;;  %v2199_v40 = vsel %vm1943_vm11, %v1613_v7, %v2071_v39  ;;  %v1626_v18 = vpop.f32.mrb[80].mxu0  ;;  %v1819_v44 = vpop.f32.mrb[112].mxu1  ;;  %vm1948_vm0 = vcmp.ge.f32.partialorder %v4841_v28, 0.0  ;;  %v2075_v45 = vmul.f32 0.01, %v4844_v34 }
 0x31e   :  { %v1623_v42 = vadd.f32 %v1622_v49, %v4449_v33  ;;  %v2283_v47 = vpack.c.bf16 %v2199_v40, %v2195_v52  ;;  %v2201_v13 = vsel %vm1945_vm13, %v1806_v27, %v2073_v32  ;;  %v1628_v61 = vpop.f32.mrb[81].mxu0  ;;  %v1821_v54 = vpop.f32.mrb[113].mxu1  ;;  %vm1949_vm1 = vcmp.ge.f32.partialorder %v4851_v1, 0.0 }
 0x31f   :  { %v1816_v17 = vadd.f32 %v1815_v24, %v4451_v35  ;;  %v2197_v20 = vsel %vm1941_vm9, %v4804_v25, %v2069_v53  ;;  %v2194_v7 = vsel %vm1938_vm6, %v4790_v38, %v4801_v57  ;;  %v2198_v27 = vsel %vm1942_vm10, %v4811_v50, %v2070_v4  ;;  %v1630_v24 = vpop.f32.mrb[82].mxu0  ;;  %v1823_v39 = vpop.f32.mrb[114].mxu1 }
 0x320   :  { %2834 = vmatprep.mubr.bf16.mxu0 %v2283_v47  ;;  %v2285_v51 = vpack.c.bf16 %v2201_v13, %v2197_v20  ;;  %v2196_v49 = vsel %vm1940_vm7, %v4793_v14, %v4808_v26  ;;  %v2200_v25 = vsel %vm1944_vm12, %v4817_v3, %v2072_v60  ;;  %v2282_v53 = vpack.c.bf16 %v2198_v27, %v2194_v7  ;;  %v1632_v50 = vpop.f32.mrb[83].mxu0  ;;  %v1825_v4 = vpop.f32.mrb[115].mxu1 }
 0x321   :  { %v2284_v32 = vpack.c.bf16 %v2200_v25, %v2196_v49  ;;  %v4894_v38 = vadd.f32 %v1626_v18, %v4444_v29  ;;  %v4897_v57 = vadd.f32 %v1819_v44, %v4446_v31  ;;  %v2077_v52 = vmul.f32 0.01, %v4851_v1 }
 0x322   :  { %v2079_v40 = vmul.f32 0.01, %v1623_v42  ;;  %3027 = vmatprep.mubr.bf16.mxu1 %v2285_v51  ;;  %v4901_v14 = vadd.f32 %v1628_v61, %v4449_v33  ;;  %v4904_v26 = vadd.f32 %v1821_v54, %v4451_v35  ;;  %vm1950_vm2 = vcmp.ge.f32.partialorder %v4858_v21, 0.0  ;;  %2835 = vmatmul.mubr.bf16.gmra.mrb[136].mxu0 %v2282_v53 }
 0x323   :  { %v2078_v18 = vmul.f32 0.01, %v4858_v21  ;;  %vm1951_vm3 = vcmp.ge.f32.partialorder %v1623_v42, 0.0  ;;  %v2081_v44 = vmul.f32 0.01, %v1816_v17  ;;  %3028 = vmatmul.mubr.bf16.gmra.mrb[144].mxu1 %v2284_v32  ;;  %vm1952_vm4 = vcmp.ge.f32.partialorder %v4861_v43, 0.0 }
 0x324   :  { %v2080_v47 = vmul.f32 0.01, %v4861_v43  ;;  %vm1953_vm5 = vcmp.ge.f32.partialorder %v1816_v17, 0.0  ;;  %v4911_v13 = vadd.f32 %v1630_v24, %v4444_v29  ;;  %v4914_v61 = vmul.f32 0.01, %v4894_v38 }
 0x325   :  { %v1636_v3 = vpop.f32.mrb[84].mxu0  ;;  %v1829_v60 = vpop.f32.mrb[116].mxu1  ;;  %v4917_v54 = vmul.f32 0.01, %v4897_v57  ;;  %vm1955_vm6 = vcmp.ge.f32.partialorder %v4901_v14, 0.0  ;;  %v4921_v20 = vadd.f32 %v1823_v39, %v4446_v31  ;;  %vm1954_vm7 = vcmp.ge.f32.partialorder %v4894_v38, 0.0 }
 0x326   :  { %v2083_v7 = vmul.f32 0.01, %v4901_v14  ;;  %vm1957_vm8 = vcmp.ge.f32.partialorder %v4904_v26, 0.0  ;;  %v2203_v51 = vsel %vm1947_vm15, %v4844_v34, %v2075_v45  ;;  %v2207_v27 = vsel %vm1951_vm3, %v1623_v42, %v2079_v40  ;;  %v1638_v49 = vpop.f32.mrb[85].mxu0  ;;  %v1831_v25 = vpop.f32.mrb[117].mxu1 }
 0x327   :  { %vm1956_vm9 = vcmp.ge.f32.partialorder %v4897_v57, 0.0  ;;  %v4932_v24 = vmul.f32 0.01, %v4904_v26  ;;  %v1633_v39 = vadd.f32 %v1632_v50, %v4449_v33  ;;  %v2287_v53 = vpack.c.bf16 %v2207_v27, %v2203_v51  ;;  %v1640_v8 = vpop.f32.mrb[86].mxu0  ;;  %v1833_v36 = vpop.f32.mrb[118].mxu1 }
 0x328   :  { %v2209_v32 = vsel %vm1953_vm5, %v1816_v17, %v2081_v44  ;;  %vm1958_vm10 = vcmp.ge.f32.partialorder %v4911_v13, 0.0  ;;  %v1826_v34 = vadd.f32 %v1825_v4, %v4451_v35  ;;  %v2205_v45 = vsel %vm1949_vm1, %v4851_v1, %v2077_v52  ;;  %v1642_v52 = vpop.f32.mrb[87].mxu0  ;;  %v1835_v40 = vpop.f32.mrb[119].mxu1 }
 0x329   :  { %v2202_v42 = vsel %vm1946_vm14, %v4837_v10, %v4855_v9  ;;  %2844 = vmatprep.mubr.bf16.mxu0 %v2287_v53  ;;  %v2289_v50 = vpack.c.bf16 %v2209_v32, %v2205_v45  ;;  %v2206_v17 = vsel %vm1950_vm2, %v4858_v21, %v2078_v18  ;;  %v2204_v4 = vsel %vm1948_vm0, %v4841_v28, %v4865_v55 }
 0x32a   :  { %v2208_v1 = vsel %vm1952_vm4, %v4861_v43, %v2080_v47  ;;  %v2286_v44 = vpack.c.bf16 %v2206_v17, %v2202_v42  ;;  %v4956_v10 = vadd.f32 %v1636_v3, %v4444_v29  ;;  %v4959_v9 = vadd.f32 %v1829_v60, %v4446_v31 }
 0x32b   :  { %v2288_v51 = vpack.c.bf16 %v2208_v1, %v2204_v4  ;;  %v2086_v27 = vmul.f32 0.01, %v4911_v13  ;;  %v2087_v53 = vmul.f32 0.01, %v1633_v39  ;;  %3037 = vmatprep.mubr.bf16.mxu1 %v2289_v50  ;;  %v4963_v28 = vadd.f32 %v1638_v49, %v4449_v33 }
 0x32c   :  { %v4966_v43 = vadd.f32 %v1831_v25, %v4451_v35  ;;  %vm1885_vm11 = vcmp.ge.f32.partialorder %v4575_v62, 0.0  ;;  %vm1959_vm12 = vcmp.ge.f32.partialorder %v1633_v39, 0.0  ;;  %v2089_v3 = vmul.f32 0.01, %v1826_v34  ;;  %2845 = vmatmul.mubr.bf16.gmra.mrb[140].mxu0 %v2286_v44 }
 0x32d   :  { %v1646_v21 = vpop.f32.mrb[88].mxu0  ;;  %v1839_v18 = vpop.f32.mrb[120].mxu1  ;;  %3038 = vmatmul.mubr.bf16.gmra.mrb[148].mxu1 %v2288_v51  ;;  %v4970_v60 = vadd.f32 %v1640_v8, %v4444_v29  ;;  %v4973_v32 = vadd.f32 %v1833_v36, %v4446_v31  ;;  %vm1960_vm13 = vcmp.ge.f32.partialorder %v4921_v20, 0.0  ;;  %v2088_v49 = vmul.f32 0.01, %v4921_v20 }
 0x32e   :  { %v1648_v55 = vpop.f32.mrb[89].mxu0  ;;  %v1841_v47 = vpop.f32.mrb[121].mxu1  ;;  %vm1961_vm14 = vcmp.ge.f32.partialorder %v1826_v34, 0.0  ;;  %v4978_v25 = vmul.f32 0.01, %v4956_v10  ;;  %vm1962_vm15 = vcmp.ge.f32.partialorder %v4956_v10, 0.0  ;;  %v1643_v42 = vadd.f32 %v1642_v52, %v4449_v33 }
 0x32f   :  { %v4982_v45 = vmul.f32 0.01, %v4959_v9  ;;  %vm1963_vm0 = vcmp.ge.f32.partialorder %v4963_v28, 0.0  ;;  %v2091_v8 = vmul.f32 0.01, %v4963_v28  ;;  %vm1965_vm1 = vcmp.ge.f32.partialorder %v4966_v43, 0.0 }
 0x330   :  { %v4988_v36 = vmul.f32 0.01, %v4966_v43  ;;  %v2211_v50 = vsel %vm1955_vm6, %v4901_v14, %v2083_v7  ;;  %v2215_v17 = vsel %vm1959_vm12, %v1633_v39, %v2087_v53  ;;  %v1650_v4 = vpop.f32.mrb[90].mxu0  ;;  %v1843_v1 = vpop.f32.mrb[122].mxu1  ;;  %vm1964_vm2 = vcmp.ge.f32.partialorder %v4959_v9, 0.0 }
 0x331   :  { %vm1966_vm3 = vcmp.ge.f32.partialorder %v4970_v60, 0.0  ;;  %v4998_v44 = vmul.f32 0.01, %v4970_v60  ;;  %v5001_v51 = vmul.f32 0.01, %v4973_v32  ;;  %v2291_v5 = vpack.c.bf16 %v2215_v17, %v2211_v50  ;;  %v1652_v15 = vpop.f32.mrb[91].mxu0 }
 0x332   :  { %v2217_v52 = vsel %vm1961_vm14, %v1826_v34, %v2089_v3  ;;  %v1845_v6 = vpop.f32.mrb[123].mxu1  ;;  %v2095_v14 = vmul.f32 0.01, %v1643_v42  ;;  %v1836_v7 = vadd.f32 %v1835_v40, %v4451_v35  ;;  %v2213_v39 = vsel %vm1957_vm8, %v4904_v26, %v4932_v24 }
 0x333   :  { %v2210_v53 = vsel %vm1954_vm7, %v4894_v38, %v4914_v61  ;;  %2854 = vmatprep.mubr.bf16.mxu0 %v2291_v5  ;;  %v2293_v0 = vpack.c.bf16 %v2217_v52, %v2213_v39  ;;  %v2214_v34 = vsel %vm1958_vm10, %v4911_v13, %v2086_v27  ;;  %v2212_v40 = vsel %vm1956_vm9, %v4897_v57, %v4917_v54 }
 0x334   :  { %v2216_v26 = vsel %vm1960_vm13, %v4921_v20, %v2088_v49  ;;  %v2290_v50 = vpack.c.bf16 %v2214_v34, %v2210_v53  ;;  %v5024_v5 = vadd.f32 %v1646_v21, %v4444_v29  ;;  %v5027_v38 = vadd.f32 %v1839_v18, %v4446_v31 }
 0x335   :  { %v1656_v24 = vpop.f32.mrb[92].mxu0  ;;  %v1849_v3 = vpop.f32.mrb[124].mxu1  ;;  %v2292_v17 = vpack.c.bf16 %v2216_v26, %v2212_v40  ;;  %3047 = vmatprep.mubr.bf16.mxu1 %v2293_v0  ;;  %v5030_v27 = vadd.f32 %v1648_v55, %v4449_v33  ;;  %v5033_v57 = vadd.f32 %v1841_v47, %v4451_v35  ;;  %v5036_v54 = vadd.f32 %v1650_v4, %v4444_v29 }
 0x336   :  { %v1658_v13 = vpop.f32.mrb[93].mxu0  ;;  %v1851_v61 = vpop.f32.mrb[125].mxu1  ;;  %v5039_v20 = vadd.f32 %v1843_v1, %v4446_v31  ;;  %vm1968_vm4 = vcmp.ge.f32.partialorder %v4973_v32, 0.0  ;;  %vm1967_vm5 = vcmp.ge.f32.partialorder %v1643_v42, 0.0  ;;  %v2097_v18 = vmul.f32 0.01, %v1836_v7  ;;  %2855 = vmatmul.mubr.bf16.gmra.mrb[144].mxu0 %v2290_v50 }
 0x337   :  { %v1660_v21 = vpop.f32.mrb[94].mxu0  ;;  %v1853_v49 = vpop.f32.mrb[126].mxu1  ;;  %3048 = vmatmul.mubr.bf16.gmra.mrb[152].mxu1 %v2292_v17  ;;  %v5043_v0 = vmul.f32 0.01, %v5024_v5  ;;  %vm1969_vm6 = vcmp.ge.f32.partialorder %v1836_v7, 0.0  ;;  %vm1971_vm7 = vcmp.ge.f32.partialorder %v5030_v27, 0.0  ;;  %v5067_v39 = vsel %vm1885_vm11, %v4575_v62, %v4588_v37 }
 0x338   :  { %v5046_v55 = vmul.f32 0.01, %v5027_v38  ;;  %v5050_v47 = vmul.f32 0.01, %v5030_v27  ;;  %vm1970_vm8 = vcmp.ge.f32.partialorder %v5024_v5, 0.0  ;;  %vm1973_vm9 = vcmp.ge.f32.partialorder %v5033_v57, 0.0 }
 0x339   :  { %v5055_v4 = vmul.f32 0.01, %v5033_v57  ;;  %v5058_v1 = vmul.f32 0.01, %v5036_v54  ;;  %v5061_v52 = vmul.f32 0.01, %v5039_v20  ;;  %v1653_v53 = vadd.f32 %v1652_v15, %v4449_v33 }
 0x33a   :  { %v1846_v34 = vadd.f32 %v1845_v6, %v4451_v35  ;;  %v2219_v40 = vsel %vm1963_vm0, %v4963_v28, %v2091_v8  ;;  %v2223_v26 = vsel %vm1967_vm5, %v1643_v42, %v2095_v14  ;;  %v1662_v50 = vpop.f32.mrb[95].mxu0  ;;  %v1855_v17 = vpop.f32.mrb[127].mxu1  ;;  %vm1974_vm12 = vcmp.ge.f32.partialorder %v5036_v54, 0.0 }
 0x33b   :  { %v2295_v62 = vpack.c.bf16 %v2223_v26, %v2219_v40  ;;  %v2221_v37 = vsel %vm1965_vm1, %v4966_v43, %v4988_v36  ;;  %v2225_v6 = vsel %vm1969_vm6, %v1836_v7, %v2097_v18  ;;  %v2218_v15 = vsel %vm1962_vm15, %v4956_v10, %v4978_v25 }
 0x33c   :  { %vm1975_vm11 = vcmp.ge.f32.partialorder %v1653_v53, 0.0  ;;  %v2103_v28 = vmul.f32 0.01, %v1653_v53  ;;  %vm1977_vm14 = vcmp.ge.f32.partialorder %v1846_v34, 0.0  ;;  %v2105_v8 = vmul.f32 0.01, %v1846_v34 }
 0x33d   :  { %2864 = vmatprep.mubr.bf16.mxu0 %v2295_v62  ;;  %v2297_v42 = vpack.c.bf16 %v2225_v6, %v2221_v37  ;;  %v2222_v14 = vsel %vm1966_vm3, %v4970_v60, %v4998_v44  ;;  %v2220_v43 = vsel %vm1964_vm2, %v4959_v9, %v4982_v45  ;;  %v2224_v10 = vsel %vm1968_vm4, %v4973_v32, %v5001_v51 }
 0x33e   :  { %v2294_v25 = vpack.c.bf16 %v2222_v14, %v2218_v15  ;;  %v2296_v36 = vpack.c.bf16 %v2224_v10, %v2220_v43  ;;  %v1657_v7 = vadd.f32 %v1656_v24, %v4444_v29  ;;  %v5101_v18 = vadd.f32 %v1849_v3, %v4446_v31 }
 0x33f   :  { %3057 = vmatprep.mubr.bf16.mxu1 %v2297_v42  ;;  %v1659_v60 = vadd.f32 %v1658_v13, %v4449_v33  ;;  %v1852_v9 = vadd.f32 %v1851_v61, %v4451_v35  ;;  %v1661_v45 = vadd.f32 %v1660_v21, %v4444_v29  ;;  %v1854_v32 = vadd.f32 %v1853_v49, %v4446_v31 }
 0x340   :  { %2865 = vmatmul.mubr.bf16.gmra.mrb[148].mxu0 %v2294_v25  ;;  %3058 = vmatmul.mubr.bf16.gmra.mrb[156].mxu1 %v2296_v36  ;;  %v2106_v44 = vmul.f32 0.01, %v1657_v7  ;;  %v2108_v51 = vmul.f32 0.01, %v5101_v18  ;;  %vm1896_vm6 = vcmp.ge.f32.partialorder %v4626_v2, 0.0  ;;  %vm1897_vm15 = vcmp.ge.f32.partialorder %v4629_v63, 0.0 }
 0x341   :  { %vm1979_vm0 = vcmp.ge.f32.partialorder %v1659_v60, 0.0  ;;  %v2107_v29 = vmul.f32 0.01, %v1659_v60  ;;  %vm1981_vm13 = vcmp.ge.f32.partialorder %v1852_v9, 0.0  ;;  %v2109_v31 = vmul.f32 0.01, %v1852_v9 }
 0x342   :  { %vm1901_vm2 = vcmp.ge.f32.partialorder %v4658_v48, 0.0  ;;  %vm1905_vm1 = vcmp.ge.f32.partialorder %v4753_v23, 0.0  ;;  %vm1982_vm3 = vcmp.ge.f32.partialorder %v1661_v45, 0.0  ;;  %v2110_v24 = vmul.f32 0.01, %v1661_v45  ;;  %v5539_v25 = vld [vmem:[#allocation23_spill] sm:$0xff] }
 0x343   :  { %vm1984_vm10 = vcmp.ge.f32.partialorder %v1854_v32, 0.0  ;;  %v2112_v3 = vmul.f32 0.01, %v1854_v32  ;;  %v1663_v13 = vadd.f32 %v1662_v50, %v4449_v33  ;;  %v1856_v61 = vadd.f32 %v1855_v17, %v4451_v35 }
 0x344   :  { %v2227_v21 = vsel %vm1971_vm7, %v5030_v27, %v5050_v47  ;;  %v2231_v49 = vsel %vm1975_vm11, %v1653_v53, %v2103_v28  ;;  %v2229_v26 = vsel %vm1973_vm9, %v5033_v57, %v5055_v4  ;;  %v2233_v62 = vsel %vm1977_vm14, %v1846_v34, %v2105_v8 }
 0x345   :  { %v2299_v40 = vpack.c.bf16 %v2231_v49, %v2227_v21  ;;  %v2226_v33 = vsel %vm1970_vm8, %v5024_v5, %v5043_v0  ;;  %vm1983_vm5 = vcmp.ge.f32.partialorder %v1663_v13, 0.0  ;;  %v2111_v35 = vmul.f32 0.01, %v1663_v13  ;;  %v5560_v49 = vld [vmem:[#allocation20_spill] sm:$0xff] }
 0x346   :  { %vm1985_vm4 = vcmp.ge.f32.partialorder %v1856_v61, 0.0  ;;  %v2113_v50 = vmul.f32 0.01, %v1856_v61  ;;  %v2301_v27 = vpack.c.bf16 %v2233_v62, %v2229_v26  ;;  %v2230_v47 = vsel %vm1974_vm12, %v5036_v54, %v5058_v1  ;;  %v2370_v62 = vld [vmem:[%s5492_s8] sm:$0x3] }
 0x347   :  { %2874 = vmatprep.mubr.bf16.mxu0 %v2299_v40  ;;  %vm5528_vm7 = vcmp.ge.f32.partialorder %v5027_v38, 0.0  ;;  %vm5529_vm8 = vcmp.ge.f32.partialorder %v5039_v20, 0.0  ;;  %v2298_v0 = vpack.c.bf16 %v2230_v47, %v2226_v33  ;;  %v2235_v53 = vsel %vm1979_vm0, %v1659_v60, %v2107_v29  ;;  %v5543_v60 = vld [vmem:[#allocation27_spill] sm:$0xff]  ;;  %v5551_v29 = vld [vmem:[#allocation14_spill] sm:$0xff]  ;;  %v5561_v40 = vld [vmem:[#allocation21_spill] sm:$0xff] }
 0x348   :  { %v2228_v57 = vsel %vm5528_vm7, %v5027_v38, %v5046_v55  ;;  %v2232_v5 = vsel %vm5529_vm8, %v5039_v20, %v5061_v52  ;;  %v2239_v34 = vsel %vm1983_vm5, %v1663_v13, %v2111_v35  ;;  %3067 = vmatprep.mubr.bf16.mxu1 %v2301_v27  ;;  %v2237_v37 = vsel %vm1981_vm13, %v1852_v9, %v2109_v31  ;;  %v5552_v31 = vld [vmem:[#allocation16_spill] sm:$0xff]  ;;  %v5564_v27 = vld [vmem:[#allocation9_spill] sm:$0xff] }
 0x349   :  { %v2300_v4 = vpack.c.bf16 %v2232_v5, %v2228_v57  ;;  %v2303_v17 = vpack.c.bf16 %v2239_v34, %v2235_v53  ;;  %v2241_v54 = vsel %vm1985_vm4, %v1856_v61, %v2113_v50  ;;  %vm5530_vm9 = vcmp.ge.f32.partialorder %v1657_v7, 0.0  ;;  %2875 = vmatmul.mubr.bf16.gmra.mrb[152].mxu0 %v2298_v0  ;;  %v5558_v61 = vld [vmem:[#allocation19_spill] sm:$0xff]  ;;  %v5563_v33 = vld [vmem:[#allocation8_spill] sm:$0xff] }
 0x34a   :  { %v2234_v1 = vsel %vm5530_vm9, %v1657_v7, %v2106_v44  ;;  %v2033_v6 = vmul.f32 0.01, %v4753_v23  ;;  %v2305_v38 = vpack.c.bf16 %v2241_v54, %v2237_v37  ;;  %v2238_v55 = vsel %vm1982_vm3, %v1661_v45, %v2110_v24  ;;  %v5540_v7 = vld [vmem:[#allocation26_spill] sm:$0xff]  ;;  %v5545_v45 = vld [vmem:[#allocation12_spill] sm:$0xff]  ;;  %v5548_v44 = vld [vmem:[#allocation11_spill] sm:$0xff] }
 0x34b   :  { %3068 = vmatmul.mubr.bf16.gmra.mrb[160].mxu1 %v2300_v4  ;;  %vm5531_vm12 = vcmp.ge.f32.partialorder %v5101_v18, 0.0  ;;  %2884 = vmatprep.mubr.bf16.mxu0 %v2303_v17  ;;  %v2302_v52 = vpack.c.bf16 %v2238_v55, %v2234_v1  ;;  %v2240_v15 = vsel %vm1984_vm10, %v1854_v32, %v2112_v3  ;;  %vm5532_vm13 = vcmp.ge.f32.partialorder %v4599_v11, 0.0  ;;  %v5555_v3 = vld [vmem:[#allocation17_spill] sm:$0xff] }
 0x34c   :  { %v2236_v20 = vsel %vm5531_vm12, %v5101_v18, %v2108_v51  ;;  %v2145_v28 = vsel %vm5532_vm13, %v4599_v11, %v4641_v30  ;;  %vm5533_vm11 = vcmp.ge.f32.partialorder %v4571_v56, 0.0  ;;  %3077 = vmatprep.mubr.bf16.mxu1 %v2305_v38  ;;  %vm5534_vm14 = vcmp.ge.f32.partialorder %v4592_v59, 0.0  ;;  %v5536_v30 = vld [vmem:[#allocation24_spill] sm:$0xff]  ;;  %v5541_v18 = vld [vmem:[#allocation25_spill] sm:$0xff] }
 0x34d   :  { %v2140_v8 = vsel %vm5533_vm11, %v4571_v56, %v4585_v16  ;;  %v2304_v42 = vpack.c.bf16 %v2240_v15, %v2236_v20  ;;  %v2257_v14 = vpack.c.bf16 %v2145_v28, %v5067_v39  ;;  %v2144_v43 = vsel %vm5534_vm14, %v4592_v59, %v4638_v19  ;;  %v5537_v16 = vld [vmem:[#allocation22_spill] sm:$0xff] }
 0x34e   :  { %vm5535_vm10 = vcmp.ge.f32.partialorder %v4618_v12, 0.0  ;;  %v2256_v11 = vpack.c.bf16 %v2144_v43, %v2140_v8  ;;  %v2153_v56 = vsel %vm1897_vm15, %v4629_v63, %v5536_v30  ;;  %vm5538_vm0 = vcmp.ge.f32.partialorder %v4603_v58, 0.0 }
 0x34f   :  { %v2149_v10 = vsel %vm5535_vm10, %v4618_v12, %v4648_v41  ;;  %v2148_v39 = vsel %vm5538_vm0, %v4603_v58, %v5537_v16  ;;  %v2152_v59 = vsel %vm1896_vm6, %v4626_v2, %v5539_v25  ;;  %v2157_v12 = vsel %vm1901_vm2, %v4658_v48, %v5540_v7  ;;  %v5546_v48 = vld [vmem:[#allocation13_spill] sm:$0xff] }
 0x350   :  { %v2261_v19 = vpack.c.bf16 %v2153_v56, %v2149_v10  ;;  %v2260_v36 = vpack.c.bf16 %v2152_v59, %v2148_v39  ;;  %v2161_v63 = vsel %vm1905_vm1, %v4753_v23, %v2033_v6  ;;  %vm5542_vm15 = vcmp.ge.f32.partialorder %v4632_v22, 0.0  ;;  %v5549_v23 = vld [vmem:[#allocation10_spill] sm:$0xff] }
 0x351   :  { %v2265_v41 = vpack.c.bf16 %v2161_v63, %v2157_v12  ;;  %v2156_v58 = vsel %vm5542_vm15, %v4632_v22, %v5541_v18  ;;  %vm5544_vm3 = vcmp.ge.f32.partialorder %v4677_v46, 0.0  ;;  %2885 = vmatmul.mubr.bf16.gmra.mrb[156].mxu0 %v2302_v52  ;;  %v5547_v32 = vpack.c.bf16 %v5545_v45, %v5546_v48  ;;  %v5554_v22 = vld [vmem:[#allocation15_spill] sm:$0xff] }
 0x352   :  { %v2160_v2 = vsel %vm5544_vm3, %v4677_v46, %v5543_v60  ;;  %v5550_v51 = vpack.c.bf16 %v5548_v44, %v5549_v23  ;;  %v5553_v24 = vpack.c.bf16 %v5551_v29, %v5552_v31  ;;  %v5556_v13 = vpack.c.bf16 %v5554_v22, %v5555_v3  ;;  %v5557_v46 = vld [vmem:[#allocation18_spill] sm:$0xff] }
 0x353   :  { %v2264_v9 = vpack.c.bf16 %v2160_v2, %v2156_v58  ;;  %3078 = vmatmul.mubr.bf16.gmra.mrb[164].mxu1 %v2304_v42  ;;  %2927 = vmatprep.mubr.bf16.mxu0 %v5547_v32  ;;  %v5559_v21 = vpack.c.bf16 %v5557_v46, %v5558_v61  ;;  %v5562_v26 = vpack.c.bf16 %v5560_v49, %v5561_v40 }
 0x354   :  { %v5223_v35 = vrot.slane %v2370_v62, %v5563_v33  ;;  %v5226_v47 = vrot.slane %v2370_v62, %v5564_v27 }
 0x359   :  { %2928 = vmatmul.mubr.bf16.vlgmr.msra.gmra.mrb[96].mxu0 %v5550_v51 }
 0x35a   :  { %2937 = vmatprep.mubr.bf16.mxu0 %v5553_v24 }
 0x361   :  { %2938 = vmatmul.mubr.bf16.gmra.mrb[100].mxu0 %v5556_v13 }
 0x362   :  { %2947 = vmatprep.mubr.bf16.mxu0 %v5559_v21 }
 0x369   :  { %2948 = vmatmul.mubr.bf16.gmra.mrb[104].mxu0 %v5562_v26 }
 0x36a   :  { %2957 = vmatprep.mubr.bf16.mxu0 %v2257_v14 }
 0x371   :  { %2958 = vmatmul.mubr.bf16.gmra.mrb[108].mxu0 %v2256_v11 }
 0x372   :  { %2967 = vmatprep.mubr.bf16.mxu0 %v2261_v19 }
 0x379   :  { %2968 = vmatmul.mubr.bf16.gmra.mrb[112].mxu0 %v2260_v36 }
 0x37a   :  { %2977 = vmatprep.mubr.bf16.mxu0 %v2265_v41 }
 0x381   :  { %2978 = vmatmul.mubr.bf16.gmra.mrb[116].mxu0 %v2264_v9 }
 0x3cf   :  { %v2989_v50 = vpop.f32.mrb[128].mxu1 }
 0x3d0   :  { %v2991_v57 = vpop.f32.mrb[129].mxu1 }
 0x3d1   :  { %v2993_v0 = vpop.f32.mrb[130].mxu1 }
 0x3d2   :  { %v2796_v5 = vpop.f32.mrb[120].mxu0  ;;  %v2995_v34 = vpop.f32.mrb[131].mxu1 }
 0x3d3   :  { %v2797_v4 = vadd.f32 %v2796_v5, %v5223_v35  ;;  %v2798_v53 = vpop.f32.mrb[121].mxu0 }
 0x3d4   :  { %v2799_v17 = vadd.f32 %v2798_v53, %v5226_v47  ;;  %v2800_v37 = vpop.f32.mrb[122].mxu0 }
 0x3d5   :  { %v2990_v54 = vadd.f32 %v2989_v50, %v2797_v4  ;;  %v2801_v1 = vadd.f32 %v2800_v37, %v5223_v35  ;;  %v2802_v6 = vpop.f32.mrb[123].mxu0 }
 0x3d6   :  { %v2992_v38 = vadd.f32 %v2991_v57, %v2799_v17  ;;  %v2803_v55 = vadd.f32 %v2802_v6, %v5226_v47 }
 0x3d7   :  { %3112 = vst [vmem:[%s5493_s9 + $0xc0] sm:$0xff] %v2990_v54  ;;  %v2994_v20 = vadd.f32 %v2993_v0, %v2801_v1 }
 0x3d8   :  { %3113 = vst [vmem:[%s5493_s9 + $0xc8] sm:$0xff] %v2992_v38  ;;  %v2996_v52 = vadd.f32 %v2995_v34, %v2803_v55 }
 0x3d9   :  { %3114 = vst [vmem:[%s5493_s9 + $0xd0] sm:$0xff] %v2994_v20 }
 0x3da   :  { %3115 = vst [vmem:[%s5493_s9 + $0xd8] sm:$0xff] %v2996_v52  ;;  %v2806_v15 = vpop.f32.mrb[124].mxu0 }
 0x3db   :  { %v2999_v28 = vpop.f32.mrb[132].mxu1  ;;  %v2807_v8 = vadd.f32 %v2806_v15, %v5223_v35  ;;  %v2808_v42 = vpop.f32.mrb[125].mxu0 }
 0x3dc   :  { %v3001_v14 = vpop.f32.mrb[133].mxu1  ;;  %v2809_v43 = vadd.f32 %v2808_v42, %v5226_v47  ;;  %v2810_v10 = vpop.f32.mrb[126].mxu0 }
 0x3dd   :  { %v3003_v11 = vpop.f32.mrb[134].mxu1  ;;  %v3000_v30 = vadd.f32 %v2999_v28, %v2807_v8  ;;  %v2811_v56 = vadd.f32 %v2810_v10, %v5223_v35  ;;  %v2812_v16 = vpop.f32.mrb[127].mxu0 }
 0x3de   :  { %v3005_v39 = vpop.f32.mrb[135].mxu1  ;;  %v3002_v25 = vadd.f32 %v3001_v14, %v2809_v43  ;;  %v2813_v59 = vadd.f32 %v2812_v16, %v5226_v47 }
 0x3df   :  { %3116 = vst [vmem:[%s5493_s9 + $0xe0] sm:$0xff] %v3000_v30  ;;  %v3004_v19 = vadd.f32 %v3003_v11, %v2811_v56 }
 0x3e0   :  { %3117 = vst [vmem:[%s5493_s9 + $0xe8] sm:$0xff] %v3002_v25  ;;  %v3006_v36 = vadd.f32 %v3005_v39, %v2813_v59 }
 0x3e1   :  { %3118 = vst [vmem:[%s5493_s9 + $0xf0] sm:$0xff] %v3004_v19 }
 0x3e2   :  { %3119 = vst [vmem:[%s5493_s9 + $0xf8] sm:$0xff] %v3006_v36 }
 0x3e3   :  { %v2816_v7 = vpop.f32.mrb[128].mxu0  ;;  %v3009_v12 = vpop.f32.mrb[136].mxu1 }
 0x3e4   :  { %v2817_v63 = vadd.f32 %v2816_v7, %v5223_v35  ;;  %v2818_v41 = vpop.f32.mrb[129].mxu0  ;;  %v3011_v18 = vpop.f32.mrb[137].mxu1 }
 0x3e5   :  { %v2819_v58 = vadd.f32 %v2818_v41, %v5226_v47  ;;  %v2820_v60 = vpop.f32.mrb[130].mxu0  ;;  %v3013_v2 = vpop.f32.mrb[138].mxu1 }
 0x3e6   :  { %v3010_v9 = vadd.f32 %v3009_v12, %v2817_v63  ;;  %v2821_v45 = vadd.f32 %v2820_v60, %v5223_v35  ;;  %v2822_v48 = vpop.f32.mrb[131].mxu0  ;;  %v3015_v32 = vpop.f32.mrb[139].mxu1 }
 0x3e7   :  { %v3012_v44 = vadd.f32 %v3011_v18, %v2819_v58  ;;  %v2823_v23 = vadd.f32 %v2822_v48, %v5226_v47 }
 0x3e8   :  { %3120 = vst [vmem:[%s5493_s9 + $0x100] sm:$0xff] %v3010_v9  ;;  %v3014_v51 = vadd.f32 %v3013_v2, %v2821_v45 }
 0x3e9   :  { %3121 = vst [vmem:[%s5493_s9 + $0x108] sm:$0xff] %v3012_v44  ;;  %v3016_v29 = vadd.f32 %v3015_v32, %v2823_v23 }
 0x3ea   :  { %3122 = vst [vmem:[%s5493_s9 + $0x110] sm:$0xff] %v3014_v51 }
 0x3eb   :  { %3123 = vst [vmem:[%s5493_s9 + $0x118] sm:$0xff] %v3016_v29 }
 0x3ec   :  { %v2826_v31 = vpop.f32.mrb[132].mxu0 }
 0x3ed   :  { %v3019_v24 = vpop.f32.mrb[140].mxu1  ;;  %v2827_v22 = vadd.f32 %v2826_v31, %v5223_v35  ;;  %v2828_v3 = vpop.f32.mrb[133].mxu0 }
 0x3ee   :  { %v3021_v13 = vpop.f32.mrb[141].mxu1  ;;  %v2829_v46 = vadd.f32 %v2828_v3, %v5226_v47  ;;  %v2830_v61 = vpop.f32.mrb[134].mxu0 }
 0x3ef   :  { %v3023_v21 = vpop.f32.mrb[142].mxu1  ;;  %v3020_v49 = vadd.f32 %v3019_v24, %v2827_v22  ;;  %v2831_v40 = vadd.f32 %v2830_v61, %v5223_v35  ;;  %v2832_v26 = vpop.f32.mrb[135].mxu0 }
 0x3f0   :  { %v3025_v62 = vpop.f32.mrb[143].mxu1  ;;  %v3022_v33 = vadd.f32 %v3021_v13, %v2829_v46  ;;  %v2833_v50 = vadd.f32 %v2832_v26, %v5226_v47 }
 0x3f1   :  { %3124 = vst [vmem:[%s5493_s9 + $0x120] sm:$0xff] %v3020_v49  ;;  %v3024_v27 = vadd.f32 %v3023_v21, %v2831_v40 }
 0x3f2   :  { %3125 = vst [vmem:[%s5493_s9 + $0x128] sm:$0xff] %v3022_v33  ;;  %v3026_v57 = vadd.f32 %v3025_v62, %v2833_v50 }
 0x3f3   :  { %3126 = vst [vmem:[%s5493_s9 + $0x130] sm:$0xff] %v3024_v27 }
 0x3f4   :  { %3127 = vst [vmem:[%s5493_s9 + $0x138] sm:$0xff] %v3026_v57 }
 0x3f5   :  { %v2836_v5 = vpop.f32.mrb[136].mxu0 }
 0x3f6   :  { %v3029_v0 = vpop.f32.mrb[144].mxu1  ;;  %v2837_v4 = vadd.f32 %v2836_v5, %v5223_v35  ;;  %v2838_v53 = vpop.f32.mrb[137].mxu0 }
 0x3f7   :  { %v3031_v34 = vpop.f32.mrb[145].mxu1  ;;  %v2839_v17 = vadd.f32 %v2838_v53, %v5226_v47  ;;  %v2840_v37 = vpop.f32.mrb[138].mxu0 }
 0x3f8   :  { %v3033_v54 = vpop.f32.mrb[146].mxu1  ;;  %v3030_v1 = vadd.f32 %v3029_v0, %v2837_v4  ;;  %v2841_v6 = vadd.f32 %v2840_v37, %v5223_v35  ;;  %v2842_v38 = vpop.f32.mrb[139].mxu0 }
 0x3f9   :  { %v3035_v55 = vpop.f32.mrb[147].mxu1  ;;  %v3032_v20 = vadd.f32 %v3031_v34, %v2839_v17  ;;  %v2843_v52 = vadd.f32 %v2842_v38, %v5226_v47 }
 0x3fa   :  { %3128 = vst [vmem:[%s5493_s9 + $0x140] sm:$0xff] %v3030_v1  ;;  %v3034_v15 = vadd.f32 %v3033_v54, %v2841_v6 }
 0x3fb   :  { %3129 = vst [vmem:[%s5493_s9 + $0x148] sm:$0xff] %v3032_v20  ;;  %v3036_v28 = vadd.f32 %v3035_v55, %v2843_v52 }
 0x3fc   :  { %3130 = vst [vmem:[%s5493_s9 + $0x150] sm:$0xff] %v3034_v15 }
 0x3fd   :  { %3131 = vst [vmem:[%s5493_s9 + $0x158] sm:$0xff] %v3036_v28 }
 0x3ff   :  { %v2846_v8 = vpop.f32.mrb[140].mxu0 }
 0x400   :  { %v3039_v42 = vpop.f32.mrb[148].mxu1  ;;  %v2847_v14 = vadd.f32 %v2846_v8, %v5223_v35  ;;  %v2848_v43 = vpop.f32.mrb[141].mxu0 }
 0x401   :  { %v3041_v10 = vpop.f32.mrb[149].mxu1  ;;  %v2849_v11 = vadd.f32 %v2848_v43, %v5226_v47  ;;  %v2850_v30 = vpop.f32.mrb[142].mxu0 }
 0x402   :  { %v3043_v56 = vpop.f32.mrb[150].mxu1  ;;  %v3040_v16 = vadd.f32 %v3039_v42, %v2847_v14  ;;  %v2851_v39 = vadd.f32 %v2850_v30, %v5223_v35  ;;  %v2852_v25 = vpop.f32.mrb[143].mxu0 }
 0x403   :  { %v3045_v59 = vpop.f32.mrb[151].mxu1  ;;  %v3042_v19 = vadd.f32 %v3041_v10, %v2849_v11  ;;  %v2853_v36 = vadd.f32 %v2852_v25, %v5226_v47 }
 0x404   :  { %3132 = vst [vmem:[%s5493_s9 + $0x160] sm:$0xff] %v3040_v16  ;;  %v3044_v7 = vadd.f32 %v3043_v56, %v2851_v39 }
 0x405   :  { %3133 = vst [vmem:[%s5493_s9 + $0x168] sm:$0xff] %v3042_v19  ;;  %v3046_v12 = vadd.f32 %v3045_v59, %v2853_v36 }
 0x406   :  { %3134 = vst [vmem:[%s5493_s9 + $0x170] sm:$0xff] %v3044_v7 }
 0x407   :  { %3135 = vst [vmem:[%s5493_s9 + $0x178] sm:$0xff] %v3046_v12 }
 0x409   :  { %v2856_v63 = vpop.f32.mrb[144].mxu0 }
 0x40a   :  { %v3049_v41 = vpop.f32.mrb[152].mxu1  ;;  %v2857_v18 = vadd.f32 %v2856_v63, %v5223_v35  ;;  %v2858_v58 = vpop.f32.mrb[145].mxu0 }
 0x40b   :  { %v3051_v60 = vpop.f32.mrb[153].mxu1  ;;  %v2859_v2 = vadd.f32 %v2858_v58, %v5226_v47  ;;  %v2860_v9 = vpop.f32.mrb[146].mxu0 }
 0x40c   :  { %v3053_v45 = vpop.f32.mrb[154].mxu1  ;;  %v3050_v48 = vadd.f32 %v3049_v41, %v2857_v18  ;;  %v2861_v32 = vadd.f32 %v2860_v9, %v5223_v35  ;;  %v2862_v44 = vpop.f32.mrb[147].mxu0 }
 0x40d   :  { %v3055_v23 = vpop.f32.mrb[155].mxu1  ;;  %v3052_v51 = vadd.f32 %v3051_v60, %v2859_v2  ;;  %v2863_v29 = vadd.f32 %v2862_v44, %v5226_v47 }
 0x40e   :  { %3136 = vst [vmem:[%s5493_s9 + $0x180] sm:$0xff] %v3050_v48  ;;  %v3054_v31 = vadd.f32 %v3053_v45, %v2861_v32 }
 0x40f   :  { %3137 = vst [vmem:[%s5493_s9 + $0x188] sm:$0xff] %v3052_v51  ;;  %v3056_v24 = vadd.f32 %v3055_v23, %v2863_v29 }
 0x410   :  { %3138 = vst [vmem:[%s5493_s9 + $0x190] sm:$0xff] %v3054_v31 }
 0x411   :  { %3139 = vst [vmem:[%s5493_s9 + $0x198] sm:$0xff] %v3056_v24 }
 0x413   :  { %v2866_v22 = vpop.f32.mrb[148].mxu0  ;;  %v3059_v3 = vpop.f32.mrb[156].mxu1 }
 0x414   :  { %v2867_v13 = vadd.f32 %v2866_v22, %v5223_v35  ;;  %v2868_v46 = vpop.f32.mrb[149].mxu0  ;;  %v3061_v61 = vpop.f32.mrb[157].mxu1 }
 0x415   :  { %v2869_v21 = vadd.f32 %v2868_v46, %v5226_v47  ;;  %v2870_v49 = vpop.f32.mrb[150].mxu0  ;;  %v3063_v40 = vpop.f32.mrb[158].mxu1 }
 0x416   :  { %v3060_v26 = vadd.f32 %v3059_v3, %v2867_v13  ;;  %v2871_v62 = vadd.f32 %v2870_v49, %v5223_v35  ;;  %v2872_v33 = vpop.f32.mrb[151].mxu0  ;;  %v3065_v50 = vpop.f32.mrb[159].mxu1 }
 0x417   :  { %v3062_v27 = vadd.f32 %v3061_v61, %v2869_v21  ;;  %v2873_v57 = vadd.f32 %v2872_v33, %v5226_v47 }
 0x418   :  { %3140 = vst [vmem:[%s5493_s9 + $0x1a0] sm:$0xff] %v3060_v26  ;;  %v3064_v5 = vadd.f32 %v3063_v40, %v2871_v62 }
 0x419   :  { %3141 = vst [vmem:[%s5493_s9 + $0x1a8] sm:$0xff] %v3062_v27  ;;  %v3066_v0 = vadd.f32 %v3065_v50, %v2873_v57 }
 0x41a   :  { %3142 = vst [vmem:[%s5493_s9 + $0x1b0] sm:$0xff] %v3064_v5 }
 0x41b   :  { %3143 = vst [vmem:[%s5493_s9 + $0x1b8] sm:$0xff] %v3066_v0 }
 0x41c   :  { %v2876_v4 = vpop.f32.mrb[152].mxu0 }
 0x41d   :  { %v2877_v34 = vadd.f32 %v2876_v4, %v5223_v35  ;;  %v2878_v17 = vpop.f32.mrb[153].mxu0 }
 0x41e   :  { %v3069_v53 = vpop.f32.mrb[160].mxu1  ;;  %v2879_v54 = vadd.f32 %v2878_v17, %v5226_v47  ;;  %v2880_v1 = vpop.f32.mrb[154].mxu0 }
 0x41f   :  { %v3071_v37 = vpop.f32.mrb[161].mxu1  ;;  %v3070_v38 = vadd.f32 %v3069_v53, %v2877_v34  ;;  %v2881_v55 = vadd.f32 %v2880_v1, %v5223_v35  ;;  %v2882_v20 = vpop.f32.mrb[155].mxu0 }
 0x420   :  { %v3073_v6 = vpop.f32.mrb[162].mxu1  ;;  %v3072_v15 = vadd.f32 %v3071_v37, %v2879_v54  ;;  %v2883_v28 = vadd.f32 %v2882_v20, %v5226_v47 }
 0x421   :  { %v3075_v52 = vpop.f32.mrb[163].mxu1  ;;  %3144 = vst [vmem:[%s5493_s9 + $0x1c0] sm:$0xff] %v3070_v38  ;;  %v3074_v8 = vadd.f32 %v3073_v6, %v2881_v55 }
 0x422   :  { %3145 = vst [vmem:[%s5493_s9 + $0x1c8] sm:$0xff] %v3072_v15  ;;  %v3076_v42 = vadd.f32 %v3075_v52, %v2883_v28 }
 0x423   :  { %3146 = vst [vmem:[%s5493_s9 + $0x1d0] sm:$0xff] %v3074_v8 }
 0x424   :  { %3147 = vst [vmem:[%s5493_s9 + $0x1d8] sm:$0xff] %v3076_v42  ;;  %v2886_v14 = vpop.f32.mrb[156].mxu0 }
 0x425   :  { %v2887_v10 = vadd.f32 %v2886_v14, %v5223_v35  ;;  %v2888_v11 = vpop.f32.mrb[157].mxu0 }
 0x426   :  { %v3079_v43 = vpop.f32.mrb[164].mxu1  ;;  %v2889_v56 = vadd.f32 %v2888_v11, %v5226_v47  ;;  %v2890_v16 = vpop.f32.mrb[158].mxu0 }
 0x427   :  { %v3081_v30 = vpop.f32.mrb[165].mxu1  ;;  %v3080_v25 = vadd.f32 %v3079_v43, %v2887_v10  ;;  %v2891_v59 = vadd.f32 %v2890_v16, %v5223_v35  ;;  %v2892_v19 = vpop.f32.mrb[159].mxu0 }
 0x428   :  { %v3083_v39 = vpop.f32.mrb[166].mxu1  ;;  %v3082_v7 = vadd.f32 %v3081_v30, %v2889_v56  ;;  %v2893_v12 = vadd.f32 %v2892_v19, %v5226_v47 }
 0x429   :  { %v3085_v36 = vpop.f32.mrb[167].mxu1  ;;  %3148 = vst [vmem:[%s5493_s9 + $0x1e0] sm:$0xff] %v3080_v25  ;;  %v3084_v63 = vadd.f32 %v3083_v39, %v2891_v59 }
 0x42a   :  { %3149 = vst [vmem:[%s5493_s9 + $0x1e8] sm:$0xff] %v3082_v7  ;;  %v3086_v41 = vadd.f32 %v3085_v36, %v2893_v12 }
 0x42b   :  { %3150 = vst [vmem:[%s5493_s9 + $0x1f0] sm:$0xff] %v3084_v63 }
 0x42c   :  { %3151 = vst [vmem:[%s5493_s9 + $0x1f8] sm:$0xff] %v3086_v41  ;;  %v2929_v18 = vpop.f32.mrb[96].mxu0 }
 0x42d   :  { %v3461_v58 = vadd.f32 %v2929_v18, %v5223_v35  ;;  %v2931_v60 = vpop.f32.mrb[97].mxu0 }
 0x42e   :  { %v3462_v2 = vadd.f32 %v2931_v60, %v5226_v47  ;;  %v2933_v9 = vpop.f32.mrb[98].mxu0 }
 0x42f   :  { %3088 = vst [vmem:[%s5493_s9] sm:$0xff] %v3461_v58  ;;  %v3463_v45 = vadd.f32 %v2933_v9, %v5223_v35  ;;  %v2935_v48 = vpop.f32.mrb[99].mxu0 }
 0x430   :  { %3089 = vst [vmem:[%s5493_s9 + $0x8] sm:$0xff] %v3462_v2  ;;  %v3464_v32 = vadd.f32 %v2935_v48, %v5226_v47 }
 0x431   :  { %3090 = vst [vmem:[%s5493_s9 + $0x10] sm:$0xff] %v3463_v45 }
 0x432   :  { %3091 = vst [vmem:[%s5493_s9 + $0x18] sm:$0xff] %v3464_v32 }
 0x434   :  { %v2939_v44 = vpop.f32.mrb[100].mxu0 }
 0x435   :  { %v3465_v23 = vadd.f32 %v2939_v44, %v5223_v35  ;;  %v2941_v51 = vpop.f32.mrb[101].mxu0 }
 0x436   :  { %v3466_v29 = vadd.f32 %v2941_v51, %v5226_v47  ;;  %v2943_v31 = vpop.f32.mrb[102].mxu0 }
 0x437   :  { %3092 = vst [vmem:[%s5493_s9 + $0x20] sm:$0xff] %v3465_v23  ;;  %v3467_v24 = vadd.f32 %v2943_v31, %v5223_v35  ;;  %v2945_v22 = vpop.f32.mrb[103].mxu0 }
 0x438   :  { %3093 = vst [vmem:[%s5493_s9 + $0x28] sm:$0xff] %v3466_v29  ;;  %v3468_v3 = vadd.f32 %v2945_v22, %v5226_v47 }
 0x439   :  { %3094 = vst [vmem:[%s5493_s9 + $0x30] sm:$0xff] %v3467_v24 }
 0x43a   :  { %3095 = vst [vmem:[%s5493_s9 + $0x38] sm:$0xff] %v3468_v3 }
 0x43c   :  { %v2949_v13 = vpop.f32.mrb[104].mxu0 }
 0x43d   :  { %v3469_v46 = vadd.f32 %v2949_v13, %v5223_v35  ;;  %v2951_v61 = vpop.f32.mrb[105].mxu0 }
 0x43e   :  { %v3470_v21 = vadd.f32 %v2951_v61, %v5226_v47  ;;  %v2953_v49 = vpop.f32.mrb[106].mxu0 }
 0x43f   :  { %3096 = vst [vmem:[%s5493_s9 + $0x40] sm:$0xff] %v3469_v46  ;;  %v3471_v40 = vadd.f32 %v2953_v49, %v5223_v35  ;;  %v2955_v26 = vpop.f32.mrb[107].mxu0 }
 0x440   :  { %3097 = vst [vmem:[%s5493_s9 + $0x48] sm:$0xff] %v3470_v21  ;;  %v3472_v62 = vadd.f32 %v2955_v26, %v5226_v47 }
 0x441   :  { %3098 = vst [vmem:[%s5493_s9 + $0x50] sm:$0xff] %v3471_v40 }
 0x442   :  { %3099 = vst [vmem:[%s5493_s9 + $0x58] sm:$0xff] %v3472_v62 }
 0x444   :  { %v2959_v33 = vpop.f32.mrb[108].mxu0 }
 0x445   :  { %v3473_v50 = vadd.f32 %v2959_v33, %v5223_v35  ;;  %v2961_v27 = vpop.f32.mrb[109].mxu0 }
 0x446   :  { %v3474_v57 = vadd.f32 %v2961_v27, %v5226_v47  ;;  %v2963_v5 = vpop.f32.mrb[110].mxu0 }
 0x447   :  { %3100 = vst [vmem:[%s5493_s9 + $0x60] sm:$0xff] %v3473_v50  ;;  %v3475_v0 = vadd.f32 %v2963_v5, %v5223_v35  ;;  %v2965_v4 = vpop.f32.mrb[111].mxu0 }
 0x448   :  { %3101 = vst [vmem:[%s5493_s9 + $0x68] sm:$0xff] %v3474_v57  ;;  %v3476_v53 = vadd.f32 %v2965_v4, %v5226_v47 }
 0x449   :  { %3102 = vst [vmem:[%s5493_s9 + $0x70] sm:$0xff] %v3475_v0 }
 0x44a   :  { %3103 = vst [vmem:[%s5493_s9 + $0x78] sm:$0xff] %v3476_v53 }
 0x44c   :  { %v2969_v34 = vpop.f32.mrb[112].mxu0 }
 0x44d   :  { %v3477_v17 = vadd.f32 %v2969_v34, %v5223_v35  ;;  %v2971_v37 = vpop.f32.mrb[113].mxu0 }
 0x44e   :  { %v3478_v54 = vadd.f32 %v2971_v37, %v5226_v47  ;;  %v2973_v1 = vpop.f32.mrb[114].mxu0 }
 0x44f   :  { %3104 = vst [vmem:[%s5493_s9 + $0x80] sm:$0xff] %v3477_v17  ;;  %v3479_v6 = vadd.f32 %v2973_v1, %v5223_v35  ;;  %v2975_v38 = vpop.f32.mrb[115].mxu0 }
 0x450   :  { %3105 = vst [vmem:[%s5493_s9 + $0x88] sm:$0xff] %v3478_v54  ;;  %v3480_v55 = vadd.f32 %v2975_v38, %v5226_v47 }
 0x451   :  { %3106 = vst [vmem:[%s5493_s9 + $0x90] sm:$0xff] %v3479_v6 }
 0x452   :  { %3107 = vst [vmem:[%s5493_s9 + $0x98] sm:$0xff] %v3480_v55 }
 0x454   :  { %v2979_v20 = vpop.f32.mrb[116].mxu0 }
 0x455   :  { %v3481_v52 = vadd.f32 %v2979_v20, %v5223_v35  ;;  %v2981_v15 = vpop.f32.mrb[117].mxu0 }
 0x456   :  { %v3482_v28 = vadd.f32 %v2981_v15, %v5226_v47  ;;  %v2983_v8 = vpop.f32.mrb[118].mxu0 }
 0x457   :  { %3108 = vst [vmem:[%s5493_s9 + $0xa0] sm:$0xff] %v3481_v52  ;;  %v3483_v42 = vadd.f32 %v2983_v8, %v5223_v35  ;;  %v2985_v14 = vpop.f32.mrb[119].mxu0 }
 0x458   :  { %3109 = vst [vmem:[%s5493_s9 + $0xa8] sm:$0xff] %v3482_v28  ;;  %v3484_v43 = vadd.f32 %v2985_v14, %v5226_v47 }
 0x459   :  { %3110 = vst [vmem:[%s5493_s9 + $0xb0] sm:$0xff] %v3483_v42 }
 0x45a   :  { %3111 = vst [vmem:[%s5493_s9 + $0xb8] sm:$0xff] %v3484_v43 }
 0x45b   :  { %3156 = vsyncpa [#allocation3], 1 }
 0x45c   :  { %3157 = vsyncpa [#allocation5], 1 }

</bundles_post_ra>
